<compile_context>
chip_gen: v7x
topology: tpu7x:2x2x1
jax: 0.10.0
libtpu: 0.0.40
codegen_flags: <defaults>
</compile_context>

<pallas_src>
import jax
import jax.numpy as jnp
from jax import lax
from jax.experimental import pallas as pl
from jax.experimental.pallas import tpu as pltpu

CLIP_VALUE = 10000.0


def _encoder_kernel(x_ref, w_in_ref, b_in_ref, ru_xb_ref, w_ru_h_ref,
                    c_xb_ref, w_c_h_ref,
                    out_f_ref, out_b_ref,
                    y_ref, a_ru_ref, a_c_ref):
    """One grid step = one batch chunk, both directions fused.

    x_ref     : [BB, 2, N, T]  neurons-major inputs; [:,0]=forward time order,
                               [:,1]=time-reversed copy (for the backward pass)
    w_in_ref  : [N, N]         torch Linear weight ([out, in])
    b_in_ref  : [N, 1]         Linear bias as a column
    ru_xb_ref : [2, 2D]        row0 = input row of fused r/u weight, row1 = b_ru
    w_ru_h_ref: [D, 2D]        hidden rows of fused r/u weight
    c_xb_ref  : [2, D]         row0 = input row of c weight, row1 = b_c
    w_c_h_ref : [D, D]         hidden rows of c weight
    out_f_ref : [T, BB*N, D]   forward-direction hidden states
    out_b_ref : [T, BB*N, D]   backward-direction hidden states
    y_ref     : [2*BB*N, T]    scratch: w_in output, stacked (fwd rows | bwd rows)
    a_ru_ref  : [T, 2*BB*N, 2D] scratch: precomputed r/u gate input terms
    a_c_ref   : [T, 2*BB*N, D]  scratch: precomputed c gate input terms
    """
    BB, _, N, T = x_ref.shape
    D = w_c_h_ref.shape[0]
    Mc = BB * N            # rows per direction
    M2 = 2 * Mc            # stacked (forward | backward) rows

    w_in = w_in_ref[...]
    b_in = b_in_ref[...]
    w_ru_x = ru_xb_ref[0:1, :]       # [1, 2D]
    b_ru = ru_xb_ref[1:2, :]         # [1, 2D]
    w_c_x = c_xb_ref[0:1, :]         # [1, D]
    b_c = c_xb_ref[1:2, :]           # [1, D]
    w_ru_h = w_ru_h_ref[...]         # [D, 2D]
    w_c_h = w_c_h_ref[...]           # [D, D]

    # ---- Phase 1: w_in linear for both directions (backward copy is already
    # time-reversed by the wrapper).  Y[dir*Mc + b*N + n, t].
    for kd in range(2):
        for kb in range(BB):
            row = (kd * BB + kb) * N
            y_ref[row:row + N, :] = (
                jnp.dot(w_in, x_ref[kb, kd, :, :],
                        preferred_element_type=jnp.float32) + b_in)

    # ---- Phase 2: precompute per-step gate input terms (hoisted out of the
    # serial recurrence; iterations are independent).
    for t in range(T):
        ycol = y_ref[:, t:t + 1]                          # [M2, 1]
        a_ru_ref[t, :, :] = ycol * w_ru_x + b_ru          # [M2, 2D]
        a_c_ref[t, :, :] = ycol * w_c_x + b_c             # [M2, D]

    # ---- Phase 3: fused forward+backward GRU recurrence on the stacked
    # [M2, D] state (top half = forward, bottom half = backward).
    h = jnp.zeros((M2, D), jnp.float32)
    for t in range(T):
        ru = jax.nn.sigmoid(
            a_ru_ref[t, :, :]
            + jnp.dot(h, w_ru_h, preferred_element_type=jnp.float32))
        r = ru[:, :D]
        u = ru[:, D:]
        c = jnp.tanh(
            a_c_ref[t, :, :]
            + jnp.dot(r * h, w_c_h, preferred_element_type=jnp.float32))
        h = jnp.clip(u * h + (1.0 - u) * c, -CLIP_VALUE, CLIP_VALUE)
        out_f_ref[t, :, :] = h[:Mc, :]
        out_b_ref[T - 1 - t, :, :] = h[Mc:, :]


def encoder_forward(x, params, *, batch_block=None):
    """Pallas EnCoder forward.  x: [B, T, N] float32.
    Returns two [B, T, N, D] arrays (forward / backward hidden states)."""
    B, T, N = x.shape
    D = params["w_c"].shape[1]
    f32 = jnp.float32
    BB = B if batch_block is None else min(batch_block, B)
    assert B % BB == 0

    # ---- layout / parameter glue (pure JAX) ----
    xT = jnp.transpose(x, (0, 2, 1)).astype(f32)            # [B, N, T]
    x_both = jnp.stack([xT, xT[:, :, ::-1]], axis=1)        # [B, 2, N, T]
    w_in = params["w_in"].astype(f32)                       # [N, N]
    b_in = params["b_in"].astype(f32).reshape(N, 1)         # [N, 1]
    w_ru = params["w_ru"].astype(f32)                       # [D+1, 2D]
    b_ru = params["b_ru"].astype(f32)                       # [2D]
    w_c = params["w_c"].astype(f32)                         # [D+1, D]
    b_c = params["b_c"].astype(f32)                         # [D]
    ru_xb = jnp.stack([w_ru[0], b_ru], axis=0)              # [2, 2D]
    c_xb = jnp.stack([w_c[0], b_c], axis=0)                 # [2, D]
    w_ru_h = w_ru[1:]                                       # [D, 2D]
    w_c_h = w_c[1:]                                         # [D, D]

    def const_spec(shape):
        return pl.BlockSpec(shape, lambda c: (0,) * len(shape))

    grid_spec = pltpu.PrefetchScalarGridSpec(
        num_scalar_prefetch=0,
        grid=(B // BB,),
        in_specs=[
            pl.BlockSpec((BB, 2, N, T), lambda c: (c, 0, 0, 0)),
            const_spec((N, N)),
            const_spec((N, 1)),
            const_spec((2, 2 * D)),
            const_spec((D, 2 * D)),
            const_spec((2, D)),
            const_spec((D, D)),
        ],
        out_specs=[
            pl.BlockSpec((T, BB * N, D), lambda c: (0, c, 0)),
            pl.BlockSpec((T, BB * N, D), lambda c: (0, c, 0)),
        ],
        scratch_shapes=[
            pltpu.VMEM((2 * BB * N, T), f32),
            pltpu.VMEM((T, 2 * BB * N, 2 * D), f32),
            pltpu.VMEM((T, 2 * BB * N, D), f32),
        ],
    )

    out_f_k, out_b_k = pl.pallas_call(
        _encoder_kernel,
        out_shape=(jax.ShapeDtypeStruct((T, B * N, D), f32),
                   jax.ShapeDtypeStruct((T, B * N, D), f32)),
        grid_spec=grid_spec,
        compiler_params=pltpu.CompilerParams(
            dimension_semantics=("parallel",)),
    )(x_both, w_in, b_in, ru_xb, w_ru_h, c_xb, w_c_h)

    # Back to the module's [B, T, N, D] layout (pure-glue reshape/transpose).
    out_f = out_f_k.reshape(T, B, N, D).transpose(1, 0, 2, 3)
    out_b = out_b_k.reshape(T, B, N, D).transpose(1, 0, 2, 3)
    return out_f, out_b


def encoder_reference(x, params):
    """Pure-JAX reference mirroring the PyTorch module semantics."""
    B, T, N = x.shape
    w_ru, b_ru = params["w_ru"], params["b_ru"]
    w_c, b_c = params["w_c"], params["b_c"]
    D = w_c.shape[1]

    y = jnp.einsum("bti,oi->bto", x, params["w_in"]) + params["b_in"]
    y4 = y[..., None]                                                  # [B, T, N, 1]

    def cell(x_t, h):
        xh = jnp.concatenate([x_t, h], axis=-1)                        # [B, N, 1+D]
        ru = jax.nn.sigmoid(xh @ w_ru + b_ru)
        r, u = ru[..., :D], ru[..., D:]
        xrh = jnp.concatenate([x_t, r * h], axis=-1)
        c = jnp.tanh(xrh @ w_c + b_c)
        h_new = u * h + (1.0 - u) * c
        return jnp.clip(h_new, -CLIP_VALUE, CLIP_VALUE)

    h0 = jnp.zeros((B, N, D), jnp.float32)
    xs = jnp.transpose(y4, (1, 0, 2, 3))                               # [T, B, N, 1]

    def step(h, x_t):
        h_new = cell(x_t, h)
        return h_new, h_new

    _, fwd = lax.scan(step, h0, xs)
    _, bwd_rev = lax.scan(step, h0, xs[::-1])
    bwd = bwd_rev[::-1]
    return jnp.transpose(fwd, (1, 0, 2, 3)), jnp.transpose(bwd, (1, 0, 2, 3))


if __name__ == "__main__":
    # Small shapes consistent with the module: batch=2, time=8, neurons=16, dim=32.
    B, T, N, D = 2, 8, 16, 32

    key = jax.random.PRNGKey(0)
    kx, k1, k2, k3, k4, k5, k6 = jax.random.split(key, 7)
    x = jax.random.normal(kx, (B, T, N), jnp.float32)
    params = {
        "w_in": jax.random.normal(k1, (N, N), jnp.float32) / jnp.sqrt(N),
        "b_in": jax.random.normal(k2, (N,), jnp.float32) * 0.1,
        "w_ru": jax.random.normal(k3, (D + 1, 2 * D), jnp.float32) / jnp.sqrt(D + 1.0),
        "b_ru": jax.random.normal(k4, (2 * D,), jnp.float32) * 0.1,
        "w_c": jax.random.normal(k5, (D + 1, D), jnp.float32) / jnp.sqrt(D + 1.0),
        "b_c": jax.random.normal(k6, (D,), jnp.float32) * 0.1,
    }

    out_f, out_b = jax.jit(encoder_forward)(x, params)
    jax.block_until_ready((out_f, out_b))

    ref_f, ref_b = encoder_reference(x, params)
    assert out_f.shape == (B, T, N, D) and out_b.shape == (B, T, N, D)
    assert jnp.allclose(out_f, ref_f, atol=1e-4, rtol=1e-4), "forward-direction mismatch"
    assert jnp.allclose(out_b, ref_b, atol=1e-4, rtol=1e-4), "backward-direction mismatch"

    # Match the PyTorch return format: two lists of length `time`, each [B, neurons, dim].
    enc_outs_forward = [out_f[:, t] for t in range(T)]
    enc_outs_backward = [out_b[:, t] for t in range(T)]
    assert len(enc_outs_forward) == T and enc_outs_forward[0].shape == (B, N, D)

    print("KERNEL_OK")
</pallas_src>

<mosaic_0001>
module attributes {stable_mosaic.version = 11 : i64} {
  func.func @_encoder_kernel(%arg0: i32, %arg1: memref<2x2x16x8xf32, #tpu.memory_space<vmem>>, %arg2: memref<16x16xf32, #tpu.memory_space<vmem>>, %arg3: memref<16x1xf32, #tpu.memory_space<vmem>>, %arg4: memref<2x64xf32, #tpu.memory_space<vmem>>, %arg5: memref<32x64xf32, #tpu.memory_space<vmem>>, %arg6: memref<2x32xf32, #tpu.memory_space<vmem>>, %arg7: memref<32x32xf32, #tpu.memory_space<vmem>>, %arg8: memref<8x32x32xf32, #tpu.memory_space<vmem>>, %arg9: memref<8x32x32xf32, #tpu.memory_space<vmem>>, %arg10: memref<64x8xf32, #tpu.memory_space<vmem>>, %arg11: memref<8x64x64xf32, #tpu.memory_space<vmem>>, %arg12: memref<8x64x32xf32, #tpu.memory_space<vmem>>) attributes {dimension_semantics = [#tpu.dimension_semantics<parallel>], iteration_bounds = array<i64: 1>, scalar_prefetch = 0 : i64, scratch_operands = 3 : i64, tpu.core_type = #tpu.core_type<tc>, window_params = [{transform_indices = @transform_0, window_bounds = array<i64: 2, 2, 16, 8>}, {pipeline_mode = #tpu.pipeline_mode<synchronous>, transform_indices = @transform_1, window_bounds = array<i64: 16, 16>}, {pipeline_mode = #tpu.pipeline_mode<synchronous>, transform_indices = @transform_2, window_bounds = array<i64: 16, 1>}, {pipeline_mode = #tpu.pipeline_mode<synchronous>, transform_indices = @transform_3, window_bounds = array<i64: 2, 64>}, {pipeline_mode = #tpu.pipeline_mode<synchronous>, transform_indices = @transform_4, window_bounds = array<i64: 32, 64>}, {pipeline_mode = #tpu.pipeline_mode<synchronous>, transform_indices = @transform_5, window_bounds = array<i64: 2, 32>}, {pipeline_mode = #tpu.pipeline_mode<synchronous>, transform_indices = @transform_6, window_bounds = array<i64: 32, 32>}, {transform_indices = @transform_7, window_bounds = array<i64: 8, 32, 32>}, {transform_indices = @transform_8, window_bounds = array<i64: 8, 32, 32>}]} {
    %c0 = arith.constant 0 : index
    %c0_0 = arith.constant 0 : index
    %0 = vector.load %arg2[%c0, %c0_0] : memref<16x16xf32, #tpu.memory_space<vmem>>, vector<16x16xf32>
    %c0_1 = arith.constant 0 : index
    %c0_2 = arith.constant 0 : index
    %1 = vector.load %arg3[%c0_1, %c0_2] : memref<16x1xf32, #tpu.memory_space<vmem>>, vector<16x1xf32>
    %c0_3 = arith.constant 0 : index
    %c0_4 = arith.constant 0 : index
    %2 = vector.load %arg4[%c0_3, %c0_4] : memref<2x64xf32, #tpu.memory_space<vmem>>, vector<1x64xf32>
    %c1 = arith.constant 1 : index
    %c0_5 = arith.constant 0 : index
    %3 = vector.load %arg4[%c1, %c0_5] : memref<2x64xf32, #tpu.memory_space<vmem>>, vector<1x64xf32>
    %c0_6 = arith.constant 0 : index
    %c0_7 = arith.constant 0 : index
    %4 = vector.load %arg6[%c0_6, %c0_7] : memref<2x32xf32, #tpu.memory_space<vmem>>, vector<1x32xf32>
    %c1_8 = arith.constant 1 : index
    %c0_9 = arith.constant 0 : index
    %5 = vector.load %arg6[%c1_8, %c0_9] : memref<2x32xf32, #tpu.memory_space<vmem>>, vector<1x32xf32>
    %c0_10 = arith.constant 0 : index
    %c0_11 = arith.constant 0 : index
    %6 = vector.load %arg5[%c0_10, %c0_11] : memref<32x64xf32, #tpu.memory_space<vmem>>, vector<32x64xf32>
    %c0_12 = arith.constant 0 : index
    %c0_13 = arith.constant 0 : index
    %7 = vector.load %arg7[%c0_12, %c0_13] : memref<32x32xf32, #tpu.memory_space<vmem>>, vector<32x32xf32>
    %c0_14 = arith.constant 0 : index
    %c0_15 = arith.constant 0 : index
    %c0_16 = arith.constant 0 : index
    %c0_17 = arith.constant 0 : index
    %8 = vector.load %arg1[%c0_14, %c0_15, %c0_16, %c0_17] : memref<2x2x16x8xf32, #tpu.memory_space<vmem>>, vector<1x1x16x8xf32>
    %9 = vector.shape_cast %8 : vector<1x1x16x8xf32> to vector<16x8xf32>
    %cst = arith.constant dense<0.000000e+00> : vector<16x8xf32>
    %10 = tpu.matmul %0, %9, %cst {dimension_numbers = #tpu.dot_dimension_numbers<[1], [0], [0], [1], [0, 0, 1, 1], [], []>} : vector<16x16xf32>, vector<16x8xf32>, vector<16x8xf32> -> vector<16x8xf32>
    %11 = vector.broadcast %1 : vector<16x1xf32> to vector<16x8xf32>
    %12 = arith.addf %10, %11 : vector<16x8xf32>
    %c0_18 = arith.constant 0 : index
    %c0_19 = arith.constant 0 : index
    %13 = vector.load %arg10[%c0_18, %c0_19] : memref<64x8xf32, #tpu.memory_space<vmem>>, vector<16x8xf32>
    tpu.vector_store %arg10[%c0_18, %c0_19], %12 {strides = array<i32>} : memref<64x8xf32, #tpu.memory_space<vmem>>, vector<16x8xf32>,
    %c1_20 = arith.constant 1 : index
    %c0_21 = arith.constant 0 : index
    %c0_22 = arith.constant 0 : index
    %c0_23 = arith.constant 0 : index
    %14 = vector.load %arg1[%c1_20, %c0_21, %c0_22, %c0_23] : memref<2x2x16x8xf32, #tpu.memory_space<vmem>>, vector<1x1x16x8xf32>
    %15 = vector.shape_cast %14 : vector<1x1x16x8xf32> to vector<16x8xf32>
    %cst_24 = arith.constant dense<0.000000e+00> : vector<16x8xf32>
    %16 = tpu.matmul %0, %15, %cst_24 {dimension_numbers = #tpu.dot_dimension_numbers<[1], [0], [0], [1], [0, 0, 1, 1], [], []>} : vector<16x16xf32>, vector<16x8xf32>, vector<16x8xf32> -> vector<16x8xf32>
    %17 = vector.broadcast %1 : vector<16x1xf32> to vector<16x8xf32>
    %18 = arith.addf %16, %17 : vector<16x8xf32>
    %c16 = arith.constant 16 : index
    %c0_25 = arith.constant 0 : index
    %19 = vector.load %arg10[%c16, %c0_25] : memref<64x8xf32, #tpu.memory_space<vmem>>, vector<16x8xf32>
    tpu.vector_store %arg10[%c16, %c0_25], %18 {strides = array<i32>} : memref<64x8xf32, #tpu.memory_space<vmem>>, vector<16x8xf32>,
    %c0_26 = arith.constant 0 : index
    %c1_27 = arith.constant 1 : index
    %c0_28 = arith.constant 0 : index
    %c0_29 = arith.constant 0 : index
    %20 = vector.load %arg1[%c0_26, %c1_27, %c0_28, %c0_29] : memref<2x2x16x8xf32, #tpu.memory_space<vmem>>, vector<1x1x16x8xf32>
    %21 = vector.shape_cast %20 : vector<1x1x16x8xf32> to vector<16x8xf32>
    %cst_30 = arith.constant dense<0.000000e+00> : vector<16x8xf32>
    %22 = tpu.matmul %0, %21, %cst_30 {dimension_numbers = #tpu.dot_dimension_numbers<[1], [0], [0], [1], [0, 0, 1, 1], [], []>} : vector<16x16xf32>, vector<16x8xf32>, vector<16x8xf32> -> vector<16x8xf32>
    %23 = vector.broadcast %1 : vector<16x1xf32> to vector<16x8xf32>
    %24 = arith.addf %22, %23 : vector<16x8xf32>
    %c32 = arith.constant 32 : index
    %c0_31 = arith.constant 0 : index
    %25 = vector.load %arg10[%c32, %c0_31] : memref<64x8xf32, #tpu.memory_space<vmem>>, vector<16x8xf32>
    tpu.vector_store %arg10[%c32, %c0_31], %24 {strides = array<i32>} : memref<64x8xf32, #tpu.memory_space<vmem>>, vector<16x8xf32>,
    %c1_32 = arith.constant 1 : index
    %c1_33 = arith.constant 1 : index
    %c0_34 = arith.constant 0 : index
    %c0_35 = arith.constant 0 : index
    %26 = vector.load %arg1[%c1_32, %c1_33, %c0_34, %c0_35] : memref<2x2x16x8xf32, #tpu.memory_space<vmem>>, vector<1x1x16x8xf32>
    %27 = vector.shape_cast %26 : vector<1x1x16x8xf32> to vector<16x8xf32>
    %cst_36 = arith.constant dense<0.000000e+00> : vector<16x8xf32>
    %28 = tpu.matmul %0, %27, %cst_36 {dimension_numbers = #tpu.dot_dimension_numbers<[1], [0], [0], [1], [0, 0, 1, 1], [], []>} : vector<16x16xf32>, vector<16x8xf32>, vector<16x8xf32> -> vector<16x8xf32>
    %29 = vector.broadcast %1 : vector<16x1xf32> to vector<16x8xf32>
    %30 = arith.addf %28, %29 : vector<16x8xf32>
    %c48 = arith.constant 48 : index
    %c0_37 = arith.constant 0 : index
    %31 = vector.load %arg10[%c48, %c0_37] : memref<64x8xf32, #tpu.memory_space<vmem>>, vector<16x8xf32>
    tpu.vector_store %arg10[%c48, %c0_37], %30 {strides = array<i32>} : memref<64x8xf32, #tpu.memory_space<vmem>>, vector<16x8xf32>,
    %c0_38 = arith.constant 0 : index
    %c0_39 = arith.constant 0 : index
    %32 = vector.load %arg10[%c0_38, %c0_39] : memref<64x8xf32, #tpu.memory_space<vmem>>, vector<64x1xf32>
    %33 = vector.broadcast %32 : vector<64x1xf32> to vector<64x64xf32>
    %34 = vector.broadcast %2 : vector<1x64xf32> to vector<64x64xf32>
    %35 = arith.mulf %33, %34 : vector<64x64xf32>
    %36 = vector.broadcast %3 : vector<1x64xf32> to vector<64x64xf32>
    %37 = arith.addf %35, %36 : vector<64x64xf32>
    %c0_40 = arith.constant 0 : index
    %c0_41 = arith.constant 0 : index
    %c0_42 = arith.constant 0 : index
    %38 = vector.load %arg11[%c0_40, %c0_41, %c0_42] : memref<8x64x64xf32, #tpu.memory_space<vmem>>, vector<1x64x64xf32>
    %39 = vector.shape_cast %38 : vector<1x64x64xf32> to vector<64x64xf32>
    %40 = vector.shape_cast %37 : vector<64x64xf32> to vector<1x64x64xf32>
    tpu.vector_store %arg11[%c0_40, %c0_41, %c0_42], %40 {strides = array<i32>} : memref<8x64x64xf32, #tpu.memory_space<vmem>>, vector<1x64x64xf32>,
    %41 = vector.broadcast %32 : vector<64x1xf32> to vector<64x32xf32>
    %42 = vector.broadcast %4 : vector<1x32xf32> to vector<64x32xf32>
    %43 = arith.mulf %41, %42 : vector<64x32xf32>
    %44 = vector.broadcast %5 : vector<1x32xf32> to vector<64x32xf32>
    %45 = arith.addf %43, %44 : vector<64x32xf32>
    %c0_43 = arith.constant 0 : index
    %c0_44 = arith.constant 0 : index
    %c0_45 = arith.constant 0 : index
    %46 = vector.load %arg12[%c0_43, %c0_44, %c0_45] : memref<8x64x32xf32, #tpu.memory_space<vmem>>, vector<1x64x32xf32>
    %47 = vector.shape_cast %46 : vector<1x64x32xf32> to vector<64x32xf32>
    %48 = vector.shape_cast %45 : vector<64x32xf32> to vector<1x64x32xf32>
    tpu.vector_store %arg12[%c0_43, %c0_44, %c0_45], %48 {strides = array<i32>} : memref<8x64x32xf32, #tpu.memory_space<vmem>>, vector<1x64x32xf32>,
    %c0_46 = arith.constant 0 : index
    %c1_47 = arith.constant 1 : index
    %49 = vector.load %arg10[%c0_46, %c1_47] : memref<64x8xf32, #tpu.memory_space<vmem>>, vector<64x1xf32>
    %50 = vector.broadcast %49 : vector<64x1xf32> to vector<64x64xf32>
    %51 = vector.broadcast %2 : vector<1x64xf32> to vector<64x64xf32>
    %52 = arith.mulf %50, %51 : vector<64x64xf32>
    %53 = vector.broadcast %3 : vector<1x64xf32> to vector<64x64xf32>
    %54 = arith.addf %52, %53 : vector<64x64xf32>
    %c1_48 = arith.constant 1 : index
    %c0_49 = arith.constant 0 : index
    %c0_50 = arith.constant 0 : index
    %55 = vector.load %arg11[%c1_48, %c0_49, %c0_50] : memref<8x64x64xf32, #tpu.memory_space<vmem>>, vector<1x64x64xf32>
    %56 = vector.shape_cast %55 : vector<1x64x64xf32> to vector<64x64xf32>
    %57 = vector.shape_cast %54 : vector<64x64xf32> to vector<1x64x64xf32>
    tpu.vector_store %arg11[%c1_48, %c0_49, %c0_50], %57 {strides = array<i32>} : memref<8x64x64xf32, #tpu.memory_space<vmem>>, vector<1x64x64xf32>,
    %58 = vector.broadcast %49 : vector<64x1xf32> to vector<64x32xf32>
    %59 = vector.broadcast %4 : vector<1x32xf32> to vector<64x32xf32>
    %60 = arith.mulf %58, %59 : vector<64x32xf32>
    %61 = vector.broadcast %5 : vector<1x32xf32> to vector<64x32xf32>
    %62 = arith.addf %60, %61 : vector<64x32xf32>
    %c1_51 = arith.constant 1 : index
    %c0_52 = arith.constant 0 : index
    %c0_53 = arith.constant 0 : index
    %63 = vector.load %arg12[%c1_51, %c0_52, %c0_53] : memref<8x64x32xf32, #tpu.memory_space<vmem>>, vector<1x64x32xf32>
    %64 = vector.shape_cast %63 : vector<1x64x32xf32> to vector<64x32xf32>
    %65 = vector.shape_cast %62 : vector<64x32xf32> to vector<1x64x32xf32>
    tpu.vector_store %arg12[%c1_51, %c0_52, %c0_53], %65 {strides = array<i32>} : memref<8x64x32xf32, #tpu.memory_space<vmem>>, vector<1x64x32xf32>,
    %c0_54 = arith.constant 0 : index
    %c2 = arith.constant 2 : index
    %66 = vector.load %arg10[%c0_54, %c2] : memref<64x8xf32, #tpu.memory_space<vmem>>, vector<64x1xf32>
    %67 = vector.broadcast %66 : vector<64x1xf32> to vector<64x64xf32>
    %68 = vector.broadcast %2 : vector<1x64xf32> to vector<64x64xf32>
    %69 = arith.mulf %67, %68 : vector<64x64xf32>
    %70 = vector.broadcast %3 : vector<1x64xf32> to vector<64x64xf32>
    %71 = arith.addf %69, %70 : vector<64x64xf32>
    %c2_55 = arith.constant 2 : index
    %c0_56 = arith.constant 0 : index
    %c0_57 = arith.constant 0 : index
    %72 = vector.load %arg11[%c2_55, %c0_56, %c0_57] : memref<8x64x64xf32, #tpu.memory_space<vmem>>, vector<1x64x64xf32>
    %73 = vector.shape_cast %72 : vector<1x64x64xf32> to vector<64x64xf32>
    %74 = vector.shape_cast %71 : vector<64x64xf32> to vector<1x64x64xf32>
    tpu.vector_store %arg11[%c2_55, %c0_56, %c0_57], %74 {strides = array<i32>} : memref<8x64x64xf32, #tpu.memory_space<vmem>>, vector<1x64x64xf32>,
    %75 = vector.broadcast %66 : vector<64x1xf32> to vector<64x32xf32>
    %76 = vector.broadcast %4 : vector<1x32xf32> to vector<64x32xf32>
    %77 = arith.mulf %75, %76 : vector<64x32xf32>
    %78 = vector.broadcast %5 : vector<1x32xf32> to vector<64x32xf32>
    %79 = arith.addf %77, %78 : vector<64x32xf32>
    %c2_58 = arith.constant 2 : index
    %c0_59 = arith.constant 0 : index
    %c0_60 = arith.constant 0 : index
    %80 = vector.load %arg12[%c2_58, %c0_59, %c0_60] : memref<8x64x32xf32, #tpu.memory_space<vmem>>, vector<1x64x32xf32>
    %81 = vector.shape_cast %80 : vector<1x64x32xf32> to vector<64x32xf32>
    %82 = vector.shape_cast %79 : vector<64x32xf32> to vector<1x64x32xf32>
    tpu.vector_store %arg12[%c2_58, %c0_59, %c0_60], %82 {strides = array<i32>} : memref<8x64x32xf32, #tpu.memory_space<vmem>>, vector<1x64x32xf32>,
    %c0_61 = arith.constant 0 : index
    %c3 = arith.constant 3 : index
    %83 = vector.load %arg10[%c0_61, %c3] : memref<64x8xf32, #tpu.memory_space<vmem>>, vector<64x1xf32>
    %84 = vector.broadcast %83 : vector<64x1xf32> to vector<64x64xf32>
    %85 = vector.broadcast %2 : vector<1x64xf32> to vector<64x64xf32>
    %86 = arith.mulf %84, %85 : vector<64x64xf32>
    %87 = vector.broadcast %3 : vector<1x64xf32> to vector<64x64xf32>
    %88 = arith.addf %86, %87 : vector<64x64xf32>
    %c3_62 = arith.constant 3 : index
    %c0_63 = arith.constant 0 : index
    %c0_64 = arith.constant 0 : index
    %89 = vector.load %arg11[%c3_62, %c0_63, %c0_64] : memref<8x64x64xf32, #tpu.memory_space<vmem>>, vector<1x64x64xf32>
    %90 = vector.shape_cast %89 : vector<1x64x64xf32> to vector<64x64xf32>
    %91 = vector.shape_cast %88 : vector<64x64xf32> to vector<1x64x64xf32>
    tpu.vector_store %arg11[%c3_62, %c0_63, %c0_64], %91 {strides = array<i32>} : memref<8x64x64xf32, #tpu.memory_space<vmem>>, vector<1x64x64xf32>,
    %92 = vector.broadcast %83 : vector<64x1xf32> to vector<64x32xf32>
    %93 = vector.broadcast %4 : vector<1x32xf32> to vector<64x32xf32>
    %94 = arith.mulf %92, %93 : vector<64x32xf32>
    %95 = vector.broadcast %5 : vector<1x32xf32> to vector<64x32xf32>
    %96 = arith.addf %94, %95 : vector<64x32xf32>
    %c3_65 = arith.constant 3 : index
    %c0_66 = arith.constant 0 : index
    %c0_67 = arith.constant 0 : index
    %97 = vector.load %arg12[%c3_65, %c0_66, %c0_67] : memref<8x64x32xf32, #tpu.memory_space<vmem>>, vector<1x64x32xf32>
    %98 = vector.shape_cast %97 : vector<1x64x32xf32> to vector<64x32xf32>
    %99 = vector.shape_cast %96 : vector<64x32xf32> to vector<1x64x32xf32>
    tpu.vector_store %arg12[%c3_65, %c0_66, %c0_67], %99 {strides = array<i32>} : memref<8x64x32xf32, #tpu.memory_space<vmem>>, vector<1x64x32xf32>,
    %c0_68 = arith.constant 0 : index
    %c4 = arith.constant 4 : index
    %100 = vector.load %arg10[%c0_68, %c4] : memref<64x8xf32, #tpu.memory_space<vmem>>, vector<64x1xf32>
    %101 = vector.broadcast %100 : vector<64x1xf32> to vector<64x64xf32>
    %102 = vector.broadcast %2 : vector<1x64xf32> to vector<64x64xf32>
    %103 = arith.mulf %101, %102 : vector<64x64xf32>
    %104 = vector.broadcast %3 : vector<1x64xf32> to vector<64x64xf32>
    %105 = arith.addf %103, %104 : vector<64x64xf32>
    %c4_69 = arith.constant 4 : index
    %c0_70 = arith.constant 0 : index
    %c0_71 = arith.constant 0 : index
    %106 = vector.load %arg11[%c4_69, %c0_70, %c0_71] : memref<8x64x64xf32, #tpu.memory_space<vmem>>, vector<1x64x64xf32>
    %107 = vector.shape_cast %106 : vector<1x64x64xf32> to vector<64x64xf32>
    %108 = vector.shape_cast %105 : vector<64x64xf32> to vector<1x64x64xf32>
    tpu.vector_store %arg11[%c4_69, %c0_70, %c0_71], %108 {strides = array<i32>} : memref<8x64x64xf32, #tpu.memory_space<vmem>>, vector<1x64x64xf32>,
    %109 = vector.broadcast %100 : vector<64x1xf32> to vector<64x32xf32>
    %110 = vector.broadcast %4 : vector<1x32xf32> to vector<64x32xf32>
    %111 = arith.mulf %109, %110 : vector<64x32xf32>
    %112 = vector.broadcast %5 : vector<1x32xf32> to vector<64x32xf32>
    %113 = arith.addf %111, %112 : vector<64x32xf32>
    %c4_72 = arith.constant 4 : index
    %c0_73 = arith.constant 0 : index
    %c0_74 = arith.constant 0 : index
    %114 = vector.load %arg12[%c4_72, %c0_73, %c0_74] : memref<8x64x32xf32, #tpu.memory_space<vmem>>, vector<1x64x32xf32>
    %115 = vector.shape_cast %114 : vector<1x64x32xf32> to vector<64x32xf32>
    %116 = vector.shape_cast %113 : vector<64x32xf32> to vector<1x64x32xf32>
    tpu.vector_store %arg12[%c4_72, %c0_73, %c0_74], %116 {strides = array<i32>} : memref<8x64x32xf32, #tpu.memory_space<vmem>>, vector<1x64x32xf32>,
    %c0_75 = arith.constant 0 : index
    %c5 = arith.constant 5 : index
    %117 = vector.load %arg10[%c0_75, %c5] : memref<64x8xf32, #tpu.memory_space<vmem>>, vector<64x1xf32>
    %118 = vector.broadcast %117 : vector<64x1xf32> to vector<64x64xf32>
    %119 = vector.broadcast %2 : vector<1x64xf32> to vector<64x64xf32>
    %120 = arith.mulf %118, %119 : vector<64x64xf32>
    %121 = vector.broadcast %3 : vector<1x64xf32> to vector<64x64xf32>
    %122 = arith.addf %120, %121 : vector<64x64xf32>
    %c5_76 = arith.constant 5 : index
    %c0_77 = arith.constant 0 : index
    %c0_78 = arith.constant 0 : index
    %123 = vector.load %arg11[%c5_76, %c0_77, %c0_78] : memref<8x64x64xf32, #tpu.memory_space<vmem>>, vector<1x64x64xf32>
    %124 = vector.shape_cast %123 : vector<1x64x64xf32> to vector<64x64xf32>
    %125 = vector.shape_cast %122 : vector<64x64xf32> to vector<1x64x64xf32>
    tpu.vector_store %arg11[%c5_76, %c0_77, %c0_78], %125 {strides = array<i32>} : memref<8x64x64xf32, #tpu.memory_space<vmem>>, vector<1x64x64xf32>,
    %126 = vector.broadcast %117 : vector<64x1xf32> to vector<64x32xf32>
    %127 = vector.broadcast %4 : vector<1x32xf32> to vector<64x32xf32>
    %128 = arith.mulf %126, %127 : vector<64x32xf32>
    %129 = vector.broadcast %5 : vector<1x32xf32> to vector<64x32xf32>
    %130 = arith.addf %128, %129 : vector<64x32xf32>
    %c5_79 = arith.constant 5 : index
    %c0_80 = arith.constant 0 : index
    %c0_81 = arith.constant 0 : index
    %131 = vector.load %arg12[%c5_79, %c0_80, %c0_81] : memref<8x64x32xf32, #tpu.memory_space<vmem>>, vector<1x64x32xf32>
    %132 = vector.shape_cast %131 : vector<1x64x32xf32> to vector<64x32xf32>
    %133 = vector.shape_cast %130 : vector<64x32xf32> to vector<1x64x32xf32>
    tpu.vector_store %arg12[%c5_79, %c0_80, %c0_81], %133 {strides = array<i32>} : memref<8x64x32xf32, #tpu.memory_space<vmem>>, vector<1x64x32xf32>,
    %c0_82 = arith.constant 0 : index
    %c6 = arith.constant 6 : index
    %134 = vector.load %arg10[%c0_82, %c6] : memref<64x8xf32, #tpu.memory_space<vmem>>, vector<64x1xf32>
    %135 = vector.broadcast %134 : vector<64x1xf32> to vector<64x64xf32>
    %136 = vector.broadcast %2 : vector<1x64xf32> to vector<64x64xf32>
    %137 = arith.mulf %135, %136 : vector<64x64xf32>
    %138 = vector.broadcast %3 : vector<1x64xf32> to vector<64x64xf32>
    %139 = arith.addf %137, %138 : vector<64x64xf32>
    %c6_83 = arith.constant 6 : index
    %c0_84 = arith.constant 0 : index
    %c0_85 = arith.constant 0 : index
    %140 = vector.load %arg11[%c6_83, %c0_84, %c0_85] : memref<8x64x64xf32, #tpu.memory_space<vmem>>, vector<1x64x64xf32>
    %141 = vector.shape_cast %140 : vector<1x64x64xf32> to vector<64x64xf32>
    %142 = vector.shape_cast %139 : vector<64x64xf32> to vector<1x64x64xf32>
    tpu.vector_store %arg11[%c6_83, %c0_84, %c0_85], %142 {strides = array<i32>} : memref<8x64x64xf32, #tpu.memory_space<vmem>>, vector<1x64x64xf32>,
    %143 = vector.broadcast %134 : vector<64x1xf32> to vector<64x32xf32>
    %144 = vector.broadcast %4 : vector<1x32xf32> to vector<64x32xf32>
    %145 = arith.mulf %143, %144 : vector<64x32xf32>
    %146 = vector.broadcast %5 : vector<1x32xf32> to vector<64x32xf32>
    %147 = arith.addf %145, %146 : vector<64x32xf32>
    %c6_86 = arith.constant 6 : index
    %c0_87 = arith.constant 0 : index
    %c0_88 = arith.constant 0 : index
    %148 = vector.load %arg12[%c6_86, %c0_87, %c0_88] : memref<8x64x32xf32, #tpu.memory_space<vmem>>, vector<1x64x32xf32>
    %149 = vector.shape_cast %148 : vector<1x64x32xf32> to vector<64x32xf32>
    %150 = vector.shape_cast %147 : vector<64x32xf32> to vector<1x64x32xf32>
    tpu.vector_store %arg12[%c6_86, %c0_87, %c0_88], %150 {strides = array<i32>} : memref<8x64x32xf32, #tpu.memory_space<vmem>>, vector<1x64x32xf32>,
    %c0_89 = arith.constant 0 : index
    %c7 = arith.constant 7 : index
    %151 = vector.load %arg10[%c0_89, %c7] : memref<64x8xf32, #tpu.memory_space<vmem>>, vector<64x1xf32>
    %152 = vector.broadcast %151 : vector<64x1xf32> to vector<64x64xf32>
    %153 = vector.broadcast %2 : vector<1x64xf32> to vector<64x64xf32>
    %154 = arith.mulf %152, %153 : vector<64x64xf32>
    %155 = vector.broadcast %3 : vector<1x64xf32> to vector<64x64xf32>
    %156 = arith.addf %154, %155 : vector<64x64xf32>
    %c7_90 = arith.constant 7 : index
    %c0_91 = arith.constant 0 : index
    %c0_92 = arith.constant 0 : index
    %157 = vector.load %arg11[%c7_90, %c0_91, %c0_92] : memref<8x64x64xf32, #tpu.memory_space<vmem>>, vector<1x64x64xf32>
    %158 = vector.shape_cast %157 : vector<1x64x64xf32> to vector<64x64xf32>
    %159 = vector.shape_cast %156 : vector<64x64xf32> to vector<1x64x64xf32>
    tpu.vector_store %arg11[%c7_90, %c0_91, %c0_92], %159 {strides = array<i32>} : memref<8x64x64xf32, #tpu.memory_space<vmem>>, vector<1x64x64xf32>,
    %160 = vector.broadcast %151 : vector<64x1xf32> to vector<64x32xf32>
    %161 = vector.broadcast %4 : vector<1x32xf32> to vector<64x32xf32>
    %162 = arith.mulf %160, %161 : vector<64x32xf32>
    %163 = vector.broadcast %5 : vector<1x32xf32> to vector<64x32xf32>
    %164 = arith.addf %162, %163 : vector<64x32xf32>
    %c7_93 = arith.constant 7 : index
    %c0_94 = arith.constant 0 : index
    %c0_95 = arith.constant 0 : index
    %165 = vector.load %arg12[%c7_93, %c0_94, %c0_95] : memref<8x64x32xf32, #tpu.memory_space<vmem>>, vector<1x64x32xf32>
    %166 = vector.shape_cast %165 : vector<1x64x32xf32> to vector<64x32xf32>
    %167 = vector.shape_cast %164 : vector<64x32xf32> to vector<1x64x32xf32>
    tpu.vector_store %arg12[%c7_93, %c0_94, %c0_95], %167 {strides = array<i32>} : memref<8x64x32xf32, #tpu.memory_space<vmem>>, vector<1x64x32xf32>,
    %cst_96 = arith.constant 0.000000e+00 : f32
    %168 = vector.broadcast %cst_96 : f32 to vector<64x32xf32>
    %c0_97 = arith.constant 0 : index
    %c0_98 = arith.constant 0 : index
    %c0_99 = arith.constant 0 : index
    %169 = vector.load %arg11[%c0_97, %c0_98, %c0_99] : memref<8x64x64xf32, #tpu.memory_space<vmem>>, vector<1x64x64xf32>
    %170 = vector.shape_cast %169 : vector<1x64x64xf32> to vector<64x64xf32>
    %cst_100 = arith.constant dense<0.000000e+00> : vector<64x64xf32>
    %171 = tpu.matmul %168, %6, %cst_100 {dimension_numbers = #tpu.dot_dimension_numbers<[1], [0], [0], [1], [0, 0, 1, 1], [], []>} : vector<64x32xf32>, vector<32x64xf32>, vector<64x64xf32> -> vector<64x64xf32>
    %172 = arith.addf %170, %171 : vector<64x64xf32>
    %173 = arith.negf %172 : vector<64x64xf32>
    %174 = math.exp %173 : vector<64x64xf32>
    %cst_101 = arith.constant 1.000000e+00 : f32
    %175 = vector.broadcast %cst_101 : f32 to vector<64x64xf32>
    %176 = arith.addf %175, %174 : vector<64x64xf32>
    %177 = arith.divf %175, %176 : vector<64x64xf32>
    %178 = vector.extract_strided_slice %177 {offsets = [0, 0], sizes = [64, 32], strides = [1, 1]} : vector<64x64xf32> to vector<64x32xf32>
    %179 = vector.extract_strided_slice %177 {offsets = [0, 32], sizes = [64, 32], strides = [1, 1]} : vector<64x64xf32> to vector<64x32xf32>
    %c0_102 = arith.constant 0 : index
    %c0_103 = arith.constant 0 : index
    %c0_104 = arith.constant 0 : index
    %180 = vector.load %arg12[%c0_102, %c0_103, %c0_104] : memref<8x64x32xf32, #tpu.memory_space<vmem>>, vector<1x64x32xf32>
    %181 = vector.shape_cast %180 : vector<1x64x32xf32> to vector<64x32xf32>
    %182 = arith.mulf %178, %168 : vector<64x32xf32>
    %cst_105 = arith.constant dense<0.000000e+00> : vector<64x32xf32>
    %183 = tpu.matmul %182, %7, %cst_105 {dimension_numbers = #tpu.dot_dimension_numbers<[1], [0], [0], [1], [0, 0, 1, 1], [], []>} : vector<64x32xf32>, vector<32x32xf32>, vector<64x32xf32> -> vector<64x32xf32>
    %184 = arith.addf %181, %183 : vector<64x32xf32>
    %185 = math.tanh %184 : vector<64x32xf32>
    %186 = arith.mulf %179, %168 : vector<64x32xf32>
    %cst_106 = arith.constant 1.000000e+00 : f32
    %187 = vector.broadcast %cst_106 : f32 to vector<64x32xf32>
    %188 = arith.subf %187, %179 : vector<64x32xf32>
    %189 = arith.mulf %188, %185 : vector<64x32xf32>
    %190 = arith.addf %186, %189 : vector<64x32xf32>
    %cst_107 = arith.constant -1.000000e+04 : f32
    %cst_108 = arith.constant 1.000000e+04 : f32
    %191 = vector.broadcast %cst_107 : f32 to vector<64x32xf32>
    %192 = arith.maximumf %191, %190 : vector<64x32xf32>
    %193 = vector.broadcast %cst_108 : f32 to vector<64x32xf32>
    %194 = arith.minimumf %193, %192 : vector<64x32xf32>
    %195 = vector.extract_strided_slice %194 {offsets = [0, 0], sizes = [32, 32], strides = [1, 1]} : vector<64x32xf32> to vector<32x32xf32>
    %c0_109 = arith.constant 0 : index
    %c0_110 = arith.constant 0 : index
    %c0_111 = arith.constant 0 : index
    %196 = vector.load %arg8[%c0_109, %c0_110, %c0_111] : memref<8x32x32xf32, #tpu.memory_space<vmem>>, vector<1x32x32xf32>
    %197 = vector.shape_cast %196 : vector<1x32x32xf32> to vector<32x32xf32>
    %198 = vector.shape_cast %195 : vector<32x32xf32> to vector<1x32x32xf32>
    tpu.vector_store %arg8[%c0_109, %c0_110, %c0_111], %198 {strides = array<i32>} : memref<8x32x32xf32, #tpu.memory_space<vmem>>, vector<1x32x32xf32>,
    %199 = vector.extract_strided_slice %194 {offsets = [32, 0], sizes = [32, 32], strides = [1, 1]} : vector<64x32xf32> to vector<32x32xf32>
    %c7_112 = arith.constant 7 : index
    %c0_113 = arith.constant 0 : index
    %c0_114 = arith.constant 0 : index
    %200 = vector.load %arg9[%c7_112, %c0_113, %c0_114] : memref<8x32x32xf32, #tpu.memory_space<vmem>>, vector<1x32x32xf32>
    %201 = vector.shape_cast %200 : vector<1x32x32xf32> to vector<32x32xf32>
    %202 = vector.shape_cast %199 : vector<32x32xf32> to vector<1x32x32xf32>
    tpu.vector_store %arg9[%c7_112, %c0_113, %c0_114], %202 {strides = array<i32>} : memref<8x32x32xf32, #tpu.memory_space<vmem>>, vector<1x32x32xf32>,
    %c1_115 = arith.constant 1 : index
    %c0_116 = arith.constant 0 : index
    %c0_117 = arith.constant 0 : index
    %203 = vector.load %arg11[%c1_115, %c0_116, %c0_117] : memref<8x64x64xf32, #tpu.memory_space<vmem>>, vector<1x64x64xf32>
    %204 = vector.shape_cast %203 : vector<1x64x64xf32> to vector<64x64xf32>
    %cst_118 = arith.constant dense<0.000000e+00> : vector<64x64xf32>
    %205 = tpu.matmul %194, %6, %cst_118 {dimension_numbers = #tpu.dot_dimension_numbers<[1], [0], [0], [1], [0, 0, 1, 1], [], []>} : vector<64x32xf32>, vector<32x64xf32>, vector<64x64xf32> -> vector<64x64xf32>
    %206 = arith.addf %204, %205 : vector<64x64xf32>
    %207 = arith.negf %206 : vector<64x64xf32>
    %208 = math.exp %207 : vector<64x64xf32>
    %cst_119 = arith.constant 1.000000e+00 : f32
    %209 = vector.broadcast %cst_119 : f32 to vector<64x64xf32>
    %210 = arith.addf %209, %208 : vector<64x64xf32>
    %211 = arith.divf %209, %210 : vector<64x64xf32>
    %212 = vector.extract_strided_slice %211 {offsets = [0, 0], sizes = [64, 32], strides = [1, 1]} : vector<64x64xf32> to vector<64x32xf32>
    %213 = vector.extract_strided_slice %211 {offsets = [0, 32], sizes = [64, 32], strides = [1, 1]} : vector<64x64xf32> to vector<64x32xf32>
    %c1_120 = arith.constant 1 : index
    %c0_121 = arith.constant 0 : index
    %c0_122 = arith.constant 0 : index
    %214 = vector.load %arg12[%c1_120, %c0_121, %c0_122] : memref<8x64x32xf32, #tpu.memory_space<vmem>>, vector<1x64x32xf32>
    %215 = vector.shape_cast %214 : vector<1x64x32xf32> to vector<64x32xf32>
    %216 = arith.mulf %212, %194 : vector<64x32xf32>
    %cst_123 = arith.constant dense<0.000000e+00> : vector<64x32xf32>
    %217 = tpu.matmul %216, %7, %cst_123 {dimension_numbers = #tpu.dot_dimension_numbers<[1], [0], [0], [1], [0, 0, 1, 1], [], []>} : vector<64x32xf32>, vector<32x32xf32>, vector<64x32xf32> -> vector<64x32xf32>
    %218 = arith.addf %215, %217 : vector<64x32xf32>
    %219 = math.tanh %218 : vector<64x32xf32>
    %220 = arith.mulf %213, %194 : vector<64x32xf32>
    %cst_124 = arith.constant 1.000000e+00 : f32
    %221 = vector.broadcast %cst_124 : f32 to vector<64x32xf32>
    %222 = arith.subf %221, %213 : vector<64x32xf32>
    %223 = arith.mulf %222, %219 : vector<64x32xf32>
    %224 = arith.addf %220, %223 : vector<64x32xf32>
    %cst_125 = arith.constant -1.000000e+04 : f32
    %cst_126 = arith.constant 1.000000e+04 : f32
    %225 = vector.broadcast %cst_125 : f32 to vector<64x32xf32>
    %226 = arith.maximumf %225, %224 : vector<64x32xf32>
    %227 = vector.broadcast %cst_126 : f32 to vector<64x32xf32>
    %228 = arith.minimumf %227, %226 : vector<64x32xf32>
    %229 = vector.extract_strided_slice %228 {offsets = [0, 0], sizes = [32, 32], strides = [1, 1]} : vector<64x32xf32> to vector<32x32xf32>
    %c1_127 = arith.constant 1 : index
    %c0_128 = arith.constant 0 : index
    %c0_129 = arith.constant 0 : index
    %230 = vector.load %arg8[%c1_127, %c0_128, %c0_129] : memref<8x32x32xf32, #tpu.memory_space<vmem>>, vector<1x32x32xf32>
    %231 = vector.shape_cast %230 : vector<1x32x32xf32> to vector<32x32xf32>
    %232 = vector.shape_cast %229 : vector<32x32xf32> to vector<1x32x32xf32>
    tpu.vector_store %arg8[%c1_127, %c0_128, %c0_129], %232 {strides = array<i32>} : memref<8x32x32xf32, #tpu.memory_space<vmem>>, vector<1x32x32xf32>,
    %233 = vector.extract_strided_slice %228 {offsets = [32, 0], sizes = [32, 32], strides = [1, 1]} : vector<64x32xf32> to vector<32x32xf32>
    %c6_130 = arith.constant 6 : index
    %c0_131 = arith.constant 0 : index
    %c0_132 = arith.constant 0 : index
    %234 = vector.load %arg9[%c6_130, %c0_131, %c0_132] : memref<8x32x32xf32, #tpu.memory_space<vmem>>, vector<1x32x32xf32>
    %235 = vector.shape_cast %234 : vector<1x32x32xf32> to vector<32x32xf32>
    %236 = vector.shape_cast %233 : vector<32x32xf32> to vector<1x32x32xf32>
    tpu.vector_store %arg9[%c6_130, %c0_131, %c0_132], %236 {strides = array<i32>} : memref<8x32x32xf32, #tpu.memory_space<vmem>>, vector<1x32x32xf32>,
    %c2_133 = arith.constant 2 : index
    %c0_134 = arith.constant 0 : index
    %c0_135 = arith.constant 0 : index
    %237 = vector.load %arg11[%c2_133, %c0_134, %c0_135] : memref<8x64x64xf32, #tpu.memory_space<vmem>>, vector<1x64x64xf32>
    %238 = vector.shape_cast %237 : vector<1x64x64xf32> to vector<64x64xf32>
    %cst_136 = arith.constant dense<0.000000e+00> : vector<64x64xf32>
    %239 = tpu.matmul %228, %6, %cst_136 {dimension_numbers = #tpu.dot_dimension_numbers<[1], [0], [0], [1], [0, 0, 1, 1], [], []>} : vector<64x32xf32>, vector<32x64xf32>, vector<64x64xf32> -> vector<64x64xf32>
    %240 = arith.addf %238, %239 : vector<64x64xf32>
    %241 = arith.negf %240 : vector<64x64xf32>
    %242 = math.exp %241 : vector<64x64xf32>
    %cst_137 = arith.constant 1.000000e+00 : f32
    %243 = vector.broadcast %cst_137 : f32 to vector<64x64xf32>
    %244 = arith.addf %243, %242 : vector<64x64xf32>
    %245 = arith.divf %243, %244 : vector<64x64xf32>
    %246 = vector.extract_strided_slice %245 {offsets = [0, 0], sizes = [64, 32], strides = [1, 1]} : vector<64x64xf32> to vector<64x32xf32>
    %247 = vector.extract_strided_slice %245 {offsets = [0, 32], sizes = [64, 32], strides = [1, 1]} : vector<64x64xf32> to vector<64x32xf32>
    %c2_138 = arith.constant 2 : index
    %c0_139 = arith.constant 0 : index
    %c0_140 = arith.constant 0 : index
    %248 = vector.load %arg12[%c2_138, %c0_139, %c0_140] : memref<8x64x32xf32, #tpu.memory_space<vmem>>, vector<1x64x32xf32>
    %249 = vector.shape_cast %248 : vector<1x64x32xf32> to vector<64x32xf32>
    %250 = arith.mulf %246, %228 : vector<64x32xf32>
    %cst_141 = arith.constant dense<0.000000e+00> : vector<64x32xf32>
    %251 = tpu.matmul %250, %7, %cst_141 {dimension_numbers = #tpu.dot_dimension_numbers<[1], [0], [0], [1], [0, 0, 1, 1], [], []>} : vector<64x32xf32>, vector<32x32xf32>, vector<64x32xf32> -> vector<64x32xf32>
    %252 = arith.addf %249, %251 : vector<64x32xf32>
    %253 = math.tanh %252 : vector<64x32xf32>
    %254 = arith.mulf %247, %228 : vector<64x32xf32>
    %cst_142 = arith.constant 1.000000e+00 : f32
    %255 = vector.broadcast %cst_142 : f32 to vector<64x32xf32>
    %256 = arith.subf %255, %247 : vector<64x32xf32>
    %257 = arith.mulf %256, %253 : vector<64x32xf32>
    %258 = arith.addf %254, %257 : vector<64x32xf32>
    %cst_143 = arith.constant -1.000000e+04 : f32
    %cst_144 = arith.constant 1.000000e+04 : f32
    %259 = vector.broadcast %cst_143 : f32 to vector<64x32xf32>
    %260 = arith.maximumf %259, %258 : vector<64x32xf32>
    %261 = vector.broadcast %cst_144 : f32 to vector<64x32xf32>
    %262 = arith.minimumf %261, %260 : vector<64x32xf32>
    %263 = vector.extract_strided_slice %262 {offsets = [0, 0], sizes = [32, 32], strides = [1, 1]} : vector<64x32xf32> to vector<32x32xf32>
    %c2_145 = arith.constant 2 : index
    %c0_146 = arith.constant 0 : index
    %c0_147 = arith.constant 0 : index
    %264 = vector.load %arg8[%c2_145, %c0_146, %c0_147] : memref<8x32x32xf32, #tpu.memory_space<vmem>>, vector<1x32x32xf32>
    %265 = vector.shape_cast %264 : vector<1x32x32xf32> to vector<32x32xf32>
    %266 = vector.shape_cast %263 : vector<32x32xf32> to vector<1x32x32xf32>
    tpu.vector_store %arg8[%c2_145, %c0_146, %c0_147], %266 {strides = array<i32>} : memref<8x32x32xf32, #tpu.memory_space<vmem>>, vector<1x32x32xf32>,
    %267 = vector.extract_strided_slice %262 {offsets = [32, 0], sizes = [32, 32], strides = [1, 1]} : vector<64x32xf32> to vector<32x32xf32>
    %c5_148 = arith.constant 5 : index
    %c0_149 = arith.constant 0 : index
    %c0_150 = arith.constant 0 : index
    %268 = vector.load %arg9[%c5_148, %c0_149, %c0_150] : memref<8x32x32xf32, #tpu.memory_space<vmem>>, vector<1x32x32xf32>
    %269 = vector.shape_cast %268 : vector<1x32x32xf32> to vector<32x32xf32>
    %270 = vector.shape_cast %267 : vector<32x32xf32> to vector<1x32x32xf32>
    tpu.vector_store %arg9[%c5_148, %c0_149, %c0_150], %270 {strides = array<i32>} : memref<8x32x32xf32, #tpu.memory_space<vmem>>, vector<1x32x32xf32>,
    %c3_151 = arith.constant 3 : index
    %c0_152 = arith.constant 0 : index
    %c0_153 = arith.constant 0 : index
    %271 = vector.load %arg11[%c3_151, %c0_152, %c0_153] : memref<8x64x64xf32, #tpu.memory_space<vmem>>, vector<1x64x64xf32>
    %272 = vector.shape_cast %271 : vector<1x64x64xf32> to vector<64x64xf32>
    %cst_154 = arith.constant dense<0.000000e+00> : vector<64x64xf32>
    %273 = tpu.matmul %262, %6, %cst_154 {dimension_numbers = #tpu.dot_dimension_numbers<[1], [0], [0], [1], [0, 0, 1, 1], [], []>} : vector<64x32xf32>, vector<32x64xf32>, vector<64x64xf32> -> vector<64x64xf32>
    %274 = arith.addf %272, %273 : vector<64x64xf32>
    %275 = arith.negf %274 : vector<64x64xf32>
    %276 = math.exp %275 : vector<64x64xf32>
    %cst_155 = arith.constant 1.000000e+00 : f32
    %277 = vector.broadcast %cst_155 : f32 to vector<64x64xf32>
    %278 = arith.addf %277, %276 : vector<64x64xf32>
    %279 = arith.divf %277, %278 : vector<64x64xf32>
    %280 = vector.extract_strided_slice %279 {offsets = [0, 0], sizes = [64, 32], strides = [1, 1]} : vector<64x64xf32> to vector<64x32xf32>
    %281 = vector.extract_strided_slice %279 {offsets = [0, 32], sizes = [64, 32], strides = [1, 1]} : vector<64x64xf32> to vector<64x32xf32>
    %c3_156 = arith.constant 3 : index
    %c0_157 = arith.constant 0 : index
    %c0_158 = arith.constant 0 : index
    %282 = vector.load %arg12[%c3_156, %c0_157, %c0_158] : memref<8x64x32xf32, #tpu.memory_space<vmem>>, vector<1x64x32xf32>
    %283 = vector.shape_cast %282 : vector<1x64x32xf32> to vector<64x32xf32>
    %284 = arith.mulf %280, %262 : vector<64x32xf32>
    %cst_159 = arith.constant dense<0.000000e+00> : vector<64x32xf32>
    %285 = tpu.matmul %284, %7, %cst_159 {dimension_numbers = #tpu.dot_dimension_numbers<[1], [0], [0], [1], [0, 0, 1, 1], [], []>} : vector<64x32xf32>, vector<32x32xf32>, vector<64x32xf32> -> vector<64x32xf32>
    %286 = arith.addf %283, %285 : vector<64x32xf32>
    %287 = math.tanh %286 : vector<64x32xf32>
    %288 = arith.mulf %281, %262 : vector<64x32xf32>
    %cst_160 = arith.constant 1.000000e+00 : f32
    %289 = vector.broadcast %cst_160 : f32 to vector<64x32xf32>
    %290 = arith.subf %289, %281 : vector<64x32xf32>
    %291 = arith.mulf %290, %287 : vector<64x32xf32>
    %292 = arith.addf %288, %291 : vector<64x32xf32>
    %cst_161 = arith.constant -1.000000e+04 : f32
    %cst_162 = arith.constant 1.000000e+04 : f32
    %293 = vector.broadcast %cst_161 : f32 to vector<64x32xf32>
    %294 = arith.maximumf %293, %292 : vector<64x32xf32>
    %295 = vector.broadcast %cst_162 : f32 to vector<64x32xf32>
    %296 = arith.minimumf %295, %294 : vector<64x32xf32>
    %297 = vector.extract_strided_slice %296 {offsets = [0, 0], sizes = [32, 32], strides = [1, 1]} : vector<64x32xf32> to vector<32x32xf32>
    %c3_163 = arith.constant 3 : index
    %c0_164 = arith.constant 0 : index
    %c0_165 = arith.constant 0 : index
    %298 = vector.load %arg8[%c3_163, %c0_164, %c0_165] : memref<8x32x32xf32, #tpu.memory_space<vmem>>, vector<1x32x32xf32>
    %299 = vector.shape_cast %298 : vector<1x32x32xf32> to vector<32x32xf32>
    %300 = vector.shape_cast %297 : vector<32x32xf32> to vector<1x32x32xf32>
    tpu.vector_store %arg8[%c3_163, %c0_164, %c0_165], %300 {strides = array<i32>} : memref<8x32x32xf32, #tpu.memory_space<vmem>>, vector<1x32x32xf32>,
    %301 = vector.extract_strided_slice %296 {offsets = [32, 0], sizes = [32, 32], strides = [1, 1]} : vector<64x32xf32> to vector<32x32xf32>
    %c4_166 = arith.constant 4 : index
    %c0_167 = arith.constant 0 : index
    %c0_168 = arith.constant 0 : index
    %302 = vector.load %arg9[%c4_166, %c0_167, %c0_168] : memref<8x32x32xf32, #tpu.memory_space<vmem>>, vector<1x32x32xf32>
    %303 = vector.shape_cast %302 : vector<1x32x32xf32> to vector<32x32xf32>
    %304 = vector.shape_cast %301 : vector<32x32xf32> to vector<1x32x32xf32>
    tpu.vector_store %arg9[%c4_166, %c0_167, %c0_168], %304 {strides = array<i32>} : memref<8x32x32xf32, #tpu.memory_space<vmem>>, vector<1x32x32xf32>,
    %c4_169 = arith.constant 4 : index
    %c0_170 = arith.constant 0 : index
    %c0_171 = arith.constant 0 : index
    %305 = vector.load %arg11[%c4_169, %c0_170, %c0_171] : memref<8x64x64xf32, #tpu.memory_space<vmem>>, vector<1x64x64xf32>
    %306 = vector.shape_cast %305 : vector<1x64x64xf32> to vector<64x64xf32>
    %cst_172 = arith.constant dense<0.000000e+00> : vector<64x64xf32>
    %307 = tpu.matmul %296, %6, %cst_172 {dimension_numbers = #tpu.dot_dimension_numbers<[1], [0], [0], [1], [0, 0, 1, 1], [], []>} : vector<64x32xf32>, vector<32x64xf32>, vector<64x64xf32> -> vector<64x64xf32>
    %308 = arith.addf %306, %307 : vector<64x64xf32>
    %309 = arith.negf %308 : vector<64x64xf32>
    %310 = math.exp %309 : vector<64x64xf32>
    %cst_173 = arith.constant 1.000000e+00 : f32
    %311 = vector.broadcast %cst_173 : f32 to vector<64x64xf32>
    %312 = arith.addf %311, %310 : vector<64x64xf32>
    %313 = arith.divf %311, %312 : vector<64x64xf32>
    %314 = vector.extract_strided_slice %313 {offsets = [0, 0], sizes = [64, 32], strides = [1, 1]} : vector<64x64xf32> to vector<64x32xf32>
    %315 = vector.extract_strided_slice %313 {offsets = [0, 32], sizes = [64, 32], strides = [1, 1]} : vector<64x64xf32> to vector<64x32xf32>
    %c4_174 = arith.constant 4 : index
    %c0_175 = arith.constant 0 : index
    %c0_176 = arith.constant 0 : index
    %316 = vector.load %arg12[%c4_174, %c0_175, %c0_176] : memref<8x64x32xf32, #tpu.memory_space<vmem>>, vector<1x64x32xf32>
    %317 = vector.shape_cast %316 : vector<1x64x32xf32> to vector<64x32xf32>
    %318 = arith.mulf %314, %296 : vector<64x32xf32>
    %cst_177 = arith.constant dense<0.000000e+00> : vector<64x32xf32>
    %319 = tpu.matmul %318, %7, %cst_177 {dimension_numbers = #tpu.dot_dimension_numbers<[1], [0], [0], [1], [0, 0, 1, 1], [], []>} : vector<64x32xf32>, vector<32x32xf32>, vector<64x32xf32> -> vector<64x32xf32>
    %320 = arith.addf %317, %319 : vector<64x32xf32>
    %321 = math.tanh %320 : vector<64x32xf32>
    %322 = arith.mulf %315, %296 : vector<64x32xf32>
    %cst_178 = arith.constant 1.000000e+00 : f32
    %323 = vector.broadcast %cst_178 : f32 to vector<64x32xf32>
    %324 = arith.subf %323, %315 : vector<64x32xf32>
    %325 = arith.mulf %324, %321 : vector<64x32xf32>
    %326 = arith.addf %322, %325 : vector<64x32xf32>
    %cst_179 = arith.constant -1.000000e+04 : f32
    %cst_180 = arith.constant 1.000000e+04 : f32
    %327 = vector.broadcast %cst_179 : f32 to vector<64x32xf32>
    %328 = arith.maximumf %327, %326 : vector<64x32xf32>
    %329 = vector.broadcast %cst_180 : f32 to vector<64x32xf32>
    %330 = arith.minimumf %329, %328 : vector<64x32xf32>
    %331 = vector.extract_strided_slice %330 {offsets = [0, 0], sizes = [32, 32], strides = [1, 1]} : vector<64x32xf32> to vector<32x32xf32>
    %c4_181 = arith.constant 4 : index
    %c0_182 = arith.constant 0 : index
    %c0_183 = arith.constant 0 : index
    %332 = vector.load %arg8[%c4_181, %c0_182, %c0_183] : memref<8x32x32xf32, #tpu.memory_space<vmem>>, vector<1x32x32xf32>
    %333 = vector.shape_cast %332 : vector<1x32x32xf32> to vector<32x32xf32>
    %334 = vector.shape_cast %331 : vector<32x32xf32> to vector<1x32x32xf32>
    tpu.vector_store %arg8[%c4_181, %c0_182, %c0_183], %334 {strides = array<i32>} : memref<8x32x32xf32, #tpu.memory_space<vmem>>, vector<1x32x32xf32>,
    %335 = vector.extract_strided_slice %330 {offsets = [32, 0], sizes = [32, 32], strides = [1, 1]} : vector<64x32xf32> to vector<32x32xf32>
    %c3_184 = arith.constant 3 : index
    %c0_185 = arith.constant 0 : index
    %c0_186 = arith.constant 0 : index
    %336 = vector.load %arg9[%c3_184, %c0_185, %c0_186] : memref<8x32x32xf32, #tpu.memory_space<vmem>>, vector<1x32x32xf32>
    %337 = vector.shape_cast %336 : vector<1x32x32xf32> to vector<32x32xf32>
    %338 = vector.shape_cast %335 : vector<32x32xf32> to vector<1x32x32xf32>
    tpu.vector_store %arg9[%c3_184, %c0_185, %c0_186], %338 {strides = array<i32>} : memref<8x32x32xf32, #tpu.memory_space<vmem>>, vector<1x32x32xf32>,
    %c5_187 = arith.constant 5 : index
    %c0_188 = arith.constant 0 : index
    %c0_189 = arith.constant 0 : index
    %339 = vector.load %arg11[%c5_187, %c0_188, %c0_189] : memref<8x64x64xf32, #tpu.memory_space<vmem>>, vector<1x64x64xf32>
    %340 = vector.shape_cast %339 : vector<1x64x64xf32> to vector<64x64xf32>
    %cst_190 = arith.constant dense<0.000000e+00> : vector<64x64xf32>
    %341 = tpu.matmul %330, %6, %cst_190 {dimension_numbers = #tpu.dot_dimension_numbers<[1], [0], [0], [1], [0, 0, 1, 1], [], []>} : vector<64x32xf32>, vector<32x64xf32>, vector<64x64xf32> -> vector<64x64xf32>
    %342 = arith.addf %340, %341 : vector<64x64xf32>
    %343 = arith.negf %342 : vector<64x64xf32>
    %344 = math.exp %343 : vector<64x64xf32>
    %cst_191 = arith.constant 1.000000e+00 : f32
    %345 = vector.broadcast %cst_191 : f32 to vector<64x64xf32>
    %346 = arith.addf %345, %344 : vector<64x64xf32>
    %347 = arith.divf %345, %346 : vector<64x64xf32>
    %348 = vector.extract_strided_slice %347 {offsets = [0, 0], sizes = [64, 32], strides = [1, 1]} : vector<64x64xf32> to vector<64x32xf32>
    %349 = vector.extract_strided_slice %347 {offsets = [0, 32], sizes = [64, 32], strides = [1, 1]} : vector<64x64xf32> to vector<64x32xf32>
    %c5_192 = arith.constant 5 : index
    %c0_193 = arith.constant 0 : index
    %c0_194 = arith.constant 0 : index
    %350 = vector.load %arg12[%c5_192, %c0_193, %c0_194] : memref<8x64x32xf32, #tpu.memory_space<vmem>>, vector<1x64x32xf32>
    %351 = vector.shape_cast %350 : vector<1x64x32xf32> to vector<64x32xf32>
    %352 = arith.mulf %348, %330 : vector<64x32xf32>
    %cst_195 = arith.constant dense<0.000000e+00> : vector<64x32xf32>
    %353 = tpu.matmul %352, %7, %cst_195 {dimension_numbers = #tpu.dot_dimension_numbers<[1], [0], [0], [1], [0, 0, 1, 1], [], []>} : vector<64x32xf32>, vector<32x32xf32>, vector<64x32xf32> -> vector<64x32xf32>
    %354 = arith.addf %351, %353 : vector<64x32xf32>
    %355 = math.tanh %354 : vector<64x32xf32>
    %356 = arith.mulf %349, %330 : vector<64x32xf32>
    %cst_196 = arith.constant 1.000000e+00 : f32
    %357 = vector.broadcast %cst_196 : f32 to vector<64x32xf32>
    %358 = arith.subf %357, %349 : vector<64x32xf32>
    %359 = arith.mulf %358, %355 : vector<64x32xf32>
    %360 = arith.addf %356, %359 : vector<64x32xf32>
    %cst_197 = arith.constant -1.000000e+04 : f32
    %cst_198 = arith.constant 1.000000e+04 : f32
    %361 = vector.broadcast %cst_197 : f32 to vector<64x32xf32>
    %362 = arith.maximumf %361, %360 : vector<64x32xf32>
    %363 = vector.broadcast %cst_198 : f32 to vector<64x32xf32>
    %364 = arith.minimumf %363, %362 : vector<64x32xf32>
    %365 = vector.extract_strided_slice %364 {offsets = [0, 0], sizes = [32, 32], strides = [1, 1]} : vector<64x32xf32> to vector<32x32xf32>
    %c5_199 = arith.constant 5 : index
    %c0_200 = arith.constant 0 : index
    %c0_201 = arith.constant 0 : index
    %366 = vector.load %arg8[%c5_199, %c0_200, %c0_201] : memref<8x32x32xf32, #tpu.memory_space<vmem>>, vector<1x32x32xf32>
    %367 = vector.shape_cast %366 : vector<1x32x32xf32> to vector<32x32xf32>
    %368 = vector.shape_cast %365 : vector<32x32xf32> to vector<1x32x32xf32>
    tpu.vector_store %arg8[%c5_199, %c0_200, %c0_201], %368 {strides = array<i32>} : memref<8x32x32xf32, #tpu.memory_space<vmem>>, vector<1x32x32xf32>,
    %369 = vector.extract_strided_slice %364 {offsets = [32, 0], sizes = [32, 32], strides = [1, 1]} : vector<64x32xf32> to vector<32x32xf32>
    %c2_202 = arith.constant 2 : index
    %c0_203 = arith.constant 0 : index
    %c0_204 = arith.constant 0 : index
    %370 = vector.load %arg9[%c2_202, %c0_203, %c0_204] : memref<8x32x32xf32, #tpu.memory_space<vmem>>, vector<1x32x32xf32>
    %371 = vector.shape_cast %370 : vector<1x32x32xf32> to vector<32x32xf32>
    %372 = vector.shape_cast %369 : vector<32x32xf32> to vector<1x32x32xf32>
    tpu.vector_store %arg9[%c2_202, %c0_203, %c0_204], %372 {strides = array<i32>} : memref<8x32x32xf32, #tpu.memory_space<vmem>>, vector<1x32x32xf32>,
    %c6_205 = arith.constant 6 : index
    %c0_206 = arith.constant 0 : index
    %c0_207 = arith.constant 0 : index
    %373 = vector.load %arg11[%c6_205, %c0_206, %c0_207] : memref<8x64x64xf32, #tpu.memory_space<vmem>>, vector<1x64x64xf32>
    %374 = vector.shape_cast %373 : vector<1x64x64xf32> to vector<64x64xf32>
    %cst_208 = arith.constant dense<0.000000e+00> : vector<64x64xf32>
    %375 = tpu.matmul %364, %6, %cst_208 {dimension_numbers = #tpu.dot_dimension_numbers<[1], [0], [0], [1], [0, 0, 1, 1], [], []>} : vector<64x32xf32>, vector<32x64xf32>, vector<64x64xf32> -> vector<64x64xf32>
    %376 = arith.addf %374, %375 : vector<64x64xf32>
    %377 = arith.negf %376 : vector<64x64xf32>
    %378 = math.exp %377 : vector<64x64xf32>
    %cst_209 = arith.constant 1.000000e+00 : f32
    %379 = vector.broadcast %cst_209 : f32 to vector<64x64xf32>
    %380 = arith.addf %379, %378 : vector<64x64xf32>
    %381 = arith.divf %379, %380 : vector<64x64xf32>
    %382 = vector.extract_strided_slice %381 {offsets = [0, 0], sizes = [64, 32], strides = [1, 1]} : vector<64x64xf32> to vector<64x32xf32>
    %383 = vector.extract_strided_slice %381 {offsets = [0, 32], sizes = [64, 32], strides = [1, 1]} : vector<64x64xf32> to vector<64x32xf32>
    %c6_210 = arith.constant 6 : index
    %c0_211 = arith.constant 0 : index
    %c0_212 = arith.constant 0 : index
    %384 = vector.load %arg12[%c6_210, %c0_211, %c0_212] : memref<8x64x32xf32, #tpu.memory_space<vmem>>, vector<1x64x32xf32>
    %385 = vector.shape_cast %384 : vector<1x64x32xf32> to vector<64x32xf32>
    %386 = arith.mulf %382, %364 : vector<64x32xf32>
    %cst_213 = arith.constant dense<0.000000e+00> : vector<64x32xf32>
    %387 = tpu.matmul %386, %7, %cst_213 {dimension_numbers = #tpu.dot_dimension_numbers<[1], [0], [0], [1], [0, 0, 1, 1], [], []>} : vector<64x32xf32>, vector<32x32xf32>, vector<64x32xf32> -> vector<64x32xf32>
    %388 = arith.addf %385, %387 : vector<64x32xf32>
    %389 = math.tanh %388 : vector<64x32xf32>
    %390 = arith.mulf %383, %364 : vector<64x32xf32>
    %cst_214 = arith.constant 1.000000e+00 : f32
    %391 = vector.broadcast %cst_214 : f32 to vector<64x32xf32>
    %392 = arith.subf %391, %383 : vector<64x32xf32>
    %393 = arith.mulf %392, %389 : vector<64x32xf32>
    %394 = arith.addf %390, %393 : vector<64x32xf32>
    %cst_215 = arith.constant -1.000000e+04 : f32
    %cst_216 = arith.constant 1.000000e+04 : f32
    %395 = vector.broadcast %cst_215 : f32 to vector<64x32xf32>
    %396 = arith.maximumf %395, %394 : vector<64x32xf32>
    %397 = vector.broadcast %cst_216 : f32 to vector<64x32xf32>
    %398 = arith.minimumf %397, %396 : vector<64x32xf32>
    %399 = vector.extract_strided_slice %398 {offsets = [0, 0], sizes = [32, 32], strides = [1, 1]} : vector<64x32xf32> to vector<32x32xf32>
    %c6_217 = arith.constant 6 : index
    %c0_218 = arith.constant 0 : index
    %c0_219 = arith.constant 0 : index
    %400 = vector.load %arg8[%c6_217, %c0_218, %c0_219] : memref<8x32x32xf32, #tpu.memory_space<vmem>>, vector<1x32x32xf32>
    %401 = vector.shape_cast %400 : vector<1x32x32xf32> to vector<32x32xf32>
    %402 = vector.shape_cast %399 : vector<32x32xf32> to vector<1x32x32xf32>
    tpu.vector_store %arg8[%c6_217, %c0_218, %c0_219], %402 {strides = array<i32>} : memref<8x32x32xf32, #tpu.memory_space<vmem>>, vector<1x32x32xf32>,
    %403 = vector.extract_strided_slice %398 {offsets = [32, 0], sizes = [32, 32], strides = [1, 1]} : vector<64x32xf32> to vector<32x32xf32>
    %c1_220 = arith.constant 1 : index
    %c0_221 = arith.constant 0 : index
    %c0_222 = arith.constant 0 : index
    %404 = vector.load %arg9[%c1_220, %c0_221, %c0_222] : memref<8x32x32xf32, #tpu.memory_space<vmem>>, vector<1x32x32xf32>
    %405 = vector.shape_cast %404 : vector<1x32x32xf32> to vector<32x32xf32>
    %406 = vector.shape_cast %403 : vector<32x32xf32> to vector<1x32x32xf32>
    tpu.vector_store %arg9[%c1_220, %c0_221, %c0_222], %406 {strides = array<i32>} : memref<8x32x32xf32, #tpu.memory_space<vmem>>, vector<1x32x32xf32>,
    %c7_223 = arith.constant 7 : index
    %c0_224 = arith.constant 0 : index
    %c0_225 = arith.constant 0 : index
    %407 = vector.load %arg11[%c7_223, %c0_224, %c0_225] : memref<8x64x64xf32, #tpu.memory_space<vmem>>, vector<1x64x64xf32>
    %408 = vector.shape_cast %407 : vector<1x64x64xf32> to vector<64x64xf32>
    %cst_226 = arith.constant dense<0.000000e+00> : vector<64x64xf32>
    %409 = tpu.matmul %398, %6, %cst_226 {dimension_numbers = #tpu.dot_dimension_numbers<[1], [0], [0], [1], [0, 0, 1, 1], [], []>} : vector<64x32xf32>, vector<32x64xf32>, vector<64x64xf32> -> vector<64x64xf32>
    %410 = arith.addf %408, %409 : vector<64x64xf32>
    %411 = arith.negf %410 : vector<64x64xf32>
    %412 = math.exp %411 : vector<64x64xf32>
    %cst_227 = arith.constant 1.000000e+00 : f32
    %413 = vector.broadcast %cst_227 : f32 to vector<64x64xf32>
    %414 = arith.addf %413, %412 : vector<64x64xf32>
    %415 = arith.divf %413, %414 : vector<64x64xf32>
    %416 = vector.extract_strided_slice %415 {offsets = [0, 0], sizes = [64, 32], strides = [1, 1]} : vector<64x64xf32> to vector<64x32xf32>
    %417 = vector.extract_strided_slice %415 {offsets = [0, 32], sizes = [64, 32], strides = [1, 1]} : vector<64x64xf32> to vector<64x32xf32>
    %c7_228 = arith.constant 7 : index
    %c0_229 = arith.constant 0 : index
    %c0_230 = arith.constant 0 : index
    %418 = vector.load %arg12[%c7_228, %c0_229, %c0_230] : memref<8x64x32xf32, #tpu.memory_space<vmem>>, vector<1x64x32xf32>
    %419 = vector.shape_cast %418 : vector<1x64x32xf32> to vector<64x32xf32>
    %420 = arith.mulf %416, %398 : vector<64x32xf32>
    %cst_231 = arith.constant dense<0.000000e+00> : vector<64x32xf32>
    %421 = tpu.matmul %420, %7, %cst_231 {dimension_numbers = #tpu.dot_dimension_numbers<[1], [0], [0], [1], [0, 0, 1, 1], [], []>} : vector<64x32xf32>, vector<32x32xf32>, vector<64x32xf32> -> vector<64x32xf32>
    %422 = arith.addf %419, %421 : vector<64x32xf32>
    %423 = math.tanh %422 : vector<64x32xf32>
    %424 = arith.mulf %417, %398 : vector<64x32xf32>
    %cst_232 = arith.constant 1.000000e+00 : f32
    %425 = vector.broadcast %cst_232 : f32 to vector<64x32xf32>
    %426 = arith.subf %425, %417 : vector<64x32xf32>
    %427 = arith.mulf %426, %423 : vector<64x32xf32>
    %428 = arith.addf %424, %427 : vector<64x32xf32>
    %cst_233 = arith.constant -1.000000e+04 : f32
    %cst_234 = arith.constant 1.000000e+04 : f32
    %429 = vector.broadcast %cst_233 : f32 to vector<64x32xf32>
    %430 = arith.maximumf %429, %428 : vector<64x32xf32>
    %431 = vector.broadcast %cst_234 : f32 to vector<64x32xf32>
    %432 = arith.minimumf %431, %430 : vector<64x32xf32>
    %433 = vector.extract_strided_slice %432 {offsets = [0, 0], sizes = [32, 32], strides = [1, 1]} : vector<64x32xf32> to vector<32x32xf32>
    %c7_235 = arith.constant 7 : index
    %c0_236 = arith.constant 0 : index
    %c0_237 = arith.constant 0 : index
    %434 = vector.load %arg8[%c7_235, %c0_236, %c0_237] : memref<8x32x32xf32, #tpu.memory_space<vmem>>, vector<1x32x32xf32>
    %435 = vector.shape_cast %434 : vector<1x32x32xf32> to vector<32x32xf32>
    %436 = vector.shape_cast %433 : vector<32x32xf32> to vector<1x32x32xf32>
    tpu.vector_store %arg8[%c7_235, %c0_236, %c0_237], %436 {strides = array<i32>} : memref<8x32x32xf32, #tpu.memory_space<vmem>>, vector<1x32x32xf32>,
    %437 = vector.extract_strided_slice %432 {offsets = [32, 0], sizes = [32, 32], strides = [1, 1]} : vector<64x32xf32> to vector<32x32xf32>
    %c0_238 = arith.constant 0 : index
    %c0_239 = arith.constant 0 : index
    %c0_240 = arith.constant 0 : index
    %438 = vector.load %arg9[%c0_238, %c0_239, %c0_240] : memref<8x32x32xf32, #tpu.memory_space<vmem>>, vector<1x32x32xf32>
    %439 = vector.shape_cast %438 : vector<1x32x32xf32> to vector<32x32xf32>
    %440 = vector.shape_cast %437 : vector<32x32xf32> to vector<1x32x32xf32>
    tpu.vector_store %arg9[%c0_238, %c0_239, %c0_240], %440 {strides = array<i32>} : memref<8x32x32xf32, #tpu.memory_space<vmem>>, vector<1x32x32xf32>,
    return
  }
  func.func @transform_0(%arg0: i32) -> (i32, i32, i32, i32) {
    %c0_i32 = arith.constant 0 : i32
    %c0_i32_0 = arith.constant 0 : i32
    %c0_i32_1 = arith.constant 0 : i32
    %c0_i32_2 = arith.constant 0 : i32
    return %arg0, %c0_i32, %c0_i32_0, %c0_i32_1 : i32, i32, i32, i32
  }
  func.func @transform_1(%arg0: i32) -> (i32, i32) {
    %c0_i32 = arith.constant 0 : i32
    %c0_i32_0 = arith.constant 0 : i32
    %c0_i32_1 = arith.constant 0 : i32
    return %c0_i32, %c0_i32_0 : i32, i32
  }
  func.func @transform_2(%arg0: i32) -> (i32, i32) {
    %c0_i32 = arith.constant 0 : i32
    %c0_i32_0 = arith.constant 0 : i32
    %c0_i32_1 = arith.constant 0 : i32
    return %c0_i32, %c0_i32_0 : i32, i32
  }
  func.func @transform_3(%arg0: i32) -> (i32, i32) {
    %c0_i32 = arith.constant 0 : i32
    %c0_i32_0 = arith.constant 0 : i32
    %c0_i32_1 = arith.constant 0 : i32
    return %c0_i32, %c0_i32_0 : i32, i32
  }
  func.func @transform_4(%arg0: i32) -> (i32, i32) {
    %c0_i32 = arith.constant 0 : i32
    %c0_i32_0 = arith.constant 0 : i32
    %c0_i32_1 = arith.constant 0 : i32
    return %c0_i32, %c0_i32_0 : i32, i32
  }
  func.func @transform_5(%arg0: i32) -> (i32, i32) {
    %c0_i32 = arith.constant 0 : i32
    %c0_i32_0 = arith.constant 0 : i32
    %c0_i32_1 = arith.constant 0 : i32
    return %c0_i32, %c0_i32_0 : i32, i32
  }
  func.func @transform_6(%arg0: i32) -> (i32, i32) {
    %c0_i32 = arith.constant 0 : i32
    %c0_i32_0 = arith.constant 0 : i32
    %c0_i32_1 = arith.constant 0 : i32
    return %c0_i32, %c0_i32_0 : i32, i32
  }
  func.func @transform_7(%arg0: i32) -> (i32, i32, i32) {
    %c0_i32 = arith.constant 0 : i32
    %c0_i32_0 = arith.constant 0 : i32
    %c0_i32_1 = arith.constant 0 : i32
    return %c0_i32, %arg0, %c0_i32_0 : i32, i32, i32
  }
  func.func @transform_8(%arg0: i32) -> (i32, i32, i32) {
    %c0_i32 = arith.constant 0 : i32
    %c0_i32_0 = arith.constant 0 : i32
    %c0_i32_1 = arith.constant 0 : i32
    return %c0_i32, %arg0, %c0_i32_0 : i32, i32, i32
  }
}

</mosaic_0001>

<bundles_post_ra>
// kernel: encoder_forward.1
= control target key start
LH: loop header
LB: loop body
LE: loop exit
PB: predicated region body
PF: predicated region fallthrough
CT: control target
= control target key end

     0   :  { %vm56_vm0 = vcmask 130048   ;;  %v6355_v3 = vmov 0   ;;  %v6356_v23 = vmov 0.0   ;;  %vm138_vm1 = vcmask 64512   ;;  %s6357_s26 = smov 32   ;;  %s6359_s27 = smov 96   ;;  %s8695_s0 = inlined_call_operand.vmem [shape: f32[2,2,16,8], index: 0, kind: input, shape index: {}]   ;;  %s8696_s1 = inlined_call_operand.vmem [shape: f32[16,16], index: 1, kind: input, shape index: {}]   ;;  %s8697_s2 = inlined_call_operand.vmem [shape: f32[16,1], index: 2, kind: input, shape index: {}]   ;;  %s8698_s4 = inlined_call_operand.vmem [shape: f32[32,64], index: 4, kind: input, shape index: {}]   ;;  %s8699_s6 = inlined_call_operand.vmem [shape: f32[32,32], index: 6, kind: input, shape index: {}]   ;;  %s8700_s3 = inlined_call_operand.vmem [shape: f32[2,64], index: 3, kind: input, shape index: {}]   ;;  %s8701_s5 = inlined_call_operand.vmem [shape: f32[2,32], index: 5, kind: input, shape index: {}]   ;;  %s8702_s7 = inlined_call_operand.vmem [shape: f32[8,32,32], index: 7, kind: output, shape index: {0}]   ;;  %s8703_s8 = inlined_call_operand.vmem [shape: f32[8,32,32], index: 8, kind: output, shape index: {1}]  }
   0x1   :  { %v44_v0 = vld [vmem:[%s8695_s0] sm:$0xff]  ;;  %v45_v1 = vld [vmem:[%s8695_s0 + $0x8] sm:$0xff]  ;;  %5943 = vset.pattern.permute.xlu0 %v6355_v3  ;;  %5944 = vset.pattern.permute.xlu1 %v6355_v3  ;;  %v4916_v8 = vld [vmem:[%s8695_s0 + $0x10] sm:$0xff]  ;;  %vm453_vm2 = vcmask 523264   ;;  %vm486_vm3 = vcmask 261120  }
   0x2   :  { %v4912_v2 = vld [vmem:[%s8695_s0 + $0x20] sm:$0xff]  ;;  %v5788_v4 = vpack.c.bf16 %v45_v1, %v44_v0  ;;  %v4913_v5 = vld [vmem:[%s8695_s0 + $0x28] sm:$0xff]  ;;  %v4917_v9 = vld [vmem:[%s8695_s0 + $0x18] sm:$0xff] }
   0x3   :  { %v28_v6 = vld [vmem:[%s8696_s1] sm:$0xff]  ;;  %v5792_v7 = vpack.c.bf16 %v4913_v5, %v4912_v2  ;;  %v4920_v10 = vld [vmem:[%s8695_s0 + $0x30] sm:$0xff]  ;;  %v5796_v11 = vpack.c.bf16 %v4917_v9, %v4916_v8  ;;  %v4921_v12 = vld [vmem:[%s8695_s0 + $0x38] sm:$0xff] }
   0x4   :  { %5444 = vmatprep.mubr.msk.f32.mxu0 %vm56_vm0, %v28_v6  ;;  %5451 = vmatprep.mubr.msk.f32.mxu1 %vm56_vm0, %v28_v6  ;;  %v30_v13 = vld [vmem:[%s8697_s2] sm:$0xff]  ;;  %v29_v14 = vld [vmem:[%s8696_s1 + $0x8] sm:$0xff]  ;;  %v5800_v15 = vpack.c.bf16 %v4921_v12, %v4920_v10  ;;  %v38_v18 = vld [vmem:[%s8698_s4 + $0x10] sm:$0xff] }
   0x5   :  { %5789 = vmatprep.subr.bf16.mxu0 %v5788_v4  ;;  %5793 = vmatprep.subr.bf16.mxu1 %v5792_v7  ;;  %v36_v16 = vld [vmem:[%s8698_s4] sm:$0xff]  ;;  %v37_v17 = vld [vmem:[%s8698_s4 + $0x8] sm:$0xff]  ;;  %v39_v19 = vld [vmem:[%s8698_s4 + $0x18] sm:$0xff] }
   0x6   :  { %5791 = vmatpush3.bf16.msra.mxu0 %v5788_v4  ;;  %5795 = vmatpush3.bf16.msra.mxu1 %v5792_v7  ;;  %v31_v20 = vld [vmem:[%s8697_s2 + $0x8] sm:$0xff]  ;;  %v6462_v21 = vpack.c.bf16 %v37_v17, %v36_v16  ;;  %v6466_v22 = vpack.c.bf16 %v39_v19, %v38_v18  ;;  %v40_v58 = vld [vmem:[%s8699_s6] sm:$0xff]  ;;  %v42_v61 = vld [vmem:[%s8699_s6 + $0x10] sm:$0xff] }
   0x7   :  { %5797 = vmatprep.subr.bf16.mxu0 %v5796_v11  ;;  %5801 = vmatprep.subr.bf16.mxu1 %v5800_v15  ;;  %v41_v59 = vld [vmem:[%s8699_s6 + $0x8] sm:$0xff]  ;;  %v43_v62 = vld [vmem:[%s8699_s6 + $0x18] sm:$0xff]  ;;  %v6552_v0 = vld [vmem:[%s8700_s3] ss:$0 sm:$0xff] }
   0x8   :  { %48 = vperm.xlu0 %5943, %v30_v13   ;;  %v6534_v60 = vpack.c.bf16 %v41_v59, %v40_v58  ;;  %v6544_v63 = vpack.c.bf16 %v43_v62, %v42_v61  ;;  %v6557_v1 = vld [vmem:[%s8701_s5] ss:$0 sm:$0xff]  ;;  %v6562_v2 = vld [vmem:[%s8700_s3 + $0x1] ss:$0 sm:$0xff] }
   0x9   :  { %5445 = vmatmul.mubr.msk.f32.vlgmr.msra.gmra.mrb[0].mxu0 %vm56_vm0, %v29_v14  ;;  %5452 = vmatmul.mubr.msk.f32.vlgmr.msra.gmra.mrb[0].mxu1 %vm56_vm0, %v29_v14  ;;  %v6567_v3 = vld [vmem:[%s8701_s5 + $0x1] ss:$0 sm:$0xff] }
   0xa   :  { %5799 = vmatpush3.bf16.msra.mxu0 %v5796_v11  ;;  %5803 = vmatpush3.bf16.msra.mxu1 %v5800_v15 }
   0xb   :  { %5458 = vmatprep.mubr.msk.f32.mxu0 %vm56_vm0, %v28_v6  ;;  %5465 = vmatprep.mubr.msk.f32.mxu1 %vm56_vm0, %v28_v6 }
   0xc   :  { %53 = vperm.xlu0 %5943, %v31_v20   ;;  %5805 = vmatprep.subr.bf16.mxu0 %v6462_v21 }
   0xd   :  { %5459 = vmatmul.mubr.msk.f32.vlgmr.msra.gmra.mrb[2].mxu0 %vm56_vm0, %v29_v14  ;;  %5466 = vmatmul.mubr.msk.f32.vlgmr.msra.gmra.mrb[2].mxu1 %vm56_vm0, %v29_v14 }
   0xe   :  { %5807 = vmatpush3.bf16.msra.mxu0 %v6462_v21  ;;  %5476 = vmatprep.mubr.f32.mxu0 %v6356_v23 }
   0xf   :  { %5809 = vmatprep.subr.bf16.mxu0 %v6466_v22  ;;  %5813 = vmatprep.subr.bf16.mxu1 %v6534_v60 }
  0x10   :  { %5815 = vmatpush3.bf16.msra.mxu1 %v6534_v60 }
  0x11   :  { %5817 = vmatprep.subr.bf16.mxu1 %v6544_v63 }
  0x12   :  { %5811 = vmatpush3.bf16.msra.mxu0 %v6466_v22 }
  0x13   :  { %5821 = vmatprep.subr.bf16.mxu0 %v6462_v21 }
  0x14   :  { %5819 = vmatpush3.bf16.msra.mxu1 %v6544_v63 }
  0x15   :  { %5477 = vmatmul.mubr.f32.vlgmr.msra.gmra.mrb[4].mxu0 %v6356_v23  ;;  %5829 = vmatprep.subr.bf16.mxu1 %v6534_v60 }
  0x16   :  { %5479 = vmatprep.mubr.f32.mxu0 %v6356_v23  ;;  %5823 = vmatpush3.bf16.msra.mxu0 %v6462_v21 }
  0x17   :  { %5825 = vmatprep.subr.bf16.mxu0 %v6466_v22 }
  0x19   :  { %5480 = vmatmul.mubr.f32.gmra.mrb[6].mxu0 %v6356_v23 }
  0x1a   :  { %5482 = vmatprep.mubr.f32.mxu0 %v6356_v23  ;;  %5827 = vmatpush3.bf16.msra.mxu0 %v6466_v22 }
  0x1b   :  { %5837 = vmatprep.subr.bf16.mxu0 %v6462_v21 }
  0x1d   :  { %5483 = vmatmul.mubr.f32.gmra.mrb[8].mxu0 %v6356_v23 }
  0x1e   :  { %5485 = vmatprep.mubr.f32.mxu0 %v6356_v23 }
  0x21   :  { %5486 = vmatmul.mubr.f32.gmra.mrb[10].mxu0 %v6356_v23 }
  0x87   :  { %v49_v24 = vpop.permute.xlu0 %48 }
  0x8b   :  { %v54_v25 = vpop.permute.xlu0 %53 }
  0xdc   :  { %v5446_v26 = vpop.f32.mrb[0].mxu0  ;;  %v5453_v28 = vpop.f32.mrb[0].mxu1 }
  0xdd   :  { %v135_v27 = vadd.f32 %v5446_v26, %v54_v25  ;;  %v129_v29 = vpop.f32.mrb[1].mxu0  ;;  %v216_v30 = vadd.f32 %v5453_v28, %v54_v25  ;;  %v210_v32 = vpop.f32.mrb[1].mxu1 }
  0xde   :  { %v130_v31 = vadd.f32 %v129_v29, %v49_v24  ;;  %v211_v33 = vadd.f32 %v210_v32, %v49_v24 }
  0xdf   :  { %140 = vst.msk [vmem:[#allocation2 + $0x8] sm:$0xff] %vm138_vm1, %v135_v27  ;;  %220 = vst.msk [vmem:[#allocation2 + $0x18] sm:$0xff] %vm138_vm1, %v216_v30 }
  0xe0   :  { %139 = vst.msk [vmem:[#allocation2] sm:$0xff] %vm138_vm1, %v130_v31  ;;  %v5460_v34 = vpop.f32.mrb[2].mxu0  ;;  %219 = vst.msk [vmem:[#allocation2 + $0x10] sm:$0xff] %vm138_vm1, %v211_v33  ;;  %v5467_v36 = vpop.f32.mrb[2].mxu1 }
  0xe1   :  { %v296_v35 = vadd.f32 %v5460_v34, %v54_v25  ;;  %v290_v37 = vpop.f32.mrb[3].mxu0  ;;  %v376_v38 = vadd.f32 %v5467_v36, %v54_v25  ;;  %v370_v40 = vpop.f32.mrb[3].mxu1 }
  0xe2   :  { %v291_v39 = vadd.f32 %v290_v37, %v49_v24  ;;  %v371_v41 = vadd.f32 %v370_v40, %v49_v24 }
  0xe3   :  { %300 = vst.msk [vmem:[#allocation2 + $0x28] sm:$0xff] %vm138_vm1, %v296_v35  ;;  %380 = vst.msk [vmem:[#allocation2 + $0x38] sm:$0xff] %vm138_vm1, %v376_v38 }
  0xe4   :  { %299 = vst.msk [vmem:[#allocation2 + $0x20] sm:$0xff] %vm138_vm1, %v291_v39  ;;  %379 = vst.msk [vmem:[#allocation2 + $0x30] sm:$0xff] %vm138_vm1, %v371_v41 }
  0xe6   :  { %v6496_v45 = vld [vmem:[#allocation2 + $0x8] sm:$0xff]  ;;  %v6500_v46 = vld [vmem:[#allocation2 + $0x18] sm:$0xff] }
  0xe7   :  { %v6488_v42 = vld [vmem:[#allocation2] sm:$0xff]  ;;  %v6490_v43 = vld [vmem:[#allocation2 + $0x10] sm:$0xff] }
  0xe8   :  { %391 = vperm.xlu1 %5944, %v6488_v42   ;;  %401 = vperm.xlu0 %5943, %v6490_v43   ;;  %v6506_v48 = vpop.f32.mrb[4].mxu0 }
  0xe9   :  { %v6508_v49 = vpop.f32.mrb[5].mxu0 }
  0xea   :  { %v6510_v50 = vld [vmem:[#allocation2 + $0x28] sm:$0xff]  ;;  %v6517_v53 = vld [vmem:[#allocation2 + $0x38] sm:$0xff] }
  0xeb   :  { %v6494_v44 = vld [vmem:[#allocation2 + $0x20] sm:$0xff]  ;;  %v6502_v47 = vld [vmem:[#allocation2 + $0x30] sm:$0xff] }
  0xec   :  { %396 = vperm.xlu1 %5944, %v6496_v45   ;;  %411 = vperm.xlu0 %5943, %v6494_v44   ;;  %v6512_v51 = vpop.f32.mrb[6].mxu0 }
  0xed   :  { %v6515_v52 = vpop.f32.mrb[7].mxu0 }
  0xf0   :  { %406 = vperm.xlu1 %5944, %v6500_v46   ;;  %421 = vperm.xlu0 %5943, %v6502_v47   ;;  %v6519_v54 = vpop.f32.mrb[8].mxu0 }
  0xf1   :  { %v6522_v55 = vpop.f32.mrb[9].mxu0 }
  0xf4   :  { %416 = vperm.xlu1 %5944, %v6510_v50   ;;  %v6524_v56 = vpop.f32.mrb[10].mxu0 }
  0xf5   :  { %v6526_v57 = vpop.f32.mrb[11].mxu0 }
  0xf8   :  { %426 = vperm.xlu1 %5944, %v6517_v53  }
 0x167   :  { %v392_v4 = vpop.permute.xlu1 %391  ;;  %v402_v5 = vpop.permute.xlu0 %401 }
 0x168   :  { %v433_v6 = vmul.f32 %v6552_v0, %v392_v4  ;;  %v466_v7 = vmul.f32 %v6557_v1, %v392_v4  ;;  %v435_v8 = vmul.f32 %v6552_v0, %v402_v5  ;;  %v468_v9 = vmul.f32 %v6557_v1, %v402_v5 }
 0x16a   :  { %v445_v10 = vadd.f32 %v6562_v2, %v433_v6  ;;  %v478_v11 = vadd.f32 %v6567_v3, %v466_v7  ;;  %v447_v12 = vadd.f32 %v6562_v2, %v435_v8  ;;  %v480_v13 = vadd.f32 %v6567_v3, %v468_v9 }
 0x16b   :  { %v397_v14 = vpop.permute.xlu1 %396  ;;  %v412_v15 = vpop.permute.xlu0 %411 }
 0x16c   :  { %454 = vst.msk [vmem:[#allocation3] sm:$0xff] %vm453_vm2, %v445_v10  ;;  %v434_v16 = vmul.f32 %v6552_v0, %v397_v14  ;;  %v467_v17 = vmul.f32 %v6557_v1, %v397_v14  ;;  %456 = vst.msk [vmem:[#allocation3 + $0x10] sm:$0xff] %vm453_vm2, %v447_v12  ;;  %v437_v18 = vmul.f32 %v6552_v0, %v412_v15 }
 0x16d   :  { %487 = vst.msk [vmem:[#allocation4] sm:$0xff] %vm486_vm3, %v478_v11  ;;  %489 = vst.msk [vmem:[#allocation4 + $0x10] sm:$0xff] %vm486_vm3, %v480_v13  ;;  %v470_v19 = vmul.f32 %v6557_v1, %v412_v15 }
 0x16e   :  { %v446_v20 = vadd.f32 %v6562_v2, %v434_v16  ;;  %v479_v23 = vadd.f32 %v6567_v3, %v467_v17  ;;  %v449_v24 = vadd.f32 %v6562_v2, %v437_v18 }
 0x16f   :  { %v482_v25 = vadd.f32 %v6567_v3, %v470_v19  ;;  %v407_v26 = vpop.permute.xlu1 %406  ;;  %v422_v27 = vpop.permute.xlu0 %421 }
 0x170   :  { %455 = vst.msk [vmem:[#allocation3 + $0x8] sm:$0xff] %vm453_vm2, %v446_v20  ;;  %v436_v28 = vmul.f32 %v6552_v0, %v407_v26  ;;  %v469_v29 = vmul.f32 %v6557_v1, %v407_v26  ;;  %458 = vst.msk [vmem:[#allocation3 + $0x20] sm:$0xff] %vm453_vm2, %v449_v24  ;;  %v439_v30 = vmul.f32 %v6552_v0, %v422_v27 }
 0x171   :  { %488 = vst.msk [vmem:[#allocation4 + $0x8] sm:$0xff] %vm486_vm3, %v479_v23  ;;  %491 = vst.msk [vmem:[#allocation4 + $0x20] sm:$0xff] %vm486_vm3, %v482_v25  ;;  %v472_v31 = vmul.f32 %v6557_v1, %v422_v27 }
 0x172   :  { %v448_v32 = vadd.f32 %v6562_v2, %v436_v28  ;;  %v481_v33 = vadd.f32 %v6567_v3, %v469_v29  ;;  %v451_v34 = vadd.f32 %v6562_v2, %v439_v30 }
 0x173   :  { %v484_v35 = vadd.f32 %v6567_v3, %v472_v31  ;;  %v1181_v36 = vld [vmem:[#allocation3] sm:$0xff]  ;;  %v417_v37 = vpop.permute.xlu1 %416  ;;  %v1183_v39 = vld [vmem:[#allocation3 + $0x10] sm:$0xff] }
 0x174   :  { %457 = vst.msk [vmem:[#allocation3 + $0x18] sm:$0xff] %vm453_vm2, %v448_v32  ;;  %v1297_v38 = vadd.f32 %v6508_v49, %v1181_v36  ;;  %v438_v40 = vmul.f32 %v6552_v0, %v417_v37  ;;  %v471_v41 = vmul.f32 %v6557_v1, %v417_v37  ;;  %460 = vst.msk [vmem:[#allocation3 + $0x30] sm:$0xff] %vm453_vm2, %v451_v34 }
 0x175   :  { %490 = vst.msk [vmem:[#allocation4 + $0x18] sm:$0xff] %vm486_vm3, %v481_v33  ;;  %493 = vst.msk [vmem:[#allocation4 + $0x30] sm:$0xff] %vm486_vm3, %v484_v35  ;;  %v1299_v58 = vadd.f32 %v6515_v52, %v1183_v39 }
 0x176   :  { %v4928_v59 = vmul.f32 -1.442695, %v1297_v38  ;;  %v450_v61 = vadd.f32 %v6562_v2, %v438_v40  ;;  %v483_v62 = vadd.f32 %v6567_v3, %v471_v41 }
 0x177   :  { %v1182_v4 = vld [vmem:[#allocation3 + $0x8] sm:$0xff]  ;;  %v4930_v5 = vmul.f32 -1.442695, %v1299_v58  ;;  %v427_v6 = vpop.permute.xlu1 %426  ;;  %v1185_v7 = vld [vmem:[#allocation3 + $0x20] sm:$0xff] }
 0x178   :  { %v1298_v49 = vadd.f32 %v6506_v48, %v1182_v4  ;;  %5959 = vpow2.f32 %v4928_v59  ;;  %459 = vst.msk [vmem:[#allocation3 + $0x28] sm:$0xff] %vm453_vm2, %v450_v61  ;;  %v440_v8 = vmul.f32 %v6552_v0, %v427_v6  ;;  %v473_v52 = vmul.f32 %v6557_v1, %v427_v6 }
 0x179   :  { %492 = vst.msk [vmem:[#allocation4 + $0x28] sm:$0xff] %vm486_vm3, %v483_v62  ;;  %5961 = vpow2.f32 %v4930_v5  ;;  %v1301_v9 = vadd.f32 %v6522_v55, %v1185_v7 }
 0x17a   :  { %v4929_v10 = vmul.f32 -1.442695, %v1298_v49  ;;  %v452_v11 = vadd.f32 %v6562_v2, %v440_v8  ;;  %v485_v12 = vadd.f32 %v6567_v3, %v473_v52 }
 0x17b   :  { %v1184_v13 = vld [vmem:[#allocation3 + $0x18] sm:$0xff]  ;;  %v4932_v48 = vmul.f32 -1.442695, %v1301_v9  ;;  %v1187_v15 = vld [vmem:[#allocation3 + $0x30] sm:$0xff] }
 0x17c   :  { %5963 = vpow2.f32 %v4929_v10  ;;  %v1300_v14 = vadd.f32 %v6512_v51, %v1184_v13  ;;  %461 = vst.msk [vmem:[#allocation3 + $0x38] sm:$0xff] %vm453_vm2, %v452_v11  ;;  %v1303_v16 = vadd.f32 %v6526_v57, %v1187_v15  ;;  %v1354_v10 = vld [vmem:[#allocation4 + $0x8] sm:$0xff]  ;;  %v1353_v13 = vld [vmem:[#allocation4] sm:$0xff]  ;;  %v1356_v15 = vld [vmem:[#allocation4 + $0x18] sm:$0xff] }
 0x17d   :  { %494 = vst.msk [vmem:[#allocation4 + $0x38] sm:$0xff] %vm486_vm3, %v485_v12  ;;  %5965 = vpow2.f32 %v4932_v48 }
 0x17e   :  { %v4931_v17 = vmul.f32 -1.442695, %v1300_v14  ;;  %v4934_v18 = vmul.f32 -1.442695, %v1303_v16 }
 0x17f   :  { %v1186_v55 = vld [vmem:[#allocation3 + $0x28] sm:$0xff] }
 0x180   :  { %5967 = vpow2.f32 %v4931_v17  ;;  %v1302_v19 = vadd.f32 %v6519_v54, %v1186_v55  ;;  %v1355_v55 = vld [vmem:[#allocation4 + $0x10] sm:$0xff] }
 0x181   :  { %5969 = vpow2.f32 %v4934_v18 }
 0x182   :  { %v5960_v20 = vpop.eup %5959  ;;  %v4933_v23 = vmul.f32 -1.442695, %v1302_v19 }
 0x183   :  { %v5962_v24 = vpop.eup %5961  ;;  %v1329_v25 = vadd.f32 1.0, %v5960_v20  ;;  %v1188_v51 = vld [vmem:[#allocation3 + $0x38] sm:$0xff]  ;;  %v1358_v20 = vld [vmem:[#allocation4 + $0x28] sm:$0xff] }
 0x184   :  { %v1331_v26 = vadd.f32 1.0, %v5962_v24  ;;  %5971 = vpow2.f32 %v4933_v23  ;;  %v1304_v27 = vadd.f32 %v6524_v56, %v1188_v51 }
 0x185   :  { %5973 = vrcp.f32 %v1329_v25  ;;  %v1357_v25 = vld [vmem:[#allocation4 + $0x20] sm:$0xff] }
 0x186   :  { %v5964_v28 = vpop.eup %5963  ;;  %v4935_v29 = vmul.f32 -1.442695, %v1304_v27  ;;  %5975 = vrcp.f32 %v1331_v26  ;;  %v1360_v27 = vld [vmem:[#allocation4 + $0x38] sm:$0xff] }
 0x187   :  { %v5966_v57 = vpop.eup %5965  ;;  %v1330_v30 = vadd.f32 1.0, %v5964_v28 }
 0x188   :  { %v1333_v31 = vadd.f32 1.0, %v5966_v57  ;;  %5977 = vpow2.f32 %v4935_v29 }
 0x189   :  { %5979 = vrcp.f32 %v1330_v30  ;;  %v1359_v30 = vld [vmem:[#allocation4 + $0x30] sm:$0xff] }
 0x18a   :  { %v5968_v54 = vpop.eup %5967  ;;  %5981 = vrcp.f32 %v1333_v31 }
 0x18b   :  { %v5970_v32 = vpop.eup %5969  ;;  %v1332_v33 = vadd.f32 1.0, %v5968_v54 }
 0x18c   :  { %v1335_v34 = vadd.f32 1.0, %v5970_v32 }
 0x18d   :  { %5983 = vrcp.f32 %v1332_v33 }
 0x18e   :  { %v5972_v35 = vpop.eup %5971  ;;  %5985 = vrcp.f32 %v1335_v34 }
 0x18f   :  { %v6625_v36 = vpop.eup %5973  ;;  %v1334_v37 = vadd.f32 1.0, %v5972_v35 }
 0x190   :  { %v6628_v56 = vmul.f32 0.0, %v6625_v36  ;;  %v6630_v38 = vpop.eup %5975 }
 0x191   :  { %5987 = vrcp.f32 %v1334_v37  ;;  %v6640_v59 = vmul.f32 0.0, %v6630_v38  ;;  %v6358_v37 = vmov 1  }
 0x192   :  { %v5978_v39 = vpop.eup %5977  ;;  %5496 = vmatprep.mubr.msk.f32.mxu1 %vm486_vm3, %v6628_v56  ;;  %5946 = vset.pattern.permute.xlu1 %v6358_v37 }
 0x193   :  { %v6634_v40 = vpop.eup %5979  ;;  %v1336_v41 = vadd.f32 1.0, %v5978_v39  ;;  %5945 = vset.pattern.permute.xlu0 %v6358_v37 }
 0x194   :  { %v6637_v58 = vmul.f32 0.0, %v6634_v40  ;;  %v6642_v61 = vpop.eup %5981 }
 0x195   :  { %5989 = vrcp.f32 %v1336_v41  ;;  %v6656_v5 = vmul.f32 0.0, %v6642_v61 }
 0x196   :  { %5497 = vmatmul.mubr.msk.f32.vlgmr.msra.gmra.mrb[4].mxu1 %vm486_vm3, %v6637_v58 }
 0x197   :  { %v6646_v62 = vpop.eup %5983  ;;  %5499 = vmatprep.mubr.msk.f32.mxu1 %vm486_vm3, %v6640_v59  ;;  %5831 = vmatpush3.bf16.msra.mxu1 %v6534_v60 }
 0x198   :  { %v6652_v4 = vmul.f32 0.0, %v6646_v62  ;;  %5833 = vmatprep.subr.bf16.mxu1 %v6544_v63  ;;  %v6658_v6 = vpop.eup %5985 }
 0x199   :  { %v6672_v8 = vmul.f32 0.0, %v6658_v6 }
 0x19a   :  { %5500 = vmatmul.mubr.msk.f32.gmra.mrb[6].mxu1 %vm486_vm3, %v6652_v4 }
 0x19b   :  { %v6662_v49 = vpop.eup %5987  ;;  %5502 = vmatprep.mubr.msk.f32.mxu1 %vm486_vm3, %v6656_v5  ;;  %5835 = vmatpush3.bf16.msra.mxu1 %v6544_v63 }
 0x19c   :  { %v6668_v7 = vmul.f32 0.0, %v6662_v49  ;;  %5845 = vmatprep.subr.bf16.mxu1 %v6534_v60 }
 0x19e   :  { %5503 = vmatmul.mubr.msk.f32.gmra.mrb[8].mxu1 %vm486_vm3, %v6668_v7 }
 0x19f   :  { %v6676_v52 = vpop.eup %5989  ;;  %5505 = vmatprep.mubr.msk.f32.mxu1 %vm486_vm3, %v6672_v8 }
 0x1a0   :  { %v6681_v9 = vmul.f32 0.0, %v6676_v52 }
 0x1a2   :  { %5506 = vmatmul.mubr.msk.f32.gmra.mrb[10].mxu1 %vm486_vm3, %v6681_v9 }
 0x269   :  { %v5498_v11 = vpop.f32.mrb[4].mxu1 }
 0x26a   :  { %v1499_v12 = vadd.f32 %v5498_v11, %v1354_v10  ;;  %v1459_v48 = vpop.f32.mrb[5].mxu1  ;;  %v1515_v11 = vsub.f32 1.0, %v6634_v40 }
 0x26b   :  { %v1498_v14 = vadd.f32 %v1459_v48, %v1353_v13  ;;  %v1514_v13 = vsub.f32 1.0, %v6625_v36 }
 0x26c   :  { %5991 = vtanh.f32 %v1499_v12 }
 0x26d   :  { %5993 = vtanh.f32 %v1498_v14  ;;  %v5501_v16 = vpop.f32.mrb[6].mxu1 }
 0x26e   :  { %v1501_v17 = vadd.f32 %v5501_v16, %v1356_v15  ;;  %v1469_v18 = vpop.f32.mrb[7].mxu1 }
 0x26f   :  { %v1500_v19 = vadd.f32 %v1469_v18, %v1355_v55 }
 0x270   :  { %5995 = vtanh.f32 %v1501_v17  ;;  %v1517_v17 = vsub.f32 1.0, %v6646_v62  ;;  %v1518_v62 = vsub.f32 1.0, %v6642_v61 }
 0x271   :  { %5997 = vtanh.f32 %v1500_v19  ;;  %v5504_v23 = vpop.f32.mrb[8].mxu1  ;;  %v1516_v19 = vsub.f32 1.0, %v6630_v38 }
 0x272   :  { %v1503_v24 = vadd.f32 %v5504_v23, %v1358_v20  ;;  %v1479_v51 = vpop.f32.mrb[9].mxu1 }
 0x273   :  { %v1502_v26 = vadd.f32 %v1479_v51, %v1357_v25 }
 0x274   :  { %5999 = vtanh.f32 %v1503_v24 }
 0x275   :  { %6001 = vtanh.f32 %v1502_v26  ;;  %v5507_v28 = vpop.f32.mrb[10].mxu1 }
 0x276   :  { %v5992_v29 = vpop.eup %5991  ;;  %v1505_v57 = vadd.f32 %v5507_v28, %v1360_v27  ;;  %v1489_v31 = vpop.f32.mrb[11].mxu1 }
 0x277   :  { %v5994_v54 = vpop.eup %5993  ;;  %v1504_v32 = vadd.f32 %v1489_v31, %v1359_v30  ;;  %1532 = vrot.lane.b32.xlu1 %v5992_v29, %s6357_s26 }
 0x278   :  { %6003 = vtanh.f32 %v1505_v57  ;;  %1530 = vrot.lane.b32.xlu0 %v5994_v54, %s6357_s26  ;;  %v1520_v57 = vsub.f32 1.0, %v6658_v6 }
 0x279   :  { %6005 = vtanh.f32 %v1504_v32 }
 0x27a   :  { %v5996_v33 = vpop.eup %5995 }
 0x27b   :  { %v5998_v34 = vpop.eup %5997  ;;  %1536 = vrot.lane.b32.xlu1 %v5996_v33, %s6357_s26 }
 0x27c   :  { %1534 = vrot.lane.b32.xlu0 %v5998_v34, %s6357_s26 }
 0x27e   :  { %v6000_v35 = vpop.eup %5999 }
 0x27f   :  { %v6002_v39 = vpop.eup %6001  ;;  %1540 = vrot.lane.b32.xlu1 %v6000_v35, %s6357_s26 }
 0x280   :  { %1538 = vrot.lane.b32.xlu0 %v6002_v39, %s6357_s26 }
 0x282   :  { %v6004_v41 = vpop.eup %6003 }
 0x283   :  { %v6006_v10 = vpop.eup %6005  ;;  %1544 = vrot.lane.b32.xlu1 %v6004_v41, %s6357_s26 }
 0x284   :  { %1542 = vrot.lane.b32.xlu0 %v6006_v10, %s6357_s26 }
 0x2e9   :  { %v1533_v12 = vpop.permute.xlu1 %1532 }
 0x2ea   :  { %v1555_v48 = vmul.f32 %v1533_v12, %v1515_v11  ;;  %v1531_v14 = vpop.permute.xlu0 %1530 }
 0x2eb   :  { %v1554_v15 = vmul.f32 %v1531_v14, %v1514_v13 }
 0x2ec   :  { %v6696_v16 = vadd.f32 %v1555_v48, %v6637_v58 }
 0x2ed   :  { %v6700_v55 = vadd.f32 %v1554_v15, %v6628_v56  ;;  %v1537_v18 = vpop.permute.xlu1 %1536  ;;  %v1519_v56 = vsub.f32 1.0, %v6662_v49 }
 0x2ee   :  { %v1557_v20 = vmul.f32 %v1537_v18, %v1517_v17  ;;  %v1535_v23 = vpop.permute.xlu0 %1534  ;;  %v4945_v40 = vclamps-f32 %v6696_v16, 10000.0 }
 0x2ef   :  { %v1556_v24 = vmul.f32 %v1535_v23, %v1516_v19  ;;  %v4944_v36 = vclamps-f32 %v6700_v55, 10000.0 }
 0x2f0   :  { %v6706_v25 = vadd.f32 %v1557_v20, %v6652_v4  ;;  %1592 = vrot.lane.b32.xlu1 %v4945_v40, %s6359_s27 }
 0x2f1   :  { %v6713_v58 = vadd.f32 %v1556_v24, %v6640_v59  ;;  %1590 = vrot.lane.b32.xlu0 %v4944_v36, %s6359_s27  ;;  %v1541_v38 = vpop.permute.xlu1 %1540  ;;  %v1521_v59 = vsub.f32 1.0, %v6676_v52 }
 0x2f2   :  { %v1559_v51 = vmul.f32 %v1541_v38, %v1519_v56  ;;  %v1539_v4 = vpop.permute.xlu0 %1538  ;;  %v4947_v26 = vclamps-f32 %v6706_v25, 10000.0 }
 0x2f3   :  { %v1558_v27 = vmul.f32 %v1539_v4, %v1518_v62  ;;  %v4946_v28 = vclamps-f32 %v6713_v58, 10000.0 }
 0x2f4   :  { %v6722_v29 = vadd.f32 %v1559_v51, %v6668_v7  ;;  %1596 = vrot.lane.b32.xlu1 %v4947_v26, %s6359_s27 }
 0x2f5   :  { %v6729_v49 = vadd.f32 %v1558_v27, %v6656_v5  ;;  %1594 = vrot.lane.b32.xlu0 %v4946_v28, %s6359_s27  ;;  %v1545_v61 = vpop.permute.xlu1 %1544 }
 0x2f6   :  { %v1561_v30 = vmul.f32 %v1545_v61, %v1521_v59  ;;  %v1543_v31 = vpop.permute.xlu0 %1542  ;;  %v4949_v7 = vclamps-f32 %v6722_v29, 10000.0 }
 0x2f7   :  { %v1560_v54 = vmul.f32 %v1543_v31, %v1520_v57  ;;  %v4948_v32 = vclamps-f32 %v6729_v49, 10000.0 }
 0x2f8   :  { %v6738_v33 = vadd.f32 %v1561_v30, %v6681_v9  ;;  %1612 = vrot.lane.b32.xlu1 %v4949_v7, %s6359_s27 }
 0x2f9   :  { %v6744_v5 = vadd.f32 %v1560_v54, %v6672_v8  ;;  %1610 = vrot.lane.b32.xlu0 %v4948_v32, %s6359_s27 }
 0x2fa   :  { %v4951_v6 = vclamps-f32 %v6738_v33, 10000.0 }
 0x2fb   :  { %v4950_v52 = vclamps-f32 %v6744_v5, 10000.0  ;;  %v7021_v5 = vld [vmem:[#allocation2 + $0x8] sm:$0xff] }
 0x2fc   :  { %1616 = vrot.lane.b32.xlu1 %v4951_v6, %s6359_s27 }
 0x2fd   :  { %1614 = vrot.lane.b32.xlu0 %v4950_v52, %s6359_s27 }
 0x300   :  { %510 = vperm.xlu1 %5946, %v6496_v45  }
 0x301   :  { %505 = vperm.xlu0 %5945, %v6488_v42  }
 0x304   :  { %515 = vperm.xlu1 %5946, %v6490_v43  }
 0x305   :  { %520 = vperm.xlu0 %5945, %v6500_v46  }
 0x308   :  { %525 = vperm.xlu1 %5946, %v6494_v44  }
 0x309   :  { %530 = vperm.xlu0 %5945, %v6510_v50  }
 0x30c   :  { %535 = vperm.xlu1 %5946, %v6502_v47  }
 0x30d   :  { %540 = vperm.xlu0 %5945, %v6517_v53  }
 0x362   :  { %v6765_v8 = vpop.permute.xlu1 %1592 }
 0x363   :  { %1603 = vst.msk [vmem:[%s8702_s7 + $0x8] sm:$0xff] %vm486_vm3, %v6765_v8  ;;  %v6772_v42 = vpop.permute.xlu0 %1590 }
 0x364   :  { %1602 = vst.msk [vmem:[%s8702_s7] sm:$0xff] %vm486_vm3, %v6772_v42  ;;  %5516 = vmatprep.mubr.msk.f32.mxu0 %vm486_vm3, %v6772_v42 }
 0x365   :  { %5517 = vmatmul.mubr.msk.f32.vlgmr.msra.gmra.mrb[12].mxu0 %vm486_vm3, %v6765_v8 }
 0x366   :  { %v6783_v43 = vpop.permute.xlu1 %1596  ;;  %5839 = vmatpush3.bf16.msra.mxu0 %v6462_v21 }
 0x367   :  { %1605 = vst.msk [vmem:[%s8702_s7 + $0x18] sm:$0xff] %vm486_vm3, %v6783_v43  ;;  %v6791_v44 = vpop.permute.xlu0 %1594  ;;  %5841 = vmatprep.subr.bf16.mxu0 %v6466_v22 }
 0x368   :  { %1604 = vst.msk [vmem:[%s8702_s7 + $0x10] sm:$0xff] %vm486_vm3, %v6791_v44  ;;  %5519 = vmatprep.mubr.msk.f32.mxu0 %vm486_vm3, %v6791_v44 }
 0x369   :  { %5520 = vmatmul.mubr.msk.f32.gmra.mrb[14].mxu0 %vm486_vm3, %v6783_v43 }
 0x36a   :  { %v6803_v45 = vpop.permute.xlu1 %1612  ;;  %5843 = vmatpush3.bf16.msra.mxu0 %v6466_v22 }
 0x36b   :  { %4953 = vst.msk [vmem:[%s8703_s8 + $0xe8] sm:$0xff] %vm486_vm3, %v6803_v45  ;;  %v6811_v46 = vpop.permute.xlu0 %1610  ;;  %5853 = vmatprep.subr.bf16.mxu0 %v6462_v21 }
 0x36c   :  { %4952 = vst.msk [vmem:[%s8703_s8 + $0xe0] sm:$0xff] %vm486_vm3, %v6811_v46  ;;  %5522 = vmatprep.mubr.msk.f32.mxu0 %vm486_vm3, %v6811_v46 }
 0x36d   :  { %5523 = vmatmul.mubr.msk.f32.gmra.mrb[16].mxu0 %vm486_vm3, %v6803_v45 }
 0x36e   :  { %v6823_v47 = vpop.permute.xlu1 %1616 }
 0x36f   :  { %4955 = vst.msk [vmem:[%s8703_s8 + $0xf8] sm:$0xff] %vm486_vm3, %v6823_v47  ;;  %v6830_v50 = vpop.permute.xlu0 %1614 }
 0x370   :  { %4954 = vst.msk [vmem:[%s8703_s8 + $0xf0] sm:$0xff] %vm486_vm3, %v6830_v50  ;;  %5525 = vmatprep.mubr.msk.f32.mxu0 %vm486_vm3, %v6830_v50 }
 0x371   :  { %5526 = vmatmul.mubr.msk.f32.gmra.mrb[18].mxu0 %vm486_vm3, %v6823_v47 }
 0x37f   :  { %v511_v53 = vpop.permute.xlu1 %510 }
 0x380   :  { %v544_v9 = vmul.f32 %v6552_v0, %v511_v53  ;;  %v569_v34 = vmul.f32 %v6557_v1, %v511_v53  ;;  %v506_v35 = vpop.permute.xlu0 %505 }
 0x381   :  { %v543_v37 = vmul.f32 %v6552_v0, %v506_v35  ;;  %v568_v39 = vmul.f32 %v6557_v1, %v506_v35 }
 0x382   :  { %v552_v41 = vadd.f32 %v6562_v2, %v544_v9  ;;  %v577_v10 = vadd.f32 %v6567_v3, %v569_v34 }
 0x383   :  { %v551_v11 = vadd.f32 %v6562_v2, %v543_v37  ;;  %v576_v12 = vadd.f32 %v6567_v3, %v568_v39  ;;  %v516_v13 = vpop.permute.xlu1 %515 }
 0x384   :  { %561 = vst.msk [vmem:[#allocation3 + $0x48] sm:$0xff] %vm453_vm2, %v552_v41  ;;  %v545_v48 = vmul.f32 %v6552_v0, %v516_v13  ;;  %v570_v14 = vmul.f32 %v6557_v1, %v516_v13  ;;  %v521_v15 = vpop.permute.xlu0 %520 }
 0x385   :  { %586 = vst.msk [vmem:[#allocation4 + $0x48] sm:$0xff] %vm486_vm3, %v577_v10  ;;  %585 = vst.msk [vmem:[#allocation4 + $0x40] sm:$0xff] %vm486_vm3, %v576_v12  ;;  %v546_v17 = vmul.f32 %v6552_v0, %v521_v15  ;;  %v571_v18 = vmul.f32 %v6557_v1, %v521_v15 }
 0x386   :  { %560 = vst.msk [vmem:[#allocation3 + $0x40] sm:$0xff] %vm453_vm2, %v551_v11  ;;  %v553_v19 = vadd.f32 %v6562_v2, %v545_v48  ;;  %v578_v20 = vadd.f32 %v6567_v3, %v570_v14 }
 0x387   :  { %v554_v23 = vadd.f32 %v6562_v2, %v546_v17  ;;  %v579_v24 = vadd.f32 %v6567_v3, %v571_v18  ;;  %v526_v56 = vpop.permute.xlu1 %525 }
 0x388   :  { %562 = vst.msk [vmem:[#allocation3 + $0x50] sm:$0xff] %vm453_vm2, %v553_v19  ;;  %v547_v38 = vmul.f32 %v6552_v0, %v526_v56  ;;  %v572_v62 = vmul.f32 %v6557_v1, %v526_v56  ;;  %v531_v51 = vpop.permute.xlu0 %530 }
 0x389   :  { %587 = vst.msk [vmem:[#allocation4 + $0x50] sm:$0xff] %vm486_vm3, %v578_v20  ;;  %588 = vst.msk [vmem:[#allocation4 + $0x58] sm:$0xff] %vm486_vm3, %v579_v24  ;;  %v548_v4 = vmul.f32 %v6552_v0, %v531_v51  ;;  %v573_v27 = vmul.f32 %v6557_v1, %v531_v51 }
 0x38a   :  { %563 = vst.msk [vmem:[#allocation3 + $0x58] sm:$0xff] %vm453_vm2, %v554_v23  ;;  %v555_v59 = vadd.f32 %v6562_v2, %v547_v38  ;;  %v580_v61 = vadd.f32 %v6567_v3, %v572_v62 }
 0x38b   :  { %v556_v57 = vadd.f32 %v6562_v2, %v548_v4  ;;  %v581_v30 = vadd.f32 %v6567_v3, %v573_v27  ;;  %v536_v31 = vpop.permute.xlu1 %535  ;;  %v1628_v11 = vld [vmem:[#allocation3 + $0x48] sm:$0xff] }
 0x38c   :  { %564 = vst.msk [vmem:[#allocation3 + $0x60] sm:$0xff] %vm453_vm2, %v555_v59  ;;  %v549_v54 = vmul.f32 %v6552_v0, %v536_v31  ;;  %v574_v53 = vmul.f32 %v6557_v1, %v536_v31  ;;  %v541_v9 = vpop.permute.xlu0 %540 }
 0x38d   :  { %589 = vst.msk [vmem:[#allocation4 + $0x60] sm:$0xff] %vm486_vm3, %v580_v61  ;;  %590 = vst.msk [vmem:[#allocation4 + $0x68] sm:$0xff] %vm486_vm3, %v581_v30  ;;  %v550_v34 = vmul.f32 %v6552_v0, %v541_v9  ;;  %v575_v35 = vmul.f32 %v6557_v1, %v541_v9  ;;  %v1627_v1 = vld [vmem:[#allocation3 + $0x40] sm:$0xff] }
 0x38e   :  { %565 = vst.msk [vmem:[#allocation3 + $0x68] sm:$0xff] %vm453_vm2, %v556_v57  ;;  %v557_v37 = vadd.f32 %v6562_v2, %v549_v54  ;;  %v582_v39 = vadd.f32 %v6567_v3, %v574_v53 }
 0x38f   :  { %v558_v41 = vadd.f32 %v6562_v2, %v550_v34  ;;  %v583_v10 = vadd.f32 %v6567_v3, %v575_v35  ;;  %v1629_v18 = vld [vmem:[#allocation3 + $0x50] sm:$0xff] }
 0x390   :  { %566 = vst.msk [vmem:[#allocation3 + $0x70] sm:$0xff] %vm453_vm2, %v557_v37 }
 0x391   :  { %591 = vst.msk [vmem:[#allocation4 + $0x70] sm:$0xff] %vm486_vm3, %v582_v39  ;;  %592 = vst.msk [vmem:[#allocation4 + $0x78] sm:$0xff] %vm486_vm3, %v583_v10  ;;  %v1630_v17 = vld [vmem:[#allocation3 + $0x58] sm:$0xff] }
 0x392   :  { %567 = vst.msk [vmem:[#allocation3 + $0x78] sm:$0xff] %vm453_vm2, %v558_v41 }
 0x393   :  { %v1631_v51 = vld [vmem:[#allocation3 + $0x60] sm:$0xff] }
 0x395   :  { %v1632_v56 = vld [vmem:[#allocation3 + $0x68] sm:$0xff] }
 0x397   :  { %v1633_v54 = vld [vmem:[#allocation3 + $0x70] sm:$0xff] }
 0x399   :  { %v1634_v57 = vld [vmem:[#allocation3 + $0x78] sm:$0xff] }
 0x438   :  { %v5518_v0 = vpop.f32.mrb[12].mxu0 }
 0x439   :  { %v1757_v12 = vadd.f32 %v5518_v0, %v1628_v11  ;;  %v1717_v13 = vpop.f32.mrb[13].mxu0 }
 0x43a   :  { %v1756_v48 = vadd.f32 %v1717_v13, %v1627_v1 }
 0x43b   :  { %v4965_v14 = vmul.f32 -1.442695, %v1757_v12 }
 0x43c   :  { %v4964_v15 = vmul.f32 -1.442695, %v1756_v48  ;;  %v5521_v2 = vpop.f32.mrb[14].mxu0 }
 0x43d   :  { %6007 = vpow2.f32 %v4965_v14  ;;  %v1759_v3 = vadd.f32 %v5521_v2, %v1630_v17  ;;  %v1727_v19 = vpop.f32.mrb[15].mxu0 }
 0x43e   :  { %6009 = vpow2.f32 %v4964_v15  ;;  %v1758_v20 = vadd.f32 %v1727_v19, %v1629_v18 }
 0x43f   :  { %v4967_v23 = vmul.f32 -1.442695, %v1759_v3 }
 0x440   :  { %v4966_v24 = vmul.f32 -1.442695, %v1758_v20  ;;  %v5524_v38 = vpop.f32.mrb[16].mxu0 }
 0x441   :  { %6011 = vpow2.f32 %v4967_v23  ;;  %v1761_v62 = vadd.f32 %v5524_v38, %v1632_v56  ;;  %v1737_v4 = vpop.f32.mrb[17].mxu0 }
 0x442   :  { %6013 = vpow2.f32 %v4966_v24  ;;  %v1760_v27 = vadd.f32 %v1737_v4, %v1631_v51 }
 0x443   :  { %v4969_v59 = vmul.f32 -1.442695, %v1761_v62 }
 0x444   :  { %v4968_v61 = vmul.f32 -1.442695, %v1760_v27  ;;  %v5527_v30 = vpop.f32.mrb[18].mxu0 }
 0x445   :  { %6015 = vpow2.f32 %v4969_v59  ;;  %v1763_v31 = vadd.f32 %v5527_v30, %v1634_v57  ;;  %v1747_v53 = vpop.f32.mrb[19].mxu0  ;;  %v1812_v30 = vld [vmem:[#allocation4 + $0x40] sm:$0xff] }
 0x446   :  { %6017 = vpow2.f32 %v4968_v61  ;;  %v1762_v9 = vadd.f32 %v1747_v53, %v1633_v54  ;;  %v1815_v53 = vld [vmem:[#allocation4 + $0x58] sm:$0xff] }
 0x447   :  { %v6008_v34 = vpop.eup %6007  ;;  %v4971_v35 = vmul.f32 -1.442695, %v1763_v31 }
 0x448   :  { %v6010_v37 = vpop.eup %6009  ;;  %v1789_v39 = vadd.f32 1.0, %v6008_v34  ;;  %v4970_v41 = vmul.f32 -1.442695, %v1762_v9 }
 0x449   :  { %v1788_v10 = vadd.f32 1.0, %v6010_v37  ;;  %6019 = vpow2.f32 %v4971_v35  ;;  %v1814_v35 = vld [vmem:[#allocation4 + $0x50] sm:$0xff] }
 0x44a   :  { %6021 = vrcp.f32 %v1789_v39 }
 0x44b   :  { %v6012_v11 = vpop.eup %6011  ;;  %6023 = vrcp.f32 %v1788_v10  ;;  %v1816_v10 = vld [vmem:[#allocation4 + $0x60] sm:$0xff] }
 0x44c   :  { %v6014_v0 = vpop.eup %6013  ;;  %v1791_v12 = vadd.f32 1.0, %v6012_v11  ;;  %6025 = vpow2.f32 %v4970_v41 }
 0x44d   :  { %v1790_v1 = vadd.f32 1.0, %v6014_v0 }
 0x44e   :  { %6027 = vrcp.f32 %v1791_v12 }
 0x44f   :  { %v6016_v13 = vpop.eup %6015  ;;  %6029 = vrcp.f32 %v1790_v1 }
 0x450   :  { %v6018_v48 = vpop.eup %6017  ;;  %v1793_v14 = vadd.f32 1.0, %v6016_v13  ;;  %v1819_v13 = vld [vmem:[#allocation4 + $0x78] sm:$0xff] }
 0x451   :  { %v1792_v15 = vadd.f32 1.0, %v6018_v48 }
 0x452   :  { %6031 = vrcp.f32 %v1793_v14 }
 0x453   :  { %v6020_v17 = vpop.eup %6019  ;;  %6033 = vrcp.f32 %v1792_v15  ;;  %v1818_v15 = vld [vmem:[#allocation4 + $0x70] sm:$0xff] }
 0x454   :  { %v6889_v2 = vpop.eup %6021  ;;  %v1795_v3 = vadd.f32 1.0, %v6020_v17 }
 0x455   :  { %v6891_v18 = vpop.eup %6023  ;;  %v1821_v24 = vmul.f32 %v6889_v2, %v6765_v8 }
 0x456   :  { %v6026_v19 = vpop.eup %6025  ;;  %v1820_v20 = vmul.f32 %v6891_v18, %v6772_v42  ;;  %6035 = vrcp.f32 %v1795_v3 }
 0x457   :  { %v1794_v23 = vadd.f32 1.0, %v6026_v19 }
 0x458   :  { %v6897_v56 = vpop.eup %6027  ;;  %5536 = vmatprep.mubr.msk.f32.mxu1 %vm486_vm3, %v1820_v20 }
 0x459   :  { %v6900_v38 = vpop.eup %6029  ;;  %6037 = vrcp.f32 %v1794_v23  ;;  %5537 = vmatmul.mubr.msk.f32.vlgmr.msra.gmra.mrb[12].mxu1 %vm486_vm3, %v1821_v24  ;;  %v1823_v42 = vmul.f32 %v6897_v56, %v6783_v43  ;;  %v1976_v16 = vmul.f32 %v6897_v56, %v4947_v26 }
 0x45a   :  { %v1822_v62 = vmul.f32 %v6900_v38, %v6791_v44  ;;  %5847 = vmatpush3.bf16.msra.mxu1 %v6534_v60 }
 0x45b   :  { %5849 = vmatprep.subr.bf16.mxu1 %v6544_v63 }
 0x45c   :  { %v6909_v8 = vpop.eup %6031  ;;  %5539 = vmatprep.mubr.msk.f32.mxu1 %vm486_vm3, %v1822_v62  ;;  %v6360_v62 = vmov 2  }
 0x45d   :  { %v6912_v51 = vpop.eup %6033  ;;  %5540 = vmatmul.mubr.msk.f32.gmra.mrb[14].mxu1 %vm486_vm3, %v1823_v42  ;;  %v1825_v44 = vmul.f32 %v6909_v8, %v6803_v45  ;;  %v1813_v45 = vld [vmem:[#allocation4 + $0x48] sm:$0xff]  ;;  %5948 = vset.pattern.permute.xlu0 %v6360_v62  ;;  %v1986_v25 = vsub.f32 1.0, %v6909_v8 }
 0x45e   :  { %v1824_v4 = vmul.f32 %v6912_v51, %v6811_v46  ;;  %5851 = vmatpush3.bf16.msra.mxu1 %v6544_v63  ;;  %5947 = vset.pattern.permute.xlu1 %v6360_v62  ;;  %v1985_v58 = vsub.f32 1.0, %v6912_v51 }
 0x45f   :  { %5861 = vmatprep.subr.bf16.mxu1 %v6534_v60 }
 0x460   :  { %5542 = vmatprep.mubr.msk.f32.mxu1 %vm486_vm3, %v1824_v4  ;;  %v6923_v43 = vpop.eup %6035 }
 0x461   :  { %5543 = vmatmul.mubr.msk.f32.gmra.mrb[16].mxu1 %vm486_vm3, %v1825_v44  ;;  %v1827_v46 = vmul.f32 %v6923_v43, %v6823_v47  ;;  %v1817_v47 = vld [vmem:[#allocation4 + $0x68] sm:$0xff]  ;;  %v1982_v44 = vsub.f32 1.0, %v6889_v2 }
 0x463   :  { %v6925_v27 = vpop.eup %6037 }
 0x464   :  { %v1826_v59 = vmul.f32 %v6925_v27, %v6830_v50 }
 0x466   :  { %5545 = vmatprep.mubr.msk.f32.mxu1 %vm486_vm3, %v1826_v59 }
 0x467   :  { %5546 = vmatmul.mubr.msk.f32.gmra.mrb[18].mxu1 %vm486_vm3, %v1827_v46  ;;  %v1981_v46 = vsub.f32 1.0, %v6891_v18 }
 0x52c   :  { %v5538_v61 = vpop.f32.mrb[12].mxu1 }
 0x52d   :  { %v1958_v57 = vadd.f32 %v5538_v61, %v1813_v45  ;;  %v1918_v31 = vpop.f32.mrb[13].mxu1  ;;  %v1974_v45 = vmul.f32 %v6889_v2, %v4945_v40 }
 0x52e   :  { %v1957_v54 = vadd.f32 %v1918_v31, %v1812_v30  ;;  %v1973_v30 = vmul.f32 %v6891_v18, %v4944_v36  ;;  %v1975_v36 = vmul.f32 %v6900_v38, %v4946_v28  ;;  %v1978_v28 = vmul.f32 %v6909_v8, %v4949_v7 }
 0x52f   :  { %6039 = vtanh.f32 %v1958_v57  ;;  %v1988_v7 = vsub.f32 1.0, %v6923_v43  ;;  %v1987_v8 = vsub.f32 1.0, %v6925_v27 }
 0x530   :  { %6041 = vtanh.f32 %v1957_v54  ;;  %v5541_v9 = vpop.f32.mrb[14].mxu1 }
 0x531   :  { %v1960_v34 = vadd.f32 %v5541_v9, %v1815_v53  ;;  %v1928_v50 = vpop.f32.mrb[15].mxu1  ;;  %v1984_v53 = vsub.f32 1.0, %v6897_v56 }
 0x532   :  { %v1959_v37 = vadd.f32 %v1928_v50, %v1814_v35  ;;  %v1983_v35 = vsub.f32 1.0, %v6900_v38 }
 0x533   :  { %6043 = vtanh.f32 %v1960_v34 }
 0x534   :  { %6045 = vtanh.f32 %v1959_v37  ;;  %v5544_v39 = vpop.f32.mrb[16].mxu1 }
 0x535   :  { %v1962_v41 = vadd.f32 %v5544_v39, %v1817_v47  ;;  %v1938_v11 = vpop.f32.mrb[17].mxu1 }
 0x536   :  { %v1961_v0 = vadd.f32 %v1938_v11, %v1816_v10 }
 0x537   :  { %6047 = vtanh.f32 %v1962_v41  ;;  %v1977_v41 = vmul.f32 %v6912_v51, %v4948_v32 }
 0x538   :  { %6049 = vtanh.f32 %v1961_v0 }
 0x539   :  { %v6040_v12 = vpop.eup %6039 }
 0x53a   :  { %v6042_v1 = vpop.eup %6041  ;;  %v5547_v48 = vpop.f32.mrb[18].mxu1  ;;  %1999 = vrot.lane.b32.xlu0 %v6040_v12, %s6357_s26  ;;  %v1980_v12 = vmul.f32 %v6923_v43, %v4951_v6 }
 0x53b   :  { %v1964_v14 = vadd.f32 %v5547_v48, %v1819_v13  ;;  %v1948_v17 = vpop.f32.mrb[19].mxu1  ;;  %1997 = vrot.lane.b32.xlu1 %v6042_v1, %s6357_s26  ;;  %v1979_v48 = vmul.f32 %v6925_v27, %v4950_v52  ;;  %v7024_v52 = vld [vmem:[#allocation2] sm:$0xff] }
 0x53c   :  { %v1963_v3 = vadd.f32 %v1948_v17, %v1818_v15  ;;  %v7027_v27 = vld [vmem:[#allocation2 + $0x20] sm:$0xff]  ;;  %v7030_v17 = vld [vmem:[#allocation2 + $0x10] sm:$0xff] }
 0x53d   :  { %v6044_v19 = vpop.eup %6043  ;;  %6051 = vtanh.f32 %v1964_v14 }
 0x53e   :  { %v6046_v20 = vpop.eup %6045  ;;  %6053 = vtanh.f32 %v1963_v3  ;;  %2003 = vrot.lane.b32.xlu0 %v6044_v19, %s6357_s26  ;;  %v7033_v3 = vld [vmem:[#allocation2 + $0x30] sm:$0xff]  ;;  %v7036_v19 = vld [vmem:[#allocation2 + $0x18] sm:$0xff] }
 0x53f   :  { %2001 = vrot.lane.b32.xlu1 %v6046_v20, %s6357_s26  ;;  %v7039_v20 = vld [vmem:[#allocation2 + $0x28] sm:$0xff] }
 0x541   :  { %v6048_v23 = vpop.eup %6047 }
 0x542   :  { %v6050_v24 = vpop.eup %6049  ;;  %2007 = vrot.lane.b32.xlu0 %v6048_v23, %s6357_s26  ;;  %v7042_v23 = vld [vmem:[#allocation2 + $0x38] sm:$0xff] }
 0x543   :  { %2005 = vrot.lane.b32.xlu1 %v6050_v24, %s6357_s26 }
 0x547   :  { %v6052_v42 = vpop.eup %6051 }
 0x548   :  { %v6054_v4 = vpop.eup %6053  ;;  %2011 = vrot.lane.b32.xlu0 %v6052_v42, %s6357_s26 }
 0x549   :  { %2009 = vrot.lane.b32.xlu1 %v6054_v4, %s6357_s26 }
 0x5ac   :  { %v2000_v59 = vpop.permute.xlu0 %1999 }
 0x5ad   :  { %v2022_v61 = vmul.f32 %v2000_v59, %v1982_v44  ;;  %v1998_v57 = vpop.permute.xlu1 %1997 }
 0x5ae   :  { %v2021_v31 = vmul.f32 %v1998_v57, %v1981_v46  ;;  %v7124_v57 = vld [vmem:[%s8700_s3] ss:$0 sm:$0xff] }
 0x5af   :  { %v6949_v54 = vadd.f32 %v2022_v61, %v1974_v45 }
 0x5b0   :  { %v6952_v9 = vadd.f32 %v2021_v31, %v1973_v30  ;;  %v2004_v34 = vpop.permute.xlu0 %2003  ;;  %v7130_v31 = vld [vmem:[%s8701_s5] ss:$0 sm:$0xff] }
 0x5b1   :  { %v2024_v40 = vmul.f32 %v2004_v34, %v1984_v53  ;;  %v2002_v2 = vpop.permute.xlu1 %2001  ;;  %v4981_v55 = vclamps-f32 %v6949_v54, 10000.0 }
 0x5b2   :  { %v2023_v18 = vmul.f32 %v2002_v2, %v1983_v35  ;;  %v4980_v50 = vclamps-f32 %v6952_v9, 10000.0 }
 0x5b3   :  { %v6963_v37 = vadd.f32 %v2024_v40, %v1976_v16  ;;  %2059 = vrot.lane.b32.xlu0 %v4981_v55, %s6359_s27  ;;  %v7138_v40 = vld [vmem:[%s8700_s3 + $0x1] ss:$0 sm:$0xff] }
 0x5b4   :  { %v6969_v26 = vadd.f32 %v2023_v18, %v1975_v36  ;;  %v2008_v56 = vpop.permute.xlu0 %2007  ;;  %2057 = vrot.lane.b32.xlu1 %v4980_v50, %s6359_s27  ;;  %v7144_v36 = vld [vmem:[%s8701_s5 + $0x1] ss:$0 sm:$0xff] }
 0x5b5   :  { %v2026_v38 = vmul.f32 %v2008_v56, %v1986_v25  ;;  %v2006_v47 = vpop.permute.xlu1 %2005  ;;  %v4983_v39 = vclamps-f32 %v6963_v37, 10000.0 }
 0x5b6   :  { %v2025_v10 = vmul.f32 %v2006_v47, %v1985_v58  ;;  %v4982_v11 = vclamps-f32 %v6969_v26, 10000.0 }
 0x5b7   :  { %v6983_v0 = vadd.f32 %v2026_v38, %v1978_v28  ;;  %2063 = vrot.lane.b32.xlu0 %v4983_v39, %s6359_s27 }
 0x5b8   :  { %v6988_v29 = vadd.f32 %v2025_v10, %v1977_v41  ;;  %2061 = vrot.lane.b32.xlu1 %v4982_v11, %s6359_s27 }
 0x5b9   :  { %v4985_v49 = vclamps-f32 %v6983_v0, 10000.0 }
 0x5ba   :  { %v2012_v32 = vpop.permute.xlu0 %2011  ;;  %v4984_v51 = vclamps-f32 %v6988_v29, 10000.0 }
 0x5bb   :  { %v2028_v1 = vmul.f32 %v2012_v32, %v1988_v7  ;;  %v2010_v13 = vpop.permute.xlu1 %2009  ;;  %2080 = vrot.lane.b32.xlu0 %v4985_v49, %s6359_s27 }
 0x5bc   :  { %v2027_v14 = vmul.f32 %v2010_v13, %v1987_v8  ;;  %2078 = vrot.lane.b32.xlu1 %v4984_v51, %s6359_s27 }
 0x5bd   :  { %v7009_v15 = vadd.f32 %v2028_v1, %v1980_v12 }
 0x5be   :  { %v7011_v33 = vadd.f32 %v2027_v14, %v1979_v48 }
 0x5bf   :  { %v4987_v6 = vclamps-f32 %v7009_v15, 10000.0 }
 0x5c0   :  { %v4986_v43 = vclamps-f32 %v7011_v33, 10000.0 }
 0x5c1   :  { %2084 = vrot.lane.b32.xlu0 %v4987_v6, %s6359_s27 }
 0x5c2   :  { %2082 = vrot.lane.b32.xlu1 %v4986_v43, %s6359_s27 }
 0x5c5   :  { %608 = vperm.xlu0 %5948, %v7021_v5  }
 0x5c6   :  { %603 = vperm.xlu1 %5947, %v7024_v52  }
 0x5c9   :  { %623 = vperm.xlu0 %5948, %v7027_v27  }
 0x5ca   :  { %613 = vperm.xlu1 %5947, %v7030_v17  }
 0x5cd   :  { %633 = vperm.xlu0 %5948, %v7033_v3  }
 0x5ce   :  { %618 = vperm.xlu1 %5947, %v7036_v19  }
 0x5d2   :  { %628 = vperm.xlu1 %5947, %v7039_v20  }
 0x5d6   :  { %638 = vperm.xlu1 %5947, %v7042_v23  }
 0x625   :  { %v7045_v24 = vpop.permute.xlu0 %2059 }
 0x626   :  { %4989 = vst.msk [vmem:[%s8702_s7 + $0x28] sm:$0xff] %vm486_vm3, %v7045_v24  ;;  %v7052_v62 = vpop.permute.xlu1 %2057 }
 0x627   :  { %4988 = vst.msk [vmem:[%s8702_s7 + $0x20] sm:$0xff] %vm486_vm3, %v7052_v62  ;;  %5556 = vmatprep.mubr.msk.f32.mxu0 %vm486_vm3, %v7052_v62 }
 0x628   :  { %5557 = vmatmul.mubr.msk.f32.vlgmr.msra.gmra.mrb[20].mxu0 %vm486_vm3, %v7045_v24 }
 0x629   :  { %v7063_v42 = vpop.permute.xlu0 %2063  ;;  %5855 = vmatpush3.bf16.msra.mxu0 %v6462_v21 }
 0x62a   :  { %4991 = vst.msk [vmem:[%s8702_s7 + $0x38] sm:$0xff] %vm486_vm3, %v7063_v42  ;;  %v7071_v4 = vpop.permute.xlu1 %2061  ;;  %5857 = vmatprep.subr.bf16.mxu0 %v6466_v22 }
 0x62b   :  { %4990 = vst.msk [vmem:[%s8702_s7 + $0x30] sm:$0xff] %vm486_vm3, %v7071_v4  ;;  %5559 = vmatprep.mubr.msk.f32.mxu0 %vm486_vm3, %v7071_v4 }
 0x62c   :  { %5560 = vmatmul.mubr.msk.f32.gmra.mrb[22].mxu0 %vm486_vm3, %v7063_v42 }
 0x62d   :  { %v7083_v44 = vpop.permute.xlu0 %2080  ;;  %5859 = vmatpush3.bf16.msra.mxu0 %v6466_v22 }
 0x62e   :  { %4993 = vst.msk [vmem:[%s8703_s8 + $0xc8] sm:$0xff] %vm486_vm3, %v7083_v44  ;;  %v7091_v59 = vpop.permute.xlu1 %2078  ;;  %5869 = vmatprep.subr.bf16.mxu0 %v6462_v21 }
 0x62f   :  { %4992 = vst.msk [vmem:[%s8703_s8 + $0xc0] sm:$0xff] %vm486_vm3, %v7091_v59  ;;  %5562 = vmatprep.mubr.msk.f32.mxu0 %vm486_vm3, %v7091_v59 }
 0x630   :  { %5563 = vmatmul.mubr.msk.f32.gmra.mrb[24].mxu0 %vm486_vm3, %v7083_v44 }
 0x633   :  { %v7103_v46 = vpop.permute.xlu0 %2084 }
 0x634   :  { %4995 = vst.msk [vmem:[%s8703_s8 + $0xd8] sm:$0xff] %vm486_vm3, %v7103_v46  ;;  %v7110_v45 = vpop.permute.xlu1 %2082 }
 0x635   :  { %4994 = vst.msk [vmem:[%s8703_s8 + $0xd0] sm:$0xff] %vm486_vm3, %v7110_v45  ;;  %5565 = vmatprep.mubr.msk.f32.mxu0 %vm486_vm3, %v7110_v45 }
 0x636   :  { %5566 = vmatmul.mubr.msk.f32.gmra.mrb[26].mxu0 %vm486_vm3, %v7103_v46 }
 0x644   :  { %v609_v61 = vpop.permute.xlu0 %608 }
 0x645   :  { %v642_v30 = vmul.f32 %v7124_v57, %v609_v61  ;;  %v667_v53 = vmul.f32 %v7130_v31, %v609_v61  ;;  %v604_v34 = vpop.permute.xlu1 %603 }
 0x646   :  { %v641_v35 = vmul.f32 %v7124_v57, %v604_v34  ;;  %v666_v16 = vmul.f32 %v7130_v31, %v604_v34 }
 0x647   :  { %v650_v2 = vadd.f32 %v7138_v40, %v642_v30  ;;  %v675_v18 = vadd.f32 %v7144_v36, %v667_v53 }
 0x648   :  { %v649_v25 = vadd.f32 %v7138_v40, %v641_v35  ;;  %v674_v56 = vadd.f32 %v7144_v36, %v666_v16  ;;  %v624_v58 = vpop.permute.xlu0 %623 }
 0x649   :  { %659 = vst.msk [vmem:[#allocation3 + $0x88] sm:$0xff] %vm453_vm2, %v650_v2  ;;  %v645_v28 = vmul.f32 %v7124_v57, %v624_v58  ;;  %v670_v38 = vmul.f32 %v7130_v31, %v624_v58  ;;  %v614_v47 = vpop.permute.xlu1 %613 }
 0x64a   :  { %684 = vst.msk [vmem:[#allocation4 + $0x88] sm:$0xff] %vm486_vm3, %v675_v18  ;;  %683 = vst.msk [vmem:[#allocation4 + $0x80] sm:$0xff] %vm486_vm3, %v674_v56  ;;  %v643_v41 = vmul.f32 %v7124_v57, %v614_v47  ;;  %v668_v10 = vmul.f32 %v7130_v31, %v614_v47 }
 0x64b   :  { %658 = vst.msk [vmem:[#allocation3 + $0x80] sm:$0xff] %vm453_vm2, %v649_v25  ;;  %v653_v7 = vadd.f32 %v7138_v40, %v645_v28  ;;  %v678_v32 = vadd.f32 %v7144_v36, %v670_v38 }
 0x64c   :  { %v651_v8 = vadd.f32 %v7138_v40, %v643_v41  ;;  %v676_v12 = vadd.f32 %v7144_v36, %v668_v10  ;;  %v634_v1 = vpop.permute.xlu0 %633 }
 0x64d   :  { %662 = vst.msk [vmem:[#allocation3 + $0xa0] sm:$0xff] %vm453_vm2, %v653_v7  ;;  %v647_v13 = vmul.f32 %v7124_v57, %v634_v1  ;;  %v672_v48 = vmul.f32 %v7130_v31, %v634_v1  ;;  %v619_v14 = vpop.permute.xlu1 %618 }
 0x64e   :  { %687 = vst.msk [vmem:[#allocation4 + $0xa0] sm:$0xff] %vm486_vm3, %v678_v32  ;;  %685 = vst.msk [vmem:[#allocation4 + $0x90] sm:$0xff] %vm486_vm3, %v676_v12  ;;  %v644_v61 = vmul.f32 %v7124_v57, %v619_v14  ;;  %v669_v30 = vmul.f32 %v7130_v31, %v619_v14 }
 0x64f   :  { %660 = vst.msk [vmem:[#allocation3 + $0x90] sm:$0xff] %vm453_vm2, %v651_v8  ;;  %v655_v53 = vadd.f32 %v7138_v40, %v647_v13  ;;  %v680_v34 = vadd.f32 %v7144_v36, %v672_v48 }
 0x650   :  { %v652_v35 = vadd.f32 %v7138_v40, %v644_v61  ;;  %v677_v16 = vadd.f32 %v7144_v36, %v669_v30  ;;  %v2096_v7 = vld [vmem:[#allocation3 + $0x88] sm:$0xff] }
 0x651   :  { %664 = vst.msk [vmem:[#allocation3 + $0xb0] sm:$0xff] %vm453_vm2, %v655_v53  ;;  %v629_v2 = vpop.permute.xlu1 %628 }
 0x652   :  { %689 = vst.msk [vmem:[#allocation4 + $0xb0] sm:$0xff] %vm486_vm3, %v680_v34  ;;  %686 = vst.msk [vmem:[#allocation4 + $0x98] sm:$0xff] %vm486_vm3, %v677_v16  ;;  %v646_v18 = vmul.f32 %v7124_v57, %v629_v2  ;;  %v671_v25 = vmul.f32 %v7130_v31, %v629_v2  ;;  %v2095_v12 = vld [vmem:[#allocation3 + $0x80] sm:$0xff] }
 0x653   :  { %661 = vst.msk [vmem:[#allocation3 + $0x98] sm:$0xff] %vm453_vm2, %v652_v35 }
 0x654   :  { %v654_v56 = vadd.f32 %v7138_v40, %v646_v18  ;;  %v679_v58 = vadd.f32 %v7144_v36, %v671_v25 }
 0x655   :  { %v639_v28 = vpop.permute.xlu1 %638 }
 0x656   :  { %663 = vst.msk [vmem:[#allocation3 + $0xa8] sm:$0xff] %vm453_vm2, %v654_v56  ;;  %v648_v38 = vmul.f32 %v7124_v57, %v639_v28  ;;  %v673_v47 = vmul.f32 %v7130_v31, %v639_v28  ;;  %v2097_v34 = vld [vmem:[#allocation3 + $0x90] sm:$0xff]  ;;  %v2099_v28 = vld [vmem:[#allocation3 + $0xa0] sm:$0xff] }
 0x657   :  { %688 = vst.msk [vmem:[#allocation4 + $0xa8] sm:$0xff] %vm486_vm3, %v679_v58 }
 0x658   :  { %v656_v41 = vadd.f32 %v7138_v40, %v648_v38  ;;  %v681_v10 = vadd.f32 %v7144_v36, %v673_v47 }
 0x65a   :  { %665 = vst.msk [vmem:[#allocation3 + $0xb8] sm:$0xff] %vm453_vm2, %v656_v41  ;;  %v2098_v61 = vld [vmem:[#allocation3 + $0x98] sm:$0xff] }
 0x65b   :  { %690 = vst.msk [vmem:[#allocation4 + $0xb8] sm:$0xff] %vm486_vm3, %v681_v10 }
 0x65d   :  { %v2100_v25 = vld [vmem:[#allocation3 + $0xa8] sm:$0xff] }
 0x6fb   :  { %v5558_v32 = vpop.f32.mrb[20].mxu0 }
 0x6fc   :  { %v2225_v8 = vadd.f32 %v5558_v32, %v2096_v7  ;;  %v2185_v1 = vpop.f32.mrb[21].mxu0  ;;  %v2102_v7 = vld [vmem:[#allocation3 + $0xb8] sm:$0xff] }
 0x6fd   :  { %v2224_v13 = vadd.f32 %v2185_v1, %v2095_v12  ;;  %v2101_v1 = vld [vmem:[#allocation3 + $0xb0] sm:$0xff] }
 0x6fe   :  { %v5005_v48 = vmul.f32 -1.442695, %v2225_v8 }
 0x6ff   :  { %v5004_v14 = vmul.f32 -1.442695, %v2224_v13  ;;  %v5561_v30 = vpop.f32.mrb[22].mxu0 }
 0x700   :  { %6055 = vpow2.f32 %v5005_v48  ;;  %v2227_v53 = vadd.f32 %v5561_v30, %v2098_v61  ;;  %v2195_v35 = vpop.f32.mrb[23].mxu0 }
 0x701   :  { %6057 = vpow2.f32 %v5004_v14  ;;  %v2226_v16 = vadd.f32 %v2195_v35, %v2097_v34 }
 0x702   :  { %v5007_v2 = vmul.f32 -1.442695, %v2227_v53 }
 0x703   :  { %v5006_v18 = vmul.f32 -1.442695, %v2226_v16  ;;  %v5564_v56 = vpop.f32.mrb[24].mxu0 }
 0x704   :  { %6059 = vpow2.f32 %v5007_v2  ;;  %v2229_v58 = vadd.f32 %v5564_v56, %v2100_v25  ;;  %v2205_v38 = vpop.f32.mrb[25].mxu0 }
 0x705   :  { %6061 = vpow2.f32 %v5006_v18  ;;  %v2228_v47 = vadd.f32 %v2205_v38, %v2099_v28 }
 0x706   :  { %v5009_v41 = vmul.f32 -1.442695, %v2229_v58 }
 0x707   :  { %v5008_v10 = vmul.f32 -1.442695, %v2228_v47 }
 0x708   :  { %6063 = vpow2.f32 %v5009_v41 }
 0x709   :  { %6065 = vpow2.f32 %v5008_v10  ;;  %v5567_v32 = vpop.f32.mrb[26].mxu0 }
 0x70a   :  { %v6056_v8 = vpop.eup %6055  ;;  %v2231_v12 = vadd.f32 %v5567_v32, %v2102_v7  ;;  %v2215_v13 = vpop.f32.mrb[27].mxu0 }
 0x70b   :  { %v6058_v48 = vpop.eup %6057  ;;  %v2257_v14 = vadd.f32 1.0, %v6056_v8  ;;  %v2230_v61 = vadd.f32 %v2215_v13, %v2101_v1 }
 0x70c   :  { %v2256_v30 = vadd.f32 1.0, %v6058_v48  ;;  %v5011_v53 = vmul.f32 -1.442695, %v2231_v12 }
 0x70d   :  { %6067 = vrcp.f32 %v2257_v14  ;;  %v5010_v34 = vmul.f32 -1.442695, %v2230_v61 }
 0x70e   :  { %v6060_v35 = vpop.eup %6059  ;;  %6069 = vrcp.f32 %v2256_v30 }
 0x70f   :  { %v6062_v16 = vpop.eup %6061  ;;  %v2259_v2 = vadd.f32 1.0, %v6060_v35  ;;  %6071 = vpow2.f32 %v5011_v53 }
 0x710   :  { %v2258_v18 = vadd.f32 1.0, %v6062_v16  ;;  %6073 = vpow2.f32 %v5010_v34  ;;  %v2280_v16 = vld [vmem:[#allocation4 + $0x80] sm:$0xff] }
 0x711   :  { %6075 = vrcp.f32 %v2259_v2 }
 0x712   :  { %v6064_v25 = vpop.eup %6063  ;;  %6077 = vrcp.f32 %v2258_v18 }
 0x713   :  { %v6066_v56 = vpop.eup %6065  ;;  %v2261_v58 = vadd.f32 1.0, %v6064_v25  ;;  %v2283_v25 = vld [vmem:[#allocation4 + $0x98] sm:$0xff] }
 0x714   :  { %v2260_v28 = vadd.f32 1.0, %v6066_v56 }
 0x715   :  { %6079 = vrcp.f32 %v2261_v58 }
 0x716   :  { %6081 = vrcp.f32 %v2260_v28  ;;  %v2282_v28 = vld [vmem:[#allocation4 + $0x90] sm:$0xff] }
 0x717   :  { %v7189_v38 = vpop.eup %6067 }
 0x718   :  { %v7191_v47 = vpop.eup %6069  ;;  %v2289_v8 = vmul.f32 %v7189_v38, %v7045_v24 }
 0x719   :  { %v6072_v41 = vpop.eup %6071  ;;  %v2288_v10 = vmul.f32 %v7191_v47, %v7052_v62 }
 0x71a   :  { %v6074_v7 = vpop.eup %6073  ;;  %v2263_v32 = vadd.f32 1.0, %v6072_v41 }
 0x71b   :  { %v7197_v12 = vpop.eup %6075  ;;  %v2262_v1 = vadd.f32 1.0, %v6074_v7  ;;  %5576 = vmatprep.mubr.msk.f32.mxu1 %vm486_vm3, %v2288_v10 }
 0x71c   :  { %v7200_v13 = vpop.eup %6077  ;;  %6083 = vrcp.f32 %v2263_v32  ;;  %5577 = vmatmul.mubr.msk.f32.vlgmr.msra.gmra.mrb[20].mxu1 %vm486_vm3, %v2289_v8  ;;  %v2291_v62 = vmul.f32 %v7197_v12, %v7063_v42  ;;  %v2284_v32 = vld [vmem:[#allocation4 + $0xa0] sm:$0xff]  ;;  %v2444_v54 = vmul.f32 %v7197_v12, %v4983_v39 }
 0x71d   :  { %6085 = vrcp.f32 %v2262_v1  ;;  %v2290_v48 = vmul.f32 %v7200_v13, %v7071_v4  ;;  %5863 = vmatpush3.bf16.msra.mxu1 %v6534_v60 }
 0x71e   :  { %5865 = vmatprep.subr.bf16.mxu1 %v6544_v63 }
 0x71f   :  { %v7209_v24 = vpop.eup %6079  ;;  %5579 = vmatprep.mubr.msk.f32.mxu1 %vm486_vm3, %v2290_v48 }
 0x720   :  { %v7212_v14 = vpop.eup %6081  ;;  %5580 = vmatmul.mubr.msk.f32.gmra.mrb[22].mxu1 %vm486_vm3, %v2291_v62  ;;  %v2293_v4 = vmul.f32 %v7209_v24, %v7083_v44  ;;  %v2281_v44 = vld [vmem:[#allocation4 + $0x88] sm:$0xff]  ;;  %v2454_v37 = vsub.f32 1.0, %v7209_v24 }
 0x721   :  { %v2292_v61 = vmul.f32 %v7212_v14, %v7091_v59  ;;  %5867 = vmatpush3.bf16.msra.mxu1 %v6544_v63 }
 0x722   :  { %5877 = vmatprep.subr.bf16.mxu1 %v6534_v60 }
 0x723   :  { %5582 = vmatprep.mubr.msk.f32.mxu1 %vm486_vm3, %v2292_v61  ;;  %v2287_v61 = vld [vmem:[#allocation4 + $0xb8] sm:$0xff] }
 0x724   :  { %5583 = vmatmul.mubr.msk.f32.gmra.mrb[24].mxu1 %vm486_vm3, %v2293_v4 }
 0x726   :  { %v7223_v42 = vpop.eup %6083 }
 0x727   :  { %v7225_v30 = vpop.eup %6085  ;;  %v2295_v59 = vmul.f32 %v7223_v42, %v7103_v46  ;;  %v2285_v46 = vld [vmem:[#allocation4 + $0xa8] sm:$0xff]  ;;  %v2456_v29 = vsub.f32 1.0, %v7223_v42 }
 0x728   :  { %v2294_v53 = vmul.f32 %v7225_v30, %v7110_v45 }
 0x72a   :  { %5585 = vmatprep.mubr.msk.f32.mxu1 %vm486_vm3, %v2294_v53 }
 0x72b   :  { %5586 = vmatmul.mubr.msk.f32.gmra.mrb[26].mxu1 %vm486_vm3, %v2295_v59  ;;  %v2286_v59 = vld [vmem:[#allocation4 + $0xb0] sm:$0xff] }
 0x7ef   :  { %v5578_v34 = vpop.f32.mrb[20].mxu1 }
 0x7f0   :  { %v2426_v35 = vadd.f32 %v5578_v34, %v2281_v44  ;;  %v2386_v2 = vpop.f32.mrb[21].mxu1 }
 0x7f1   :  { %v2425_v18 = vadd.f32 %v2386_v2, %v2280_v16 }
 0x7f2   :  { %6087 = vtanh.f32 %v2426_v35 }
 0x7f3   :  { %6089 = vtanh.f32 %v2425_v18  ;;  %v5581_v56 = vpop.f32.mrb[22].mxu1 }
 0x7f4   :  { %v2428_v58 = vadd.f32 %v5581_v56, %v2283_v25  ;;  %v2396_v45 = vpop.f32.mrb[23].mxu1  ;;  %v6361_v25 = vmov 3  }
 0x7f5   :  { %v2427_v41 = vadd.f32 %v2396_v45, %v2282_v28  ;;  %5950 = vset.pattern.permute.xlu1 %v6361_v25  ;;  %5949 = vset.pattern.permute.xlu0 %v6361_v25  ;;  %v2450_v28 = vsub.f32 1.0, %v7189_v38  ;;  %v2448_v25 = vmul.f32 %v7223_v42, %v4987_v6 }
 0x7f6   :  { %6091 = vtanh.f32 %v2428_v58 }
 0x7f7   :  { %6093 = vtanh.f32 %v2427_v41  ;;  %v5584_v10 = vpop.f32.mrb[24].mxu1  ;;  %v2449_v41 = vsub.f32 1.0, %v7191_v47 }
 0x7f8   :  { %v2430_v7 = vadd.f32 %v5584_v10, %v2285_v46  ;;  %v2406_v8 = vpop.f32.mrb[25].mxu1  ;;  %v2442_v46 = vmul.f32 %v7189_v38, %v4981_v55 }
 0x7f9   :  { %v2429_v1 = vadd.f32 %v2406_v8, %v2284_v32  ;;  %v2441_v32 = vmul.f32 %v7191_v47, %v4980_v50  ;;  %v2443_v50 = vmul.f32 %v7200_v13, %v4982_v11  ;;  %v2453_v11 = vsub.f32 1.0, %v7212_v14 }
 0x7fa   :  { %6095 = vtanh.f32 %v2430_v7 }
 0x7fb   :  { %6097 = vtanh.f32 %v2429_v1 }
 0x7fc   :  { %v6088_v48 = vpop.eup %6087 }
 0x7fd   :  { %v6090_v62 = vpop.eup %6089  ;;  %2467 = vrot.lane.b32.xlu1 %v6088_v48, %s6357_s26  ;;  %v2452_v48 = vsub.f32 1.0, %v7197_v12  ;;  %v2446_v12 = vmul.f32 %v7209_v24, %v4985_v49 }
 0x7fe   :  { %v5587_v4 = vpop.f32.mrb[26].mxu1  ;;  %2465 = vrot.lane.b32.xlu0 %v6090_v62, %s6357_s26 }
 0x7ff   :  { %v2432_v53 = vadd.f32 %v5587_v4, %v2287_v61  ;;  %v2416_v44 = vpop.f32.mrb[27].mxu1  ;;  %v2451_v4 = vsub.f32 1.0, %v7200_v13 }
 0x800   :  { %v6092_v34 = vpop.eup %6091  ;;  %v2431_v35 = vadd.f32 %v2416_v44, %v2286_v59 }
 0x801   :  { %v6094_v16 = vpop.eup %6093  ;;  %6099 = vtanh.f32 %v2432_v53  ;;  %2471 = vrot.lane.b32.xlu1 %v6092_v34, %s6357_s26 }
 0x802   :  { %6101 = vtanh.f32 %v2431_v35  ;;  %2469 = vrot.lane.b32.xlu0 %v6094_v16, %s6357_s26  ;;  %v2445_v35 = vmul.f32 %v7212_v14, %v4984_v51  ;;  %v2455_v14 = vsub.f32 1.0, %v7225_v30 }
 0x804   :  { %v6096_v2 = vpop.eup %6095 }
 0x805   :  { %v6098_v18 = vpop.eup %6097  ;;  %2475 = vrot.lane.b32.xlu1 %v6096_v2, %s6357_s26 }
 0x806   :  { %2473 = vrot.lane.b32.xlu0 %v6098_v18, %s6357_s26 }
 0x80b   :  { %v6100_v56 = vpop.eup %6099 }
 0x80c   :  { %v6102_v58 = vpop.eup %6101  ;;  %2479 = vrot.lane.b32.xlu1 %v6100_v56, %s6357_s26 }
 0x80d   :  { %2477 = vrot.lane.b32.xlu0 %v6102_v58, %s6357_s26 }
 0x86f   :  { %v2468_v45 = vpop.permute.xlu1 %2467 }
 0x870   :  { %v2490_v10 = vmul.f32 %v2468_v45, %v2450_v28  ;;  %v2466_v7 = vpop.permute.xlu0 %2465  ;;  %v2447_v28 = vmul.f32 %v7225_v30, %v4986_v43 }
 0x871   :  { %v2489_v8 = vmul.f32 %v2466_v7, %v2449_v41 }
 0x872   :  { %v7249_v1 = vadd.f32 %v2490_v10, %v2442_v46 }
 0x873   :  { %v7252_v62 = vadd.f32 %v2489_v8, %v2441_v32  ;;  %v2472_v61 = vpop.permute.xlu1 %2471 }
 0x874   :  { %v2492_v55 = vmul.f32 %v2472_v61, %v2452_v48  ;;  %v2470_v38 = vpop.permute.xlu0 %2469  ;;  %v5021_v9 = vclamps-f32 %v7249_v1, 10000.0 }
 0x875   :  { %v2491_v47 = vmul.f32 %v2470_v38, %v2451_v4  ;;  %v5020_v53 = vclamps-f32 %v7252_v62, 10000.0 }
 0x876   :  { %v7263_v59 = vadd.f32 %v2492_v55, %v2444_v54  ;;  %2527 = vrot.lane.b32.xlu1 %v5021_v9, %s6359_s27 }
 0x877   :  { %v7269_v39 = vadd.f32 %v2491_v47, %v2443_v50  ;;  %2525 = vrot.lane.b32.xlu0 %v5020_v53, %s6359_s27  ;;  %v2476_v26 = vpop.permute.xlu1 %2475 }
 0x878   :  { %v2494_v13 = vmul.f32 %v2476_v26, %v2454_v37  ;;  %v2474_v44 = vpop.permute.xlu0 %2473  ;;  %v5023_v34 = vclamps-f32 %v7263_v59, 10000.0 }
 0x879   :  { %v2493_v16 = vmul.f32 %v2474_v44, %v2453_v11  ;;  %v5022_v2 = vclamps-f32 %v7269_v39, 10000.0 }
 0x87a   :  { %v7283_v18 = vadd.f32 %v2494_v13, %v2446_v12  ;;  %2531 = vrot.lane.b32.xlu1 %v5023_v34, %s6359_s27 }
 0x87b   :  { %v7288_v0 = vadd.f32 %v2493_v16, %v2445_v35  ;;  %2529 = vrot.lane.b32.xlu0 %v5022_v2, %s6359_s27 }
 0x87c   :  { %v5025_v49 = vclamps-f32 %v7283_v18, 10000.0 }
 0x87d   :  { %v5024_v51 = vclamps-f32 %v7288_v0, 10000.0 }
 0x87e   :  { %v2480_v24 = vpop.permute.xlu1 %2479  ;;  %2548 = vrot.lane.b32.xlu1 %v5025_v49, %s6359_s27 }
 0x87f   :  { %v2496_v56 = vmul.f32 %v2480_v24, %v2456_v29  ;;  %v2478_v58 = vpop.permute.xlu0 %2477  ;;  %2546 = vrot.lane.b32.xlu0 %v5024_v51, %s6359_s27 }
 0x880   :  { %v2495_v45 = vmul.f32 %v2478_v58, %v2455_v14 }
 0x881   :  { %v7309_v41 = vadd.f32 %v2496_v56, %v2448_v25 }
 0x882   :  { %v7311_v46 = vadd.f32 %v2495_v45, %v2447_v28 }
 0x883   :  { %v5027_v10 = vclamps-f32 %v7309_v41, 10000.0 }
 0x884   :  { %v5026_v15 = vclamps-f32 %v7311_v46, 10000.0  ;;  %v7585_v46 = vld [vmem:[#allocation2 + $0x8] sm:$0xff] }
 0x885   :  { %2552 = vrot.lane.b32.xlu1 %v5027_v10, %s6359_s27 }
 0x886   :  { %2550 = vrot.lane.b32.xlu0 %v5026_v15, %s6359_s27 }
 0x889   :  { %706 = vperm.xlu1 %5950, %v7021_v5  }
 0x88a   :  { %701 = vperm.xlu0 %5949, %v7024_v52  }
 0x88d   :  { %711 = vperm.xlu1 %5950, %v7030_v17  }
 0x88e   :  { %716 = vperm.xlu0 %5949, %v7036_v19  }
 0x891   :  { %721 = vperm.xlu1 %5950, %v7027_v27  }
 0x892   :  { %726 = vperm.xlu0 %5949, %v7039_v20  }
 0x895   :  { %731 = vperm.xlu1 %5950, %v7033_v3  }
 0x896   :  { %736 = vperm.xlu0 %5949, %v7042_v23  }
 0x8e8   :  { %v7329_v33 = vpop.permute.xlu1 %2527 }
 0x8e9   :  { %5029 = vst.msk [vmem:[%s8702_s7 + $0x48] sm:$0xff] %vm486_vm3, %v7329_v33  ;;  %v7336_v6 = vpop.permute.xlu0 %2525 }
 0x8ea   :  { %5028 = vst.msk [vmem:[%s8702_s7 + $0x40] sm:$0xff] %vm486_vm3, %v7336_v6  ;;  %5596 = vmatprep.mubr.msk.f32.mxu0 %vm486_vm3, %v7336_v6 }
 0x8eb   :  { %5597 = vmatmul.mubr.msk.f32.vlgmr.msra.gmra.mrb[28].mxu0 %vm486_vm3, %v7329_v33 }
 0x8ec   :  { %v7347_v43 = vpop.permute.xlu1 %2531  ;;  %5871 = vmatpush3.bf16.msra.mxu0 %v6462_v21 }
 0x8ed   :  { %5031 = vst.msk [vmem:[%s8702_s7 + $0x58] sm:$0xff] %vm486_vm3, %v7347_v43  ;;  %v7355_v5 = vpop.permute.xlu0 %2529  ;;  %5873 = vmatprep.subr.bf16.mxu0 %v6466_v22 }
 0x8ee   :  { %5030 = vst.msk [vmem:[%s8702_s7 + $0x50] sm:$0xff] %vm486_vm3, %v7355_v5  ;;  %5599 = vmatprep.mubr.msk.f32.mxu0 %vm486_vm3, %v7355_v5 }
 0x8ef   :  { %5600 = vmatmul.mubr.msk.f32.gmra.mrb[30].mxu0 %vm486_vm3, %v7347_v43 }
 0x8f0   :  { %v7367_v52 = vpop.permute.xlu1 %2548  ;;  %5875 = vmatpush3.bf16.msra.mxu0 %v6466_v22 }
 0x8f1   :  { %5033 = vst.msk [vmem:[%s8703_s8 + $0xa8] sm:$0xff] %vm486_vm3, %v7367_v52  ;;  %v7375_v27 = vpop.permute.xlu0 %2546  ;;  %5885 = vmatprep.subr.bf16.mxu0 %v6462_v21 }
 0x8f2   :  { %5032 = vst.msk [vmem:[%s8703_s8 + $0xa0] sm:$0xff] %vm486_vm3, %v7375_v27  ;;  %5602 = vmatprep.mubr.msk.f32.mxu0 %vm486_vm3, %v7375_v27 }
 0x8f3   :  { %5603 = vmatmul.mubr.msk.f32.gmra.mrb[32].mxu0 %vm486_vm3, %v7367_v52 }
 0x8f7   :  { %v7387_v17 = vpop.permute.xlu1 %2552 }
 0x8f8   :  { %5035 = vst.msk [vmem:[%s8703_s8 + $0xb8] sm:$0xff] %vm486_vm3, %v7387_v17  ;;  %v7394_v3 = vpop.permute.xlu0 %2550 }
 0x8f9   :  { %5034 = vst.msk [vmem:[%s8703_s8 + $0xb0] sm:$0xff] %vm486_vm3, %v7394_v3  ;;  %5605 = vmatprep.mubr.msk.f32.mxu0 %vm486_vm3, %v7394_v3 }
 0x8fa   :  { %5606 = vmatmul.mubr.msk.f32.gmra.mrb[34].mxu0 %vm486_vm3, %v7387_v17 }
 0x908   :  { %v707_v19 = vpop.permute.xlu1 %706 }
 0x909   :  { %v740_v20 = vmul.f32 %v7124_v57, %v707_v19  ;;  %v765_v23 = vmul.f32 %v7130_v31, %v707_v19  ;;  %v702_v42 = vpop.permute.xlu0 %701 }
 0x90a   :  { %v739_v30 = vmul.f32 %v7124_v57, %v702_v42  ;;  %v764_v7 = vmul.f32 %v7130_v31, %v702_v42 }
 0x90b   :  { %v748_v32 = vadd.f32 %v7138_v40, %v740_v20  ;;  %v773_v8 = vadd.f32 %v7144_v36, %v765_v23 }
 0x90c   :  { %v747_v48 = vadd.f32 %v7138_v40, %v739_v30  ;;  %v772_v61 = vadd.f32 %v7144_v36, %v764_v7  ;;  %v712_v4 = vpop.permute.xlu1 %711 }
 0x90d   :  { %757 = vst.msk [vmem:[#allocation3 + $0xc8] sm:$0xff] %vm453_vm2, %v748_v32  ;;  %v741_v54 = vmul.f32 %v7124_v57, %v712_v4  ;;  %v766_v55 = vmul.f32 %v7130_v31, %v712_v4  ;;  %v717_v38 = vpop.permute.xlu0 %716 }
 0x90e   :  { %782 = vst.msk [vmem:[#allocation4 + $0xc8] sm:$0xff] %vm486_vm3, %v773_v8  ;;  %781 = vst.msk [vmem:[#allocation4 + $0xc0] sm:$0xff] %vm486_vm3, %v772_v61  ;;  %v742_v50 = vmul.f32 %v7124_v57, %v717_v38  ;;  %v767_v47 = vmul.f32 %v7130_v31, %v717_v38 }
 0x90f   :  { %756 = vst.msk [vmem:[#allocation3 + $0xc0] sm:$0xff] %vm453_vm2, %v747_v48  ;;  %v749_v37 = vadd.f32 %v7138_v40, %v741_v54  ;;  %v774_v26 = vadd.f32 %v7144_v36, %v766_v55 }
 0x910   :  { %v750_v11 = vadd.f32 %v7138_v40, %v742_v50  ;;  %v775_v12 = vadd.f32 %v7144_v36, %v767_v47  ;;  %v722_v13 = vpop.permute.xlu1 %721 }
 0x911   :  { %758 = vst.msk [vmem:[#allocation3 + $0xd0] sm:$0xff] %vm453_vm2, %v749_v37  ;;  %v743_v44 = vmul.f32 %v7124_v57, %v722_v13  ;;  %v768_v35 = vmul.f32 %v7130_v31, %v722_v13  ;;  %v727_v16 = vpop.permute.xlu0 %726 }
 0x912   :  { %783 = vst.msk [vmem:[#allocation4 + $0xd0] sm:$0xff] %vm486_vm3, %v774_v26  ;;  %784 = vst.msk [vmem:[#allocation4 + $0xd8] sm:$0xff] %vm486_vm3, %v775_v12  ;;  %v744_v29 = vmul.f32 %v7124_v57, %v727_v16  ;;  %v769_v24 = vmul.f32 %v7130_v31, %v727_v16 }
 0x913   :  { %759 = vst.msk [vmem:[#allocation3 + $0xd8] sm:$0xff] %vm453_vm2, %v750_v11  ;;  %v751_v14 = vadd.f32 %v7138_v40, %v743_v44  ;;  %v776_v25 = vadd.f32 %v7144_v36, %v768_v35 }
 0x914   :  { %v752_v56 = vadd.f32 %v7138_v40, %v744_v29  ;;  %v777_v58 = vadd.f32 %v7144_v36, %v769_v24  ;;  %v732_v28 = vpop.permute.xlu1 %731  ;;  %v2564_v48 = vld [vmem:[#allocation3 + $0xc8] sm:$0xff] }
 0x915   :  { %760 = vst.msk [vmem:[#allocation3 + $0xe0] sm:$0xff] %vm453_vm2, %v751_v14  ;;  %v745_v45 = vmul.f32 %v7124_v57, %v732_v28  ;;  %v770_v19 = vmul.f32 %v7130_v31, %v732_v28  ;;  %v737_v20 = vpop.permute.xlu0 %736 }
 0x916   :  { %785 = vst.msk [vmem:[#allocation4 + $0xe0] sm:$0xff] %vm486_vm3, %v776_v25  ;;  %786 = vst.msk [vmem:[#allocation4 + $0xe8] sm:$0xff] %vm486_vm3, %v777_v58  ;;  %v746_v23 = vmul.f32 %v7124_v57, %v737_v20  ;;  %v771_v42 = vmul.f32 %v7130_v31, %v737_v20  ;;  %v2563_v31 = vld [vmem:[#allocation3 + $0xc0] sm:$0xff] }
 0x917   :  { %761 = vst.msk [vmem:[#allocation3 + $0xe8] sm:$0xff] %vm453_vm2, %v752_v56  ;;  %v753_v30 = vadd.f32 %v7138_v40, %v745_v45  ;;  %v778_v7 = vadd.f32 %v7144_v36, %v770_v19 }
 0x918   :  { %v754_v32 = vadd.f32 %v7138_v40, %v746_v23  ;;  %v779_v8 = vadd.f32 %v7144_v36, %v771_v42  ;;  %v2565_v47 = vld [vmem:[#allocation3 + $0xd0] sm:$0xff] }
 0x919   :  { %762 = vst.msk [vmem:[#allocation3 + $0xf0] sm:$0xff] %vm453_vm2, %v753_v30 }
 0x91a   :  { %787 = vst.msk [vmem:[#allocation4 + $0xf0] sm:$0xff] %vm486_vm3, %v778_v7  ;;  %788 = vst.msk [vmem:[#allocation4 + $0xf8] sm:$0xff] %vm486_vm3, %v779_v8  ;;  %v2566_v50 = vld [vmem:[#allocation3 + $0xd8] sm:$0xff] }
 0x91b   :  { %763 = vst.msk [vmem:[#allocation3 + $0xf8] sm:$0xff] %vm453_vm2, %v754_v32 }
 0x91c   :  { %v2567_v16 = vld [vmem:[#allocation3 + $0xe0] sm:$0xff] }
 0x91e   :  { %v2568_v13 = vld [vmem:[#allocation3 + $0xe8] sm:$0xff] }
 0x920   :  { %v2569_v23 = vld [vmem:[#allocation3 + $0xf0] sm:$0xff] }
 0x922   :  { %v2570_v58 = vld [vmem:[#allocation3 + $0xf8] sm:$0xff] }
 0x9be   :  { %v5598_v57 = vpop.f32.mrb[28].mxu0 }
 0x9bf   :  { %v2693_v61 = vadd.f32 %v5598_v57, %v2564_v48  ;;  %v2653_v4 = vpop.f32.mrb[29].mxu0 }
 0x9c0   :  { %v2692_v54 = vadd.f32 %v2653_v4, %v2563_v31 }
 0x9c1   :  { %v5045_v55 = vmul.f32 -1.442695, %v2693_v61 }
 0x9c2   :  { %v5044_v38 = vmul.f32 -1.442695, %v2692_v54  ;;  %v5601_v40 = vpop.f32.mrb[30].mxu0 }
 0x9c3   :  { %6103 = vpow2.f32 %v5045_v55  ;;  %v2695_v36 = vadd.f32 %v5601_v40, %v2566_v50  ;;  %v2663_v37 = vpop.f32.mrb[31].mxu0 }
 0x9c4   :  { %6105 = vpow2.f32 %v5044_v38  ;;  %v2694_v26 = vadd.f32 %v2663_v37, %v2565_v47 }
 0x9c5   :  { %v5047_v11 = vmul.f32 -1.442695, %v2695_v36 }
 0x9c6   :  { %v5046_v12 = vmul.f32 -1.442695, %v2694_v26  ;;  %v5604_v44 = vpop.f32.mrb[32].mxu0 }
 0x9c7   :  { %6107 = vpow2.f32 %v5047_v11  ;;  %v2697_v35 = vadd.f32 %v5604_v44, %v2568_v13  ;;  %v2673_v29 = vpop.f32.mrb[33].mxu0 }
 0x9c8   :  { %6109 = vpow2.f32 %v5046_v12  ;;  %v2696_v24 = vadd.f32 %v2673_v29, %v2567_v16 }
 0x9c9   :  { %v5049_v14 = vmul.f32 -1.442695, %v2697_v35 }
 0x9ca   :  { %v5048_v25 = vmul.f32 -1.442695, %v2696_v24 }
 0x9cb   :  { %6111 = vpow2.f32 %v5049_v14 }
 0x9cc   :  { %6113 = vpow2.f32 %v5048_v25 }
 0x9cd   :  { %v6104_v56 = vpop.eup %6103  ;;  %v5607_v28 = vpop.f32.mrb[34].mxu0 }
 0x9ce   :  { %v6106_v45 = vpop.eup %6105  ;;  %v2725_v19 = vadd.f32 1.0, %v6104_v56  ;;  %v2699_v20 = vadd.f32 %v5607_v28, %v2570_v58  ;;  %v2683_v42 = vpop.f32.mrb[35].mxu0  ;;  %v2748_v58 = vld [vmem:[#allocation4 + $0xc0] sm:$0xff] }
 0x9cf   :  { %v2724_v30 = vadd.f32 1.0, %v6106_v45  ;;  %v2698_v7 = vadd.f32 %v2683_v42, %v2569_v23  ;;  %v2750_v42 = vld [vmem:[#allocation4 + $0xd0] sm:$0xff] }
 0x9d0   :  { %6115 = vrcp.f32 %v2725_v19  ;;  %v5051_v32 = vmul.f32 -1.442695, %v2699_v20  ;;  %v2751_v19 = vld [vmem:[#allocation4 + $0xd8] sm:$0xff] }
 0x9d1   :  { %v6108_v8 = vpop.eup %6107  ;;  %6117 = vrcp.f32 %v2724_v30  ;;  %v5050_v48 = vmul.f32 -1.442695, %v2698_v7 }
 0x9d2   :  { %v6110_v57 = vpop.eup %6109  ;;  %v2727_v61 = vadd.f32 1.0, %v6108_v8  ;;  %6119 = vpow2.f32 %v5051_v32  ;;  %v2752_v8 = vld [vmem:[#allocation4 + $0xe0] sm:$0xff] }
 0x9d3   :  { %v2726_v31 = vadd.f32 1.0, %v6110_v57  ;;  %6121 = vpow2.f32 %v5050_v48 }
 0x9d4   :  { %6123 = vrcp.f32 %v2727_v61 }
 0x9d5   :  { %v6112_v4 = vpop.eup %6111  ;;  %6125 = vrcp.f32 %v2726_v31 }
 0x9d6   :  { %v6114_v54 = vpop.eup %6113  ;;  %v2729_v55 = vadd.f32 1.0, %v6112_v4  ;;  %v2755_v4 = vld [vmem:[#allocation4 + $0xf8] sm:$0xff] }
 0x9d7   :  { %v2728_v38 = vadd.f32 1.0, %v6114_v54 }
 0x9d8   :  { %6127 = vrcp.f32 %v2729_v55 }
 0x9d9   :  { %6129 = vrcp.f32 %v2728_v38  ;;  %v2754_v38 = vld [vmem:[#allocation4 + $0xf0] sm:$0xff] }
 0x9da   :  { %v7453_v50 = vpop.eup %6115 }
 0x9db   :  { %v7455_v40 = vpop.eup %6117  ;;  %v2757_v11 = vmul.f32 %v7453_v50, %v7329_v33 }
 0x9dc   :  { %v6120_v36 = vpop.eup %6119  ;;  %v2756_v47 = vmul.f32 %v7455_v40, %v7336_v6 }
 0x9dd   :  { %v6122_v37 = vpop.eup %6121  ;;  %v2731_v26 = vadd.f32 1.0, %v6120_v36 }
 0x9de   :  { %v7461_v12 = vpop.eup %6123  ;;  %v2730_v13 = vadd.f32 1.0, %v6122_v37  ;;  %5616 = vmatprep.mubr.msk.f32.mxu1 %vm486_vm3, %v2756_v47 }
 0x9df   :  { %v7464_v44 = vpop.eup %6125  ;;  %6131 = vrcp.f32 %v2731_v26  ;;  %5617 = vmatmul.mubr.msk.f32.vlgmr.msra.gmra.mrb[28].mxu1 %vm486_vm3, %v2757_v11  ;;  %v2759_v6 = vmul.f32 %v7461_v12, %v7347_v43  ;;  %v2912_v1 = vmul.f32 %v7461_v12, %v5023_v34 }
 0x9e0   :  { %6133 = vrcp.f32 %v2730_v13  ;;  %v2758_v35 = vmul.f32 %v7464_v44, %v7355_v5  ;;  %5879 = vmatpush3.bf16.msra.mxu1 %v6534_v60 }
 0x9e1   :  { %5881 = vmatprep.subr.bf16.mxu1 %v6544_v63 }
 0x9e2   :  { %v7473_v33 = vpop.eup %6127  ;;  %5619 = vmatprep.mubr.msk.f32.mxu1 %vm486_vm3, %v2758_v35  ;;  %v6362_v35 = vmov 4  }
 0x9e3   :  { %v7476_v16 = vpop.eup %6129  ;;  %5620 = vmatmul.mubr.msk.f32.gmra.mrb[30].mxu1 %vm486_vm3, %v2759_v6  ;;  %v2761_v5 = vmul.f32 %v7473_v33, %v7367_v52  ;;  %v2749_v52 = vld [vmem:[#allocation4 + $0xc8] sm:$0xff]  ;;  %5952 = vset.pattern.permute.xlu0 %v6362_v35  ;;  %v2922_v59 = vsub.f32 1.0, %v7473_v33 }
 0x9e4   :  { %v2760_v29 = vmul.f32 %v7476_v16, %v7375_v27  ;;  %5883 = vmatpush3.bf16.msra.mxu1 %v6544_v63  ;;  %5951 = vset.pattern.permute.xlu1 %v6362_v35  ;;  %v2921_v39 = vsub.f32 1.0, %v7476_v16 }
 0x9e5   :  { %5893 = vmatprep.subr.bf16.mxu1 %v6534_v60 }
 0x9e6   :  { %5622 = vmatprep.mubr.msk.f32.mxu1 %vm486_vm3, %v2760_v29 }
 0x9e7   :  { %5623 = vmatmul.mubr.msk.f32.gmra.mrb[32].mxu1 %vm486_vm3, %v2761_v5  ;;  %v2918_v5 = vsub.f32 1.0, %v7453_v50 }
 0x9e9   :  { %v7487_v43 = vpop.eup %6131 }
 0x9ea   :  { %v7489_v24 = vpop.eup %6133  ;;  %v2763_v27 = vmul.f32 %v7487_v43, %v7387_v17  ;;  %v2753_v17 = vld [vmem:[#allocation4 + $0xe8] sm:$0xff]  ;;  %v2924_v0 = vsub.f32 1.0, %v7487_v43 }
 0x9eb   :  { %v2762_v14 = vmul.f32 %v7489_v24, %v7394_v3 }
 0x9ed   :  { %5625 = vmatprep.mubr.msk.f32.mxu1 %vm486_vm3, %v2762_v14 }
 0x9ee   :  { %5626 = vmatmul.mubr.msk.f32.gmra.mrb[34].mxu1 %vm486_vm3, %v2763_v27  ;;  %v2917_v27 = vsub.f32 1.0, %v7455_v40 }
 0xab2   :  { %v5618_v25 = vpop.f32.mrb[28].mxu1 }
 0xab3   :  { %v2894_v56 = vadd.f32 %v5618_v25, %v2749_v52  ;;  %v2854_v28 = vpop.f32.mrb[29].mxu1  ;;  %v2910_v52 = vmul.f32 %v7453_v50, %v5021_v9 }
 0xab4   :  { %v2893_v45 = vadd.f32 %v2854_v28, %v2748_v58  ;;  %v2909_v58 = vmul.f32 %v7455_v40, %v5020_v53  ;;  %v2911_v53 = vmul.f32 %v7464_v44, %v5022_v2  ;;  %v2914_v2 = vmul.f32 %v7473_v33, %v5025_v49 }
 0xab5   :  { %6135 = vtanh.f32 %v2894_v56 }
 0xab6   :  { %6137 = vtanh.f32 %v2893_v45  ;;  %v5621_v20 = vpop.f32.mrb[30].mxu1 }
 0xab7   :  { %v2896_v23 = vadd.f32 %v5621_v20, %v2751_v19  ;;  %v2864_v3 = vpop.f32.mrb[31].mxu1  ;;  %v2920_v19 = vsub.f32 1.0, %v7461_v12 }
 0xab8   :  { %v2895_v30 = vadd.f32 %v2864_v3, %v2750_v42  ;;  %v2919_v42 = vsub.f32 1.0, %v7464_v44 }
 0xab9   :  { %6139 = vtanh.f32 %v2896_v23 }
 0xaba   :  { %6141 = vtanh.f32 %v2895_v30  ;;  %v5624_v7 = vpop.f32.mrb[32].mxu1 }
 0xabb   :  { %v2898_v32 = vadd.f32 %v5624_v7, %v2753_v17  ;;  %v2874_v48 = vpop.f32.mrb[33].mxu1 }
 0xabc   :  { %v2897_v57 = vadd.f32 %v2874_v48, %v2752_v8 }
 0xabd   :  { %6143 = vtanh.f32 %v2898_v32  ;;  %v2913_v32 = vmul.f32 %v7476_v16, %v5024_v51  ;;  %v2923_v16 = vsub.f32 1.0, %v7489_v24 }
 0xabe   :  { %6145 = vtanh.f32 %v2897_v57 }
 0xabf   :  { %v6136_v61 = vpop.eup %6135 }
 0xac0   :  { %v6138_v31 = vpop.eup %6137  ;;  %2935 = vrot.lane.b32.xlu0 %v6136_v61, %s6357_s26  ;;  %v2916_v61 = vmul.f32 %v7487_v43, %v5027_v10  ;;  %v7588_v10 = vld [vmem:[#allocation2] sm:$0xff]  ;;  %v7594_v43 = vld [vmem:[#allocation2 + $0x10] sm:$0xff] }
 0xac1   :  { %v5627_v54 = vpop.f32.mrb[34].mxu1  ;;  %2933 = vrot.lane.b32.xlu1 %v6138_v31, %s6357_s26 }
 0xac2   :  { %v2900_v55 = vadd.f32 %v5627_v54, %v2755_v4  ;;  %v2884_v36 = vpop.f32.mrb[35].mxu1  ;;  %v2915_v54 = vmul.f32 %v7489_v24, %v5026_v15  ;;  %v7591_v15 = vld [vmem:[#allocation2 + $0x20] sm:$0xff]  ;;  %v7597_v24 = vld [vmem:[#allocation2 + $0x30] sm:$0xff] }
 0xac3   :  { %v6140_v47 = vpop.eup %6139  ;;  %v2899_v37 = vadd.f32 %v2884_v36, %v2754_v38 }
 0xac4   :  { %v6142_v26 = vpop.eup %6141  ;;  %6147 = vtanh.f32 %v2900_v55  ;;  %2939 = vrot.lane.b32.xlu0 %v6140_v47, %s6357_s26 }
 0xac5   :  { %6149 = vtanh.f32 %v2899_v37  ;;  %2937 = vrot.lane.b32.xlu1 %v6142_v26, %s6357_s26  ;;  %v7600_v37 = vld [vmem:[#allocation2 + $0x18] sm:$0xff]  ;;  %v7603_v26 = vld [vmem:[#allocation2 + $0x28] sm:$0xff] }
 0xac7   :  { %v6144_v11 = vpop.eup %6143 }
 0xac8   :  { %v6146_v13 = vpop.eup %6145  ;;  %2943 = vrot.lane.b32.xlu0 %v6144_v11, %s6357_s26  ;;  %v7606_v11 = vld [vmem:[#allocation2 + $0x38] sm:$0xff] }
 0xac9   :  { %2941 = vrot.lane.b32.xlu1 %v6146_v13, %s6357_s26 }
 0xace   :  { %v6148_v6 = vpop.eup %6147 }
 0xacf   :  { %v6150_v29 = vpop.eup %6149  ;;  %2947 = vrot.lane.b32.xlu0 %v6148_v6, %s6357_s26 }
 0xad0   :  { %2945 = vrot.lane.b32.xlu1 %v6150_v29, %s6357_s26 }
 0xb32   :  { %v2936_v14 = vpop.permute.xlu0 %2935 }
 0xb33   :  { %v2958_v25 = vmul.f32 %v2936_v14, %v2918_v5  ;;  %v2934_v56 = vpop.permute.xlu1 %2933 }
 0xb34   :  { %v2957_v28 = vmul.f32 %v2934_v56, %v2917_v27  ;;  %v7688_v56 = vld [vmem:[%s8700_s3] ss:$0 sm:$0xff] }
 0xb35   :  { %v7513_v45 = vadd.f32 %v2958_v25, %v2910_v52 }
 0xb36   :  { %v7516_v20 = vadd.f32 %v2957_v28, %v2909_v58  ;;  %v2940_v23 = vpop.permute.xlu0 %2939  ;;  %v7694_v28 = vld [vmem:[%s8701_s5] ss:$0 sm:$0xff] }
 0xb37   :  { %v2960_v9 = vmul.f32 %v2940_v23, %v2920_v19  ;;  %v2938_v50 = vpop.permute.xlu1 %2937  ;;  %v5061_v62 = vclamps-f32 %v7513_v45, 10000.0 }
 0xb38   :  { %v2959_v40 = vmul.f32 %v2938_v50, %v2919_v42  ;;  %v5060_v3 = vclamps-f32 %v7516_v20, 10000.0 }
 0xb39   :  { %v7527_v30 = vadd.f32 %v2960_v9, %v2912_v1  ;;  %2995 = vrot.lane.b32.xlu0 %v5061_v62, %s6359_s27  ;;  %v7702_v9 = vld [vmem:[%s8700_s3 + $0x1] ss:$0 sm:$0xff] }
 0xb3a   :  { %v7533_v34 = vadd.f32 %v2959_v40, %v2911_v53  ;;  %v2944_v12 = vpop.permute.xlu0 %2943  ;;  %2993 = vrot.lane.b32.xlu1 %v5060_v3, %s6359_s27  ;;  %v7708_v53 = vld [vmem:[%s8701_s5 + $0x1] ss:$0 sm:$0xff] }
 0xb3b   :  { %v2962_v44 = vmul.f32 %v2944_v12, %v2922_v59  ;;  %v2942_v17 = vpop.permute.xlu1 %2941  ;;  %v5063_v7 = vclamps-f32 %v7527_v30, 10000.0 }
 0xb3c   :  { %v2961_v8 = vmul.f32 %v2942_v17, %v2921_v39  ;;  %v5062_v48 = vclamps-f32 %v7533_v34, 10000.0 }
 0xb3d   :  { %v7547_v57 = vadd.f32 %v2962_v44, %v2914_v2  ;;  %2999 = vrot.lane.b32.xlu0 %v5063_v7, %s6359_s27 }
 0xb3e   :  { %v7552_v18 = vadd.f32 %v2961_v8, %v2913_v32  ;;  %2997 = vrot.lane.b32.xlu1 %v5062_v48, %s6359_s27 }
 0xb3f   :  { %v5065_v49 = vclamps-f32 %v7547_v57, 10000.0 }
 0xb40   :  { %v5064_v51 = vclamps-f32 %v7552_v18, 10000.0 }
 0xb41   :  { %v2948_v33 = vpop.permute.xlu0 %2947  ;;  %3016 = vrot.lane.b32.xlu0 %v5065_v49, %s6359_s27 }
 0xb42   :  { %v2964_v31 = vmul.f32 %v2948_v33, %v2924_v0  ;;  %v2946_v4 = vpop.permute.xlu1 %2945  ;;  %3014 = vrot.lane.b32.xlu1 %v5064_v51, %s6359_s27 }
 0xb43   :  { %v2963_v55 = vmul.f32 %v2946_v4, %v2923_v16 }
 0xb44   :  { %v7573_v38 = vadd.f32 %v2964_v31, %v2916_v61 }
 0xb45   :  { %v7575_v36 = vadd.f32 %v2963_v55, %v2915_v54 }
 0xb46   :  { %v5067_v47 = vclamps-f32 %v7573_v38, 10000.0 }
 0xb47   :  { %v5066_v41 = vclamps-f32 %v7575_v36, 10000.0 }
 0xb48   :  { %3020 = vrot.lane.b32.xlu0 %v5067_v47, %s6359_s27 }
 0xb49   :  { %3018 = vrot.lane.b32.xlu1 %v5066_v41, %s6359_s27 }
 0xb4c   :  { %804 = vperm.xlu0 %5952, %v7585_v46  }
 0xb4d   :  { %799 = vperm.xlu1 %5951, %v7588_v10  }
 0xb50   :  { %819 = vperm.xlu0 %5952, %v7591_v15  }
 0xb51   :  { %809 = vperm.xlu1 %5951, %v7594_v43  }
 0xb54   :  { %829 = vperm.xlu0 %5952, %v7597_v24  }
 0xb55   :  { %814 = vperm.xlu1 %5951, %v7600_v37  }
 0xb59   :  { %824 = vperm.xlu1 %5951, %v7603_v26  }
 0xb5d   :  { %834 = vperm.xlu1 %5951, %v7606_v11  }
 0xbab   :  { %v7609_v13 = vpop.permute.xlu0 %2995 }
 0xbac   :  { %5069 = vst.msk [vmem:[%s8702_s7 + $0x68] sm:$0xff] %vm486_vm3, %v7609_v13  ;;  %v7616_v35 = vpop.permute.xlu1 %2993 }
 0xbad   :  { %5068 = vst.msk [vmem:[%s8702_s7 + $0x60] sm:$0xff] %vm486_vm3, %v7616_v35  ;;  %5636 = vmatprep.mubr.msk.f32.mxu0 %vm486_vm3, %v7616_v35 }
 0xbae   :  { %5637 = vmatmul.mubr.msk.f32.vlgmr.msra.gmra.mrb[36].mxu0 %vm486_vm3, %v7609_v13 }
 0xbaf   :  { %v7627_v6 = vpop.permute.xlu0 %2999  ;;  %5887 = vmatpush3.bf16.msra.mxu0 %v6462_v21 }
 0xbb0   :  { %5071 = vst.msk [vmem:[%s8702_s7 + $0x78] sm:$0xff] %vm486_vm3, %v7627_v6  ;;  %v7635_v29 = vpop.permute.xlu1 %2997  ;;  %5889 = vmatprep.subr.bf16.mxu0 %v6466_v22 }
 0xbb1   :  { %5070 = vst.msk [vmem:[%s8702_s7 + $0x70] sm:$0xff] %vm486_vm3, %v7635_v29  ;;  %5639 = vmatprep.mubr.msk.f32.mxu0 %vm486_vm3, %v7635_v29 }
 0xbb2   :  { %5640 = vmatmul.mubr.msk.f32.gmra.mrb[38].mxu0 %vm486_vm3, %v7627_v6 }
 0xbb3   :  { %v7647_v5 = vpop.permute.xlu0 %3016  ;;  %5891 = vmatpush3.bf16.msra.mxu0 %v6466_v22 }
 0xbb4   :  { %5073 = vst.msk [vmem:[%s8703_s8 + $0x88] sm:$0xff] %vm486_vm3, %v7647_v5  ;;  %v7655_v14 = vpop.permute.xlu1 %3014  ;;  %5901 = vmatprep.subr.bf16.mxu0 %v6462_v21 }
 0xbb5   :  { %5072 = vst.msk [vmem:[%s8703_s8 + $0x80] sm:$0xff] %vm486_vm3, %v7655_v14  ;;  %5642 = vmatprep.mubr.msk.f32.mxu0 %vm486_vm3, %v7655_v14 }
 0xbb6   :  { %5643 = vmatmul.mubr.msk.f32.gmra.mrb[40].mxu0 %vm486_vm3, %v7647_v5 }
 0xbba   :  { %v7667_v27 = vpop.permute.xlu0 %3020 }
 0xbbb   :  { %5075 = vst.msk [vmem:[%s8703_s8 + $0x98] sm:$0xff] %vm486_vm3, %v7667_v27  ;;  %v7674_v52 = vpop.permute.xlu1 %3018 }
 0xbbc   :  { %5074 = vst.msk [vmem:[%s8703_s8 + $0x90] sm:$0xff] %vm486_vm3, %v7674_v52  ;;  %5645 = vmatprep.mubr.msk.f32.mxu0 %vm486_vm3, %v7674_v52 }
 0xbbd   :  { %5646 = vmatmul.mubr.msk.f32.gmra.mrb[42].mxu0 %vm486_vm3, %v7667_v27 }
 0xbcb   :  { %v805_v25 = vpop.permute.xlu0 %804 }
 0xbcc   :  { %v838_v58 = vmul.f32 %v7688_v56, %v805_v25  ;;  %v863_v19 = vmul.f32 %v7694_v28, %v805_v25  ;;  %v800_v23 = vpop.permute.xlu1 %799 }
 0xbcd   :  { %v837_v42 = vmul.f32 %v7688_v56, %v800_v23  ;;  %v862_v1 = vmul.f32 %v7694_v28, %v800_v23 }
 0xbce   :  { %v846_v50 = vadd.f32 %v7702_v9, %v838_v58  ;;  %v871_v40 = vadd.f32 %v7708_v53, %v863_v19 }
 0xbcf   :  { %v845_v59 = vadd.f32 %v7702_v9, %v837_v42  ;;  %v870_v12 = vadd.f32 %v7708_v53, %v862_v1  ;;  %v820_v39 = vpop.permute.xlu0 %819 }
 0xbd0   :  { %855 = vst.msk [vmem:[#allocation3 + $0x108] sm:$0xff] %vm453_vm2, %v846_v50  ;;  %v841_v2 = vmul.f32 %v7688_v56, %v820_v39  ;;  %v866_v44 = vmul.f32 %v7694_v28, %v820_v39  ;;  %v810_v17 = vpop.permute.xlu1 %809 }
 0xbd1   :  { %880 = vst.msk [vmem:[#allocation4 + $0x108] sm:$0xff] %vm486_vm3, %v871_v40  ;;  %879 = vst.msk [vmem:[#allocation4 + $0x100] sm:$0xff] %vm486_vm3, %v870_v12  ;;  %v839_v32 = vmul.f32 %v7688_v56, %v810_v17  ;;  %v864_v8 = vmul.f32 %v7694_v28, %v810_v17 }
 0xbd2   :  { %854 = vst.msk [vmem:[#allocation3 + $0x100] sm:$0xff] %vm453_vm2, %v845_v59  ;;  %v849_v0 = vadd.f32 %v7702_v9, %v841_v2  ;;  %v874_v33 = vadd.f32 %v7708_v53, %v866_v44 }
 0xbd3   :  { %v847_v16 = vadd.f32 %v7702_v9, %v839_v32  ;;  %v872_v61 = vadd.f32 %v7708_v53, %v864_v8  ;;  %v830_v31 = vpop.permute.xlu0 %829 }
 0xbd4   :  { %858 = vst.msk [vmem:[#allocation3 + $0x120] sm:$0xff] %vm453_vm2, %v849_v0  ;;  %v843_v4 = vmul.f32 %v7688_v56, %v830_v31  ;;  %v868_v54 = vmul.f32 %v7694_v28, %v830_v31  ;;  %v815_v55 = vpop.permute.xlu1 %814 }
 0xbd5   :  { %883 = vst.msk [vmem:[#allocation4 + $0x120] sm:$0xff] %vm486_vm3, %v874_v33  ;;  %881 = vst.msk [vmem:[#allocation4 + $0x110] sm:$0xff] %vm486_vm3, %v872_v61  ;;  %v840_v25 = vmul.f32 %v7688_v56, %v815_v55  ;;  %v865_v58 = vmul.f32 %v7694_v28, %v815_v55 }
 0xbd6   :  { %856 = vst.msk [vmem:[#allocation3 + $0x110] sm:$0xff] %vm453_vm2, %v847_v16  ;;  %v851_v19 = vadd.f32 %v7702_v9, %v843_v4  ;;  %v876_v23 = vadd.f32 %v7708_v53, %v868_v54 }
 0xbd7   :  { %v848_v42 = vadd.f32 %v7702_v9, %v840_v25  ;;  %v873_v1 = vadd.f32 %v7708_v53, %v865_v58  ;;  %v3032_v0 = vld [vmem:[#allocation3 + $0x108] sm:$0xff] }
 0xbd8   :  { %860 = vst.msk [vmem:[#allocation3 + $0x130] sm:$0xff] %vm453_vm2, %v851_v19  ;;  %v825_v50 = vpop.permute.xlu1 %824 }
 0xbd9   :  { %885 = vst.msk [vmem:[#allocation4 + $0x130] sm:$0xff] %vm486_vm3, %v876_v23  ;;  %882 = vst.msk [vmem:[#allocation4 + $0x118] sm:$0xff] %vm486_vm3, %v873_v1  ;;  %v842_v40 = vmul.f32 %v7688_v56, %v825_v50  ;;  %v867_v59 = vmul.f32 %v7694_v28, %v825_v50  ;;  %v3031_v61 = vld [vmem:[#allocation3 + $0x100] sm:$0xff] }
 0xbda   :  { %857 = vst.msk [vmem:[#allocation3 + $0x118] sm:$0xff] %vm453_vm2, %v848_v42 }
 0xbdb   :  { %v850_v12 = vadd.f32 %v7702_v9, %v842_v40  ;;  %v875_v39 = vadd.f32 %v7708_v53, %v867_v59 }
 0xbdc   :  { %v835_v2 = vpop.permute.xlu1 %834 }
 0xbdd   :  { %859 = vst.msk [vmem:[#allocation3 + $0x128] sm:$0xff] %vm453_vm2, %v850_v12  ;;  %v844_v44 = vmul.f32 %v7688_v56, %v835_v2  ;;  %v869_v17 = vmul.f32 %v7694_v28, %v835_v2  ;;  %v3033_v23 = vld [vmem:[#allocation3 + $0x110] sm:$0xff]  ;;  %v3035_v2 = vld [vmem:[#allocation3 + $0x120] sm:$0xff] }
 0xbde   :  { %884 = vst.msk [vmem:[#allocation4 + $0x128] sm:$0xff] %vm486_vm3, %v875_v39 }
 0xbdf   :  { %v852_v32 = vadd.f32 %v7702_v9, %v844_v44  ;;  %v877_v8 = vadd.f32 %v7708_v53, %v869_v17 }
 0xbe1   :  { %861 = vst.msk [vmem:[#allocation3 + $0x138] sm:$0xff] %vm453_vm2, %v852_v32  ;;  %v3034_v25 = vld [vmem:[#allocation3 + $0x118] sm:$0xff] }
 0xbe2   :  { %886 = vst.msk [vmem:[#allocation4 + $0x138] sm:$0xff] %vm486_vm3, %v877_v8 }
 0xbe4   :  { %v3036_v59 = vld [vmem:[#allocation3 + $0x128] sm:$0xff] }
 0xc81   :  { %v5638_v33 = vpop.f32.mrb[36].mxu0 }
 0xc82   :  { %v3161_v16 = vadd.f32 %v5638_v33, %v3032_v0  ;;  %v3121_v31 = vpop.f32.mrb[37].mxu0  ;;  %v3038_v33 = vld [vmem:[#allocation3 + $0x138] sm:$0xff] }
 0xc83   :  { %v3160_v4 = vadd.f32 %v3121_v31, %v3031_v61 }
 0xc84   :  { %v5085_v54 = vmul.f32 -1.442695, %v3161_v16 }
 0xc85   :  { %v5084_v55 = vmul.f32 -1.442695, %v3160_v4  ;;  %v5641_v58 = vpop.f32.mrb[38].mxu0 }
 0xc86   :  { %6151 = vpow2.f32 %v5085_v54  ;;  %v3163_v19 = vadd.f32 %v5641_v58, %v3034_v25  ;;  %v3131_v42 = vpop.f32.mrb[39].mxu0  ;;  %v3037_v54 = vld [vmem:[#allocation3 + $0x130] sm:$0xff] }
 0xc87   :  { %6153 = vpow2.f32 %v5084_v55  ;;  %v3162_v1 = vadd.f32 %v3131_v42, %v3033_v23 }
 0xc88   :  { %v5087_v50 = vmul.f32 -1.442695, %v3163_v19 }
 0xc89   :  { %v5086_v40 = vmul.f32 -1.442695, %v3162_v1  ;;  %v5644_v12 = vpop.f32.mrb[40].mxu0 }
 0xc8a   :  { %6155 = vpow2.f32 %v5087_v50  ;;  %v3165_v39 = vadd.f32 %v5644_v12, %v3036_v59  ;;  %v3141_v44 = vpop.f32.mrb[41].mxu0 }
 0xc8b   :  { %6157 = vpow2.f32 %v5086_v40  ;;  %v3164_v17 = vadd.f32 %v3141_v44, %v3035_v2 }
 0xc8c   :  { %v5089_v32 = vmul.f32 -1.442695, %v3165_v39 }
 0xc8d   :  { %v5088_v8 = vmul.f32 -1.442695, %v3164_v17 }
 0xc8e   :  { %6159 = vpow2.f32 %v5089_v32 }
 0xc8f   :  { %6161 = vpow2.f32 %v5088_v8 }
 0xc90   :  { %v6152_v0 = vpop.eup %6151  ;;  %v5647_v16 = vpop.f32.mrb[42].mxu0 }
 0xc91   :  { %v6154_v61 = vpop.eup %6153  ;;  %v3193_v31 = vadd.f32 1.0, %v6152_v0  ;;  %v3167_v4 = vadd.f32 %v5647_v16, %v3038_v33  ;;  %v3151_v55 = vpop.f32.mrb[43].mxu0 }
 0xc92   :  { %v3192_v25 = vadd.f32 1.0, %v6154_v61  ;;  %v3166_v58 = vadd.f32 %v3151_v55, %v3037_v54 }
 0xc93   :  { %6163 = vrcp.f32 %v3193_v31  ;;  %v5091_v19 = vmul.f32 -1.442695, %v3167_v4 }
 0xc94   :  { %v6156_v23 = vpop.eup %6155  ;;  %6165 = vrcp.f32 %v3192_v25  ;;  %v5090_v42 = vmul.f32 -1.442695, %v3166_v58 }
 0xc95   :  { %v6158_v1 = vpop.eup %6157  ;;  %v3195_v50 = vadd.f32 1.0, %v6156_v23  ;;  %6167 = vpow2.f32 %v5091_v19 }
 0xc96   :  { %v3194_v40 = vadd.f32 1.0, %v6158_v1  ;;  %6169 = vpow2.f32 %v5090_v42  ;;  %v3216_v1 = vld [vmem:[#allocation4 + $0x100] sm:$0xff] }
 0xc97   :  { %6171 = vrcp.f32 %v3195_v50 }
 0xc98   :  { %v6160_v59 = vpop.eup %6159  ;;  %6173 = vrcp.f32 %v3194_v40 }
 0xc99   :  { %v6162_v12 = vpop.eup %6161  ;;  %v3197_v39 = vadd.f32 1.0, %v6160_v59  ;;  %v3219_v59 = vld [vmem:[#allocation4 + $0x118] sm:$0xff] }
 0xc9a   :  { %v3196_v2 = vadd.f32 1.0, %v6162_v12 }
 0xc9b   :  { %6175 = vrcp.f32 %v3197_v39 }
 0xc9c   :  { %6177 = vrcp.f32 %v3196_v2  ;;  %v3218_v2 = vld [vmem:[#allocation4 + $0x110] sm:$0xff] }
 0xc9d   :  { %v7753_v44 = vpop.eup %6163 }
 0xc9e   :  { %v7755_v17 = vpop.eup %6165  ;;  %v3225_v16 = vmul.f32 %v7753_v44, %v7609_v13 }
 0xc9f   :  { %v6168_v32 = vpop.eup %6167  ;;  %v3224_v8 = vmul.f32 %v7755_v17, %v7616_v35 }
 0xca0   :  { %v6170_v0 = vpop.eup %6169  ;;  %v3199_v33 = vadd.f32 1.0, %v6168_v32 }
 0xca1   :  { %v7761_v61 = vpop.eup %6171  ;;  %v3198_v31 = vadd.f32 1.0, %v6170_v0  ;;  %5656 = vmatprep.mubr.msk.f32.mxu1 %vm486_vm3, %v3224_v8 }
 0xca2   :  { %v7764_v4 = vpop.eup %6173  ;;  %6179 = vrcp.f32 %v3199_v33  ;;  %5657 = vmatmul.mubr.msk.f32.vlgmr.msra.gmra.mrb[36].mxu1 %vm486_vm3, %v3225_v16  ;;  %v3227_v35 = vmul.f32 %v7761_v61, %v7627_v6  ;;  %v3220_v33 = vld [vmem:[#allocation4 + $0x120] sm:$0xff] }
 0xca3   :  { %6181 = vrcp.f32 %v3198_v31  ;;  %v3226_v54 = vmul.f32 %v7764_v4, %v7635_v29  ;;  %5895 = vmatpush3.bf16.msra.mxu1 %v6534_v60 }
 0xca4   :  { %5897 = vmatprep.subr.bf16.mxu1 %v6544_v63 }
 0xca5   :  { %v7773_v13 = vpop.eup %6175  ;;  %5659 = vmatprep.mubr.msk.f32.mxu1 %vm486_vm3, %v3226_v54 }
 0xca6   :  { %v7776_v55 = vpop.eup %6177  ;;  %5660 = vmatmul.mubr.msk.f32.gmra.mrb[38].mxu1 %vm486_vm3, %v3227_v35  ;;  %v3229_v29 = vmul.f32 %v7773_v13, %v7647_v5  ;;  %v3217_v5 = vld [vmem:[#allocation4 + $0x108] sm:$0xff] }
 0xca7   :  { %v3228_v25 = vmul.f32 %v7776_v55, %v7655_v14  ;;  %5899 = vmatpush3.bf16.msra.mxu1 %v6544_v63  ;;  %v3389_v34 = vsub.f32 1.0, %v7776_v55 }
 0xca8   :  { %5909 = vmatprep.subr.bf16.mxu1 %v6534_v60 }
 0xca9   :  { %5662 = vmatprep.mubr.msk.f32.mxu1 %vm486_vm3, %v3228_v25  ;;  %v3223_v25 = vld [vmem:[#allocation4 + $0x138] sm:$0xff] }
 0xcaa   :  { %5663 = vmatmul.mubr.msk.f32.gmra.mrb[40].mxu1 %vm486_vm3, %v3229_v29 }
 0xcac   :  { %v7787_v6 = vpop.eup %6179 }
 0xcad   :  { %v7789_v58 = vpop.eup %6181  ;;  %v3231_v14 = vmul.f32 %v7787_v6, %v7667_v27  ;;  %v3221_v27 = vld [vmem:[#allocation4 + $0x128] sm:$0xff]  ;;  %v3392_v18 = vsub.f32 1.0, %v7787_v6 }
 0xcae   :  { %v3230_v19 = vmul.f32 %v7789_v58, %v7674_v52 }
 0xcb0   :  { %5665 = vmatprep.mubr.msk.f32.mxu1 %vm486_vm3, %v3230_v19 }
 0xcb1   :  { %5666 = vmatmul.mubr.msk.f32.gmra.mrb[42].mxu1 %vm486_vm3, %v3231_v14  ;;  %v3222_v14 = vld [vmem:[#allocation4 + $0x130] sm:$0xff] }
 0xd75   :  { %v5658_v23 = vpop.f32.mrb[36].mxu1 }
 0xd76   :  { %v3362_v42 = vadd.f32 %v5658_v23, %v3217_v5  ;;  %v3322_v50 = vpop.f32.mrb[37].mxu1 }
 0xd77   :  { %v3361_v40 = vadd.f32 %v3322_v50, %v3216_v1 }
 0xd78   :  { %6183 = vtanh.f32 %v3362_v42 }
 0xd79   :  { %6185 = vtanh.f32 %v3361_v40  ;;  %v5661_v12 = vpop.f32.mrb[38].mxu1 }
 0xd7a   :  { %v3364_v39 = vadd.f32 %v5661_v12, %v3219_v59  ;;  %v3332_v52 = vpop.f32.mrb[39].mxu1  ;;  %v6363_v59 = vmov 5  }
 0xd7b   :  { %v3363_v32 = vadd.f32 %v3332_v52, %v3218_v2  ;;  %5954 = vset.pattern.permute.xlu1 %v6363_v59  ;;  %5953 = vset.pattern.permute.xlu0 %v6363_v59  ;;  %v3386_v2 = vsub.f32 1.0, %v7753_v44 }
 0xd7c   :  { %6187 = vtanh.f32 %v3364_v39 }
 0xd7d   :  { %6189 = vtanh.f32 %v3363_v32  ;;  %v5664_v8 = vpop.f32.mrb[40].mxu1  ;;  %v3385_v32 = vsub.f32 1.0, %v7755_v17 }
 0xd7e   :  { %v3366_v0 = vadd.f32 %v5664_v8, %v3221_v27  ;;  %v3342_v16 = vpop.f32.mrb[41].mxu1  ;;  %v3378_v27 = vmul.f32 %v7753_v44, %v5061_v62  ;;  %v3380_v62 = vmul.f32 %v7761_v61, %v5063_v7 }
 0xd7f   :  { %v3365_v31 = vadd.f32 %v3342_v16, %v3220_v33  ;;  %v3377_v33 = vmul.f32 %v7755_v17, %v5060_v3  ;;  %v3379_v17 = vmul.f32 %v7764_v4, %v5062_v48 }
 0xd80   :  { %6191 = vtanh.f32 %v3366_v0 }
 0xd81   :  { %6193 = vtanh.f32 %v3365_v31 }
 0xd82   :  { %v6184_v54 = vpop.eup %6183 }
 0xd83   :  { %v6186_v35 = vpop.eup %6185  ;;  %3403 = vrot.lane.b32.xlu1 %v6184_v54, %s6357_s26  ;;  %v3388_v54 = vsub.f32 1.0, %v7761_v61  ;;  %v3382_v61 = vmul.f32 %v7773_v13, %v5065_v49 }
 0xd84   :  { %v5667_v29 = vpop.f32.mrb[42].mxu1  ;;  %3401 = vrot.lane.b32.xlu0 %v6186_v35, %s6357_s26 }
 0xd85   :  { %v3368_v19 = vadd.f32 %v5667_v29, %v3223_v25  ;;  %v3352_v5 = vpop.f32.mrb[43].mxu1  ;;  %v3387_v29 = vsub.f32 1.0, %v7764_v4 }
 0xd86   :  { %v6188_v23 = vpop.eup %6187  ;;  %v3367_v42 = vadd.f32 %v3352_v5, %v3222_v14  ;;  %v3390_v5 = vsub.f32 1.0, %v7773_v13  ;;  %v3391_v13 = vsub.f32 1.0, %v7789_v58 }
 0xd87   :  { %v6190_v1 = vpop.eup %6189  ;;  %6195 = vtanh.f32 %v3368_v19  ;;  %3407 = vrot.lane.b32.xlu1 %v6188_v23, %s6357_s26 }
 0xd88   :  { %6197 = vtanh.f32 %v3367_v42  ;;  %3405 = vrot.lane.b32.xlu0 %v6190_v1, %s6357_s26  ;;  %v3381_v1 = vmul.f32 %v7776_v55, %v5064_v51  ;;  %v3384_v55 = vmul.f32 %v7787_v6, %v5067_v47 }
 0xd8a   :  { %v6192_v50 = vpop.eup %6191 }
 0xd8b   :  { %v6194_v40 = vpop.eup %6193  ;;  %3411 = vrot.lane.b32.xlu1 %v6192_v50, %s6357_s26 }
 0xd8c   :  { %3409 = vrot.lane.b32.xlu0 %v6194_v40, %s6357_s26 }
 0xd91   :  { %v6196_v12 = vpop.eup %6195 }
 0xd92   :  { %v6198_v39 = vpop.eup %6197  ;;  %3415 = vrot.lane.b32.xlu1 %v6196_v12, %s6357_s26 }
 0xd93   :  { %3413 = vrot.lane.b32.xlu0 %v6198_v39, %s6357_s26 }
 0xdf5   :  { %v3404_v52 = vpop.permute.xlu1 %3403 }
 0xdf6   :  { %v3426_v8 = vmul.f32 %v3404_v52, %v3386_v2  ;;  %v3402_v0 = vpop.permute.xlu0 %3401  ;;  %v3383_v2 = vmul.f32 %v7789_v58, %v5066_v41 }
 0xdf7   :  { %v3425_v16 = vmul.f32 %v3402_v0, %v3385_v32 }
 0xdf8   :  { %v7813_v31 = vadd.f32 %v3426_v8, %v3378_v27 }
 0xdf9   :  { %v7816_v35 = vadd.f32 %v3425_v16, %v3377_v33  ;;  %v3408_v25 = vpop.permute.xlu1 %3407 }
 0xdfa   :  { %v5101_v45 = vclamps-f32 %v7813_v31, 10000.0  ;;  %v3428_v44 = vmul.f32 %v3408_v25, %v3388_v54  ;;  %v3406_v20 = vpop.permute.xlu0 %3405 }
 0xdfb   :  { %v5100_v3 = vclamps-f32 %v7816_v35, 10000.0  ;;  %v3427_v19 = vmul.f32 %v3406_v20, %v3387_v29 }
 0xdfc   :  { %v7827_v14 = vadd.f32 %v3428_v44, %v3380_v62  ;;  %3463 = vrot.lane.b32.xlu1 %v5101_v45, %s6359_s27 }
 0xdfd   :  { %v7833_v30 = vadd.f32 %v3427_v19, %v3379_v17  ;;  %3461 = vrot.lane.b32.xlu0 %v5100_v3, %s6359_s27  ;;  %v3412_v7 = vpop.permute.xlu1 %3411 }
 0xdfe   :  { %v5103_v48 = vclamps-f32 %v7827_v14, 10000.0  ;;  %v3430_v4 = vmul.f32 %v3412_v7, %v3390_v5  ;;  %v3410_v23 = vpop.permute.xlu0 %3409 }
 0xdff   :  { %v5102_v42 = vclamps-f32 %v7833_v30, 10000.0  ;;  %v3429_v50 = vmul.f32 %v3410_v23, %v3389_v34 }
 0xe00   :  { %v7847_v40 = vadd.f32 %v3430_v4, %v3382_v61  ;;  %3467 = vrot.lane.b32.xlu1 %v5103_v48, %s6359_s27 }
 0xe01   :  { %v7852_v59 = vadd.f32 %v3429_v50, %v3381_v1  ;;  %3465 = vrot.lane.b32.xlu0 %v5102_v42, %s6359_s27 }
 0xe02   :  { %v5105_v57 = vclamps-f32 %v7847_v40, 10000.0 }
 0xe03   :  { %v5104_v49 = vclamps-f32 %v7852_v59, 10000.0 }
 0xe04   :  { %v3416_v51 = vpop.permute.xlu1 %3415  ;;  %3484 = vrot.lane.b32.xlu1 %v5105_v57, %s6359_s27 }
 0xe05   :  { %v3432_v12 = vmul.f32 %v3416_v51, %v3392_v18  ;;  %v3414_v39 = vpop.permute.xlu0 %3413  ;;  %3482 = vrot.lane.b32.xlu0 %v5104_v49, %s6359_s27 }
 0xe06   :  { %v3431_v52 = vmul.f32 %v3414_v39, %v3391_v13 }
 0xe07   :  { %v7873_v32 = vadd.f32 %v3432_v12, %v3384_v55 }
 0xe08   :  { %v7875_v27 = vadd.f32 %v3431_v52, %v3383_v2 }
 0xe09   :  { %v5107_v8 = vclamps-f32 %v7873_v32, 10000.0 }
 0xe0a   :  { %v5106_v38 = vclamps-f32 %v7875_v27, 10000.0  ;;  %v8149_v27 = vld [vmem:[#allocation2 + $0x8] sm:$0xff] }
 0xe0b   :  { %3488 = vrot.lane.b32.xlu1 %v5107_v8, %s6359_s27 }
 0xe0c   :  { %3486 = vrot.lane.b32.xlu0 %v5106_v38, %s6359_s27 }
 0xe0f   :  { %902 = vperm.xlu1 %5954, %v7585_v46  }
 0xe10   :  { %897 = vperm.xlu0 %5953, %v7588_v10  }
 0xe13   :  { %907 = vperm.xlu1 %5954, %v7594_v43  }
 0xe14   :  { %912 = vperm.xlu0 %5953, %v7600_v37  }
 0xe17   :  { %917 = vperm.xlu1 %5954, %v7591_v15  }
 0xe18   :  { %922 = vperm.xlu0 %5953, %v7603_v26  }
 0xe1b   :  { %927 = vperm.xlu1 %5954, %v7597_v24  }
 0xe1c   :  { %932 = vperm.xlu0 %5953, %v7606_v11  }
 0xe6e   :  { %v7893_v36 = vpop.permute.xlu1 %3463 }
 0xe6f   :  { %5109 = vst.msk [vmem:[%s8702_s7 + $0x88] sm:$0xff] %vm486_vm3, %v7893_v36  ;;  %v7900_v47 = vpop.permute.xlu0 %3461 }
 0xe70   :  { %5108 = vst.msk [vmem:[%s8702_s7 + $0x80] sm:$0xff] %vm486_vm3, %v7900_v47  ;;  %5676 = vmatprep.mubr.msk.f32.mxu0 %vm486_vm3, %v7900_v47 }
 0xe71   :  { %5677 = vmatmul.mubr.msk.f32.vlgmr.msra.gmra.mrb[44].mxu0 %vm486_vm3, %v7893_v36 }
 0xe72   :  { %v7911_v41 = vpop.permute.xlu1 %3467  ;;  %5903 = vmatpush3.bf16.msra.mxu0 %v6462_v21 }
 0xe73   :  { %5111 = vst.msk [vmem:[%s8702_s7 + $0x98] sm:$0xff] %vm486_vm3, %v7911_v41  ;;  %v7919_v46 = vpop.permute.xlu0 %3465  ;;  %5905 = vmatprep.subr.bf16.mxu0 %v6466_v22 }
 0xe74   :  { %5110 = vst.msk [vmem:[%s8702_s7 + $0x90] sm:$0xff] %vm486_vm3, %v7919_v46  ;;  %5679 = vmatprep.mubr.msk.f32.mxu0 %vm486_vm3, %v7919_v46 }
 0xe75   :  { %5680 = vmatmul.mubr.msk.f32.gmra.mrb[46].mxu0 %vm486_vm3, %v7911_v41 }
 0xe76   :  { %v7931_v10 = vpop.permute.xlu1 %3484  ;;  %5907 = vmatpush3.bf16.msra.mxu0 %v6466_v22 }
 0xe77   :  { %5113 = vst.msk [vmem:[%s8703_s8 + $0x68] sm:$0xff] %vm486_vm3, %v7931_v10  ;;  %v7939_v15 = vpop.permute.xlu0 %3482  ;;  %5917 = vmatprep.subr.bf16.mxu0 %v6462_v21 }
 0xe78   :  { %5112 = vst.msk [vmem:[%s8703_s8 + $0x60] sm:$0xff] %vm486_vm3, %v7939_v15  ;;  %5682 = vmatprep.mubr.msk.f32.mxu0 %vm486_vm3, %v7939_v15 }
 0xe79   :  { %5683 = vmatmul.mubr.msk.f32.gmra.mrb[48].mxu0 %vm486_vm3, %v7931_v10 }
 0xe7d   :  { %v7951_v43 = vpop.permute.xlu1 %3488 }
 0xe7e   :  { %5115 = vst.msk [vmem:[%s8703_s8 + $0x78] sm:$0xff] %vm486_vm3, %v7951_v43  ;;  %v7958_v24 = vpop.permute.xlu0 %3486 }
 0xe7f   :  { %5114 = vst.msk [vmem:[%s8703_s8 + $0x70] sm:$0xff] %vm486_vm3, %v7958_v24  ;;  %5685 = vmatprep.mubr.msk.f32.mxu0 %vm486_vm3, %v7958_v24 }
 0xe80   :  { %5686 = vmatmul.mubr.msk.f32.gmra.mrb[50].mxu0 %vm486_vm3, %v7951_v43 }
 0xe8e   :  { %v903_v37 = vpop.permute.xlu1 %902 }
 0xe8f   :  { %v936_v26 = vmul.f32 %v7688_v56, %v903_v37  ;;  %v961_v11 = vmul.f32 %v7694_v28, %v903_v37  ;;  %v898_v6 = vpop.permute.xlu0 %897 }
 0xe90   :  { %v935_v58 = vmul.f32 %v7688_v56, %v898_v6  ;;  %v960_v0 = vmul.f32 %v7694_v28, %v898_v6 }
 0xe91   :  { %v944_v33 = vadd.f32 %v7702_v9, %v936_v26  ;;  %v969_v16 = vadd.f32 %v7708_v53, %v961_v11 }
 0xe92   :  { %v943_v54 = vadd.f32 %v7702_v9, %v935_v58  ;;  %v968_v25 = vadd.f32 %v7708_v53, %v960_v0  ;;  %v908_v29 = vpop.permute.xlu1 %907 }
 0xe93   :  { %953 = vst.msk [vmem:[#allocation3 + $0x148] sm:$0xff] %vm453_vm2, %v944_v33  ;;  %v937_v62 = vmul.f32 %v7688_v56, %v908_v29  ;;  %v962_v44 = vmul.f32 %v7694_v28, %v908_v29  ;;  %v913_v20 = vpop.permute.xlu0 %912 }
 0xe94   :  { %978 = vst.msk [vmem:[#allocation4 + $0x148] sm:$0xff] %vm486_vm3, %v969_v16  ;;  %977 = vst.msk [vmem:[#allocation4 + $0x140] sm:$0xff] %vm486_vm3, %v968_v25  ;;  %v938_v17 = vmul.f32 %v7688_v56, %v913_v20  ;;  %v963_v19 = vmul.f32 %v7694_v28, %v913_v20 }
 0xe95   :  { %952 = vst.msk [vmem:[#allocation3 + $0x140] sm:$0xff] %vm453_vm2, %v943_v54  ;;  %v945_v5 = vadd.f32 %v7702_v9, %v937_v62  ;;  %v970_v7 = vadd.f32 %v7708_v53, %v962_v44 }
 0xe96   :  { %v946_v34 = vadd.f32 %v7702_v9, %v938_v17  ;;  %v971_v61 = vadd.f32 %v7708_v53, %v963_v19  ;;  %v918_v4 = vpop.permute.xlu1 %917 }
 0xe97   :  { %954 = vst.msk [vmem:[#allocation3 + $0x150] sm:$0xff] %vm453_vm2, %v945_v5  ;;  %v939_v23 = vmul.f32 %v7688_v56, %v918_v4  ;;  %v964_v1 = vmul.f32 %v7694_v28, %v918_v4  ;;  %v923_v50 = vpop.permute.xlu0 %922 }
 0xe98   :  { %979 = vst.msk [vmem:[#allocation4 + $0x150] sm:$0xff] %vm486_vm3, %v970_v7  ;;  %980 = vst.msk [vmem:[#allocation4 + $0x158] sm:$0xff] %vm486_vm3, %v971_v61  ;;  %v940_v18 = vmul.f32 %v7688_v56, %v923_v50  ;;  %v965_v51 = vmul.f32 %v7694_v28, %v923_v50 }
 0xe99   :  { %955 = vst.msk [vmem:[#allocation3 + $0x158] sm:$0xff] %vm453_vm2, %v946_v34  ;;  %v947_v13 = vadd.f32 %v7702_v9, %v939_v23  ;;  %v972_v55 = vadd.f32 %v7708_v53, %v964_v1 }
 0xe9a   :  { %v948_v12 = vadd.f32 %v7702_v9, %v940_v18  ;;  %v973_v39 = vadd.f32 %v7708_v53, %v965_v51  ;;  %v928_v2 = vpop.permute.xlu1 %927  ;;  %v3500_v54 = vld [vmem:[#allocation3 + $0x148] sm:$0xff] }
 0xe9b   :  { %956 = vst.msk [vmem:[#allocation3 + $0x160] sm:$0xff] %vm453_vm2, %v947_v13  ;;  %v941_v52 = vmul.f32 %v7688_v56, %v928_v2  ;;  %v966_v37 = vmul.f32 %v7694_v28, %v928_v2  ;;  %v933_v26 = vpop.permute.xlu0 %932 }
 0xe9c   :  { %981 = vst.msk [vmem:[#allocation4 + $0x160] sm:$0xff] %vm486_vm3, %v972_v55  ;;  %982 = vst.msk [vmem:[#allocation4 + $0x168] sm:$0xff] %vm486_vm3, %v973_v39  ;;  %v942_v11 = vmul.f32 %v7688_v56, %v933_v26  ;;  %v967_v6 = vmul.f32 %v7694_v28, %v933_v26  ;;  %v3499_v28 = vld [vmem:[#allocation3 + $0x140] sm:$0xff] }
 0xe9d   :  { %957 = vst.msk [vmem:[#allocation3 + $0x168] sm:$0xff] %vm453_vm2, %v948_v12  ;;  %v949_v58 = vadd.f32 %v7702_v9, %v941_v52  ;;  %v974_v0 = vadd.f32 %v7708_v53, %v966_v37 }
 0xe9e   :  { %v950_v33 = vadd.f32 %v7702_v9, %v942_v11  ;;  %v975_v16 = vadd.f32 %v7708_v53, %v967_v6  ;;  %v3501_v19 = vld [vmem:[#allocation3 + $0x150] sm:$0xff] }
 0xe9f   :  { %958 = vst.msk [vmem:[#allocation3 + $0x170] sm:$0xff] %vm453_vm2, %v949_v58 }
 0xea0   :  { %983 = vst.msk [vmem:[#allocation4 + $0x170] sm:$0xff] %vm486_vm3, %v974_v0  ;;  %984 = vst.msk [vmem:[#allocation4 + $0x178] sm:$0xff] %vm486_vm3, %v975_v16  ;;  %v3502_v17 = vld [vmem:[#allocation3 + $0x158] sm:$0xff] }
 0xea1   :  { %959 = vst.msk [vmem:[#allocation3 + $0x178] sm:$0xff] %vm453_vm2, %v950_v33 }
 0xea2   :  { %v3503_v50 = vld [vmem:[#allocation3 + $0x160] sm:$0xff] }
 0xea4   :  { %v3504_v4 = vld [vmem:[#allocation3 + $0x168] sm:$0xff] }
 0xea6   :  { %v3505_v11 = vld [vmem:[#allocation3 + $0x170] sm:$0xff] }
 0xea8   :  { %v3506_v39 = vld [vmem:[#allocation3 + $0x178] sm:$0xff] }
 0xf44   :  { %v5678_v56 = vpop.f32.mrb[44].mxu0 }
 0xf45   :  { %v3629_v25 = vadd.f32 %v5678_v56, %v3500_v54  ;;  %v3589_v29 = vpop.f32.mrb[45].mxu0 }
 0xf46   :  { %v3628_v62 = vadd.f32 %v3589_v29, %v3499_v28 }
 0xf47   :  { %v5125_v44 = vmul.f32 -1.442695, %v3629_v25 }
 0xf48   :  { %v5124_v20 = vmul.f32 -1.442695, %v3628_v62  ;;  %v5681_v9 = vpop.f32.mrb[46].mxu0 }
 0xf49   :  { %6199 = vpow2.f32 %v5125_v44  ;;  %v3631_v53 = vadd.f32 %v5681_v9, %v3502_v17  ;;  %v3599_v5 = vpop.f32.mrb[47].mxu0 }
 0xf4a   :  { %6201 = vpow2.f32 %v5124_v20  ;;  %v3630_v7 = vadd.f32 %v3599_v5, %v3501_v19 }
 0xf4b   :  { %v5127_v34 = vmul.f32 -1.442695, %v3631_v53 }
 0xf4c   :  { %v5126_v61 = vmul.f32 -1.442695, %v3630_v7  ;;  %v5684_v23 = vpop.f32.mrb[48].mxu0 }
 0xf4d   :  { %6203 = vpow2.f32 %v5127_v34  ;;  %v3633_v1 = vadd.f32 %v5684_v23, %v3504_v4  ;;  %v3609_v18 = vpop.f32.mrb[49].mxu0 }
 0xf4e   :  { %6205 = vpow2.f32 %v5126_v61  ;;  %v3632_v51 = vadd.f32 %v3609_v18, %v3503_v50 }
 0xf4f   :  { %v5129_v13 = vmul.f32 -1.442695, %v3633_v1 }
 0xf50   :  { %v5128_v55 = vmul.f32 -1.442695, %v3632_v51 }
 0xf51   :  { %6207 = vpow2.f32 %v5129_v13 }
 0xf52   :  { %6209 = vpow2.f32 %v5128_v55 }
 0xf53   :  { %v6200_v12 = vpop.eup %6199  ;;  %v5687_v2 = vpop.f32.mrb[50].mxu0 }
 0xf54   :  { %v6202_v52 = vpop.eup %6201  ;;  %v3661_v37 = vadd.f32 1.0, %v6200_v12  ;;  %v3635_v26 = vadd.f32 %v5687_v2, %v3506_v39  ;;  %v3619_v6 = vpop.f32.mrb[51].mxu0  ;;  %v3684_v39 = vld [vmem:[#allocation4 + $0x140] sm:$0xff] }
 0xf55   :  { %v3660_v58 = vadd.f32 1.0, %v6202_v52  ;;  %v3634_v0 = vadd.f32 %v3619_v6, %v3505_v11  ;;  %v3686_v6 = vld [vmem:[#allocation4 + $0x150] sm:$0xff] }
 0xf56   :  { %6211 = vrcp.f32 %v3661_v37  ;;  %v5131_v33 = vmul.f32 -1.442695, %v3635_v26  ;;  %v3687_v37 = vld [vmem:[#allocation4 + $0x158] sm:$0xff] }
 0xf57   :  { %v6204_v16 = vpop.eup %6203  ;;  %6213 = vrcp.f32 %v3660_v58  ;;  %v5130_v54 = vmul.f32 -1.442695, %v3634_v0 }
 0xf58   :  { %v6206_v56 = vpop.eup %6205  ;;  %v3663_v25 = vadd.f32 1.0, %v6204_v16  ;;  %6215 = vpow2.f32 %v5131_v33  ;;  %v3688_v16 = vld [vmem:[#allocation4 + $0x160] sm:$0xff] }
 0xf59   :  { %v3662_v28 = vadd.f32 1.0, %v6206_v56  ;;  %6217 = vpow2.f32 %v5130_v54 }
 0xf5a   :  { %6219 = vrcp.f32 %v3663_v25 }
 0xf5b   :  { %v6208_v29 = vpop.eup %6207  ;;  %6221 = vrcp.f32 %v3662_v28 }
 0xf5c   :  { %v6210_v62 = vpop.eup %6209  ;;  %v3665_v44 = vadd.f32 1.0, %v6208_v29  ;;  %v3691_v29 = vld [vmem:[#allocation4 + $0x178] sm:$0xff] }
 0xf5d   :  { %v3664_v20 = vadd.f32 1.0, %v6210_v62 }
 0xf5e   :  { %6223 = vrcp.f32 %v3665_v44 }
 0xf5f   :  { %6225 = vrcp.f32 %v3664_v20  ;;  %v3690_v20 = vld [vmem:[#allocation4 + $0x170] sm:$0xff] }
 0xf60   :  { %v8017_v17 = vpop.eup %6211 }
 0xf61   :  { %v8019_v9 = vpop.eup %6213  ;;  %v3693_v34 = vmul.f32 %v8017_v17, %v7893_v36 }
 0xf62   :  { %v6216_v53 = vpop.eup %6215  ;;  %v3692_v19 = vmul.f32 %v8019_v9, %v7900_v47 }
 0xf63   :  { %v6218_v5 = vpop.eup %6217  ;;  %v3667_v7 = vadd.f32 1.0, %v6216_v53 }
 0xf64   :  { %v8025_v61 = vpop.eup %6219  ;;  %v3666_v4 = vadd.f32 1.0, %v6218_v5  ;;  %5696 = vmatprep.mubr.msk.f32.mxu1 %vm486_vm3, %v3692_v19 }
 0xf65   :  { %v8028_v23 = vpop.eup %6221  ;;  %6227 = vrcp.f32 %v3667_v7  ;;  %5697 = vmatmul.mubr.msk.f32.vlgmr.msra.gmra.mrb[44].mxu1 %vm486_vm3, %v3693_v34  ;;  %v3695_v47 = vmul.f32 %v8025_v61, %v7911_v41 }
 0xf66   :  { %6229 = vrcp.f32 %v3666_v4  ;;  %v3694_v1 = vmul.f32 %v8028_v23, %v7919_v46  ;;  %5911 = vmatpush3.bf16.msra.mxu1 %v6534_v60 }
 0xf67   :  { %5913 = vmatprep.subr.bf16.mxu1 %v6544_v63 }
 0xf68   :  { %v8037_v36 = vpop.eup %6223  ;;  %5699 = vmatprep.mubr.msk.f32.mxu1 %vm486_vm3, %v3694_v1  ;;  %v6364_v1 = vmov 6  }
 0xf69   :  { %v8040_v50 = vpop.eup %6225  ;;  %5700 = vmatmul.mubr.msk.f32.gmra.mrb[46].mxu1 %vm486_vm3, %v3695_v47  ;;  %v3697_v46 = vmul.f32 %v8037_v36, %v7931_v10  ;;  %v3685_v10 = vld [vmem:[#allocation4 + $0x148] sm:$0xff]  ;;  %5956 = vset.pattern.permute.xlu0 %v6364_v1 }
 0xf6a   :  { %v3696_v18 = vmul.f32 %v8040_v50, %v7939_v15  ;;  %5915 = vmatpush3.bf16.msra.mxu1 %v6544_v63  ;;  %5955 = vset.pattern.permute.xlu1 %v6364_v1  ;;  %v3857_v30 = vsub.f32 1.0, %v8040_v50 }
 0xf6b   :  { %5925 = vmatprep.subr.bf16.mxu1 %v6534_v60 }
 0xf6c   :  { %5702 = vmatprep.mubr.msk.f32.mxu1 %vm486_vm3, %v3696_v18 }
 0xf6d   :  { %5703 = vmatmul.mubr.msk.f32.gmra.mrb[48].mxu1 %vm486_vm3, %v3697_v46  ;;  %v3854_v46 = vsub.f32 1.0, %v8017_v17 }
 0xf6f   :  { %v8051_v41 = vpop.eup %6227 }
 0xf70   :  { %v8053_v51 = vpop.eup %6229  ;;  %v3699_v15 = vmul.f32 %v8051_v41, %v7951_v43  ;;  %v3689_v43 = vld [vmem:[#allocation4 + $0x168] sm:$0xff]  ;;  %v3860_v59 = vsub.f32 1.0, %v8051_v41 }
 0xf71   :  { %v3698_v13 = vmul.f32 %v8053_v51, %v7958_v24 }
 0xf73   :  { %5705 = vmatprep.mubr.msk.f32.mxu1 %vm486_vm3, %v3698_v13 }
 0xf74   :  { %5706 = vmatmul.mubr.msk.f32.gmra.mrb[50].mxu1 %vm486_vm3, %v3699_v15  ;;  %v3853_v15 = vsub.f32 1.0, %v8019_v9 }
0x1038   :  { %v5698_v55 = vpop.f32.mrb[44].mxu1 }
0x1039   :  { %v3830_v12 = vadd.f32 %v5698_v55, %v3685_v10  ;;  %v3790_v2 = vpop.f32.mrb[45].mxu1  ;;  %v3846_v10 = vmul.f32 %v8017_v17, %v5101_v45  ;;  %v3848_v45 = vmul.f32 %v8025_v61, %v5103_v48 }
0x103a   :  { %v3829_v52 = vadd.f32 %v3790_v2, %v3684_v39  ;;  %v3845_v39 = vmul.f32 %v8019_v9, %v5100_v3  ;;  %v3847_v9 = vmul.f32 %v8028_v23, %v5102_v42 }
0x103b   :  { %6231 = vtanh.f32 %v3830_v12 }
0x103c   :  { %6233 = vtanh.f32 %v3829_v52  ;;  %v5701_v26 = vpop.f32.mrb[46].mxu1 }
0x103d   :  { %v3832_v11 = vadd.f32 %v5701_v26, %v3687_v37  ;;  %v3800_v24 = vpop.f32.mrb[47].mxu1  ;;  %v3856_v37 = vsub.f32 1.0, %v8025_v61  ;;  %v3850_v61 = vmul.f32 %v8037_v36, %v5105_v57 }
0x103e   :  { %v3831_v58 = vadd.f32 %v3800_v24, %v3686_v6  ;;  %v3855_v6 = vsub.f32 1.0, %v8028_v23 }
0x103f   :  { %6235 = vtanh.f32 %v3832_v11 }
0x1040   :  { %6237 = vtanh.f32 %v3831_v58  ;;  %v5704_v0 = vpop.f32.mrb[48].mxu1 }
0x1041   :  { %v3834_v33 = vadd.f32 %v5704_v0, %v3689_v43  ;;  %v3810_v54 = vpop.f32.mrb[49].mxu1  ;;  %v3858_v43 = vsub.f32 1.0, %v8037_v36  ;;  %v3859_v36 = vsub.f32 1.0, %v8053_v51 }
0x1042   :  { %v3833_v56 = vadd.f32 %v3810_v54, %v3688_v16  ;;  %v3849_v16 = vmul.f32 %v8040_v50, %v5104_v49  ;;  %v3852_v50 = vmul.f32 %v8051_v41, %v5107_v8  ;;  %v8152_v8 = vld [vmem:[#allocation2] sm:$0xff]  ;;  %v8158_v41 = vld [vmem:[#allocation2 + $0x10] sm:$0xff] }
0x1043   :  { %6239 = vtanh.f32 %v3834_v33 }
0x1044   :  { %6241 = vtanh.f32 %v3833_v56 }
0x1045   :  { %v6232_v25 = vpop.eup %6231 }
0x1046   :  { %v6234_v28 = vpop.eup %6233  ;;  %3871 = vrot.lane.b32.xlu0 %v6232_v25, %s6357_s26 }
0x1047   :  { %v5707_v62 = vpop.f32.mrb[50].mxu1  ;;  %3869 = vrot.lane.b32.xlu1 %v6234_v28, %s6357_s26 }
0x1048   :  { %v3836_v44 = vadd.f32 %v5707_v62, %v3691_v29  ;;  %v3820_v53 = vpop.f32.mrb[51].mxu1  ;;  %v3851_v62 = vmul.f32 %v8053_v51, %v5106_v38  ;;  %v8155_v38 = vld [vmem:[#allocation2 + $0x20] sm:$0xff]  ;;  %v8161_v51 = vld [vmem:[#allocation2 + $0x30] sm:$0xff] }
0x1049   :  { %v6236_v19 = vpop.eup %6235  ;;  %v3835_v5 = vadd.f32 %v3820_v53, %v3690_v20 }
0x104a   :  { %v6238_v7 = vpop.eup %6237  ;;  %6243 = vtanh.f32 %v3836_v44  ;;  %3875 = vrot.lane.b32.xlu0 %v6236_v19, %s6357_s26 }
0x104b   :  { %6245 = vtanh.f32 %v3835_v5  ;;  %3873 = vrot.lane.b32.xlu1 %v6238_v7, %s6357_s26  ;;  %v8164_v5 = vld [vmem:[#allocation2 + $0x18] sm:$0xff]  ;;  %v8167_v7 = vld [vmem:[#allocation2 + $0x28] sm:$0xff] }
0x104d   :  { %v6240_v34 = vpop.eup %6239 }
0x104e   :  { %v6242_v4 = vpop.eup %6241  ;;  %3879 = vrot.lane.b32.xlu0 %v6240_v34, %s6357_s26  ;;  %v8170_v34 = vld [vmem:[#allocation2 + $0x38] sm:$0xff] }
0x104f   :  { %3877 = vrot.lane.b32.xlu1 %v6242_v4, %s6357_s26 }
0x1054   :  { %v6244_v47 = vpop.eup %6243 }
0x1055   :  { %v6246_v18 = vpop.eup %6245  ;;  %3883 = vrot.lane.b32.xlu0 %v6244_v47, %s6357_s26 }
0x1056   :  { %3881 = vrot.lane.b32.xlu1 %v6246_v18, %s6357_s26 }
0x10b8   :  { %v3872_v13 = vpop.permute.xlu0 %3871 }
0x10b9   :  { %v3894_v55 = vmul.f32 %v3872_v13, %v3854_v46  ;;  %v3870_v12 = vpop.permute.xlu1 %3869 }
0x10ba   :  { %v3893_v2 = vmul.f32 %v3870_v12, %v3853_v15  ;;  %v8257_v12 = vld [vmem:[%s8701_s5] ss:$0 sm:$0xff] }
0x10bb   :  { %v8077_v52 = vadd.f32 %v3894_v55, %v3846_v10  ;;  %v8251_v10 = vld [vmem:[%s8700_s3] ss:$0 sm:$0xff] }
0x10bc   :  { %v8080_v26 = vadd.f32 %v3893_v2, %v3845_v39  ;;  %v3876_v11 = vpop.permute.xlu0 %3875 }
0x10bd   :  { %v5141_v31 = vclamps-f32 %v8077_v52, 10000.0  ;;  %v3896_v17 = vmul.f32 %v3876_v11, %v3856_v37  ;;  %v3874_v35 = vpop.permute.xlu1 %3873 }
0x10be   :  { %v5140_v3 = vclamps-f32 %v8080_v26, 10000.0  ;;  %v3895_v24 = vmul.f32 %v3874_v35, %v3855_v6  ;;  %v8265_v6 = vld [vmem:[%s8700_s3 + $0x1] ss:$0 sm:$0xff] }
0x10bf   :  { %v8091_v58 = vadd.f32 %v3896_v17, %v3848_v45  ;;  %3931 = vrot.lane.b32.xlu0 %v5141_v31, %s6359_s27  ;;  %v8271_v17 = vld [vmem:[%s8701_s5 + $0x1] ss:$0 sm:$0xff] }
0x10c0   :  { %v8097_v14 = vadd.f32 %v3895_v24, %v3847_v9  ;;  %v3880_v48 = vpop.permute.xlu0 %3879  ;;  %3929 = vrot.lane.b32.xlu1 %v5140_v3, %s6359_s27 }
0x10c1   :  { %v5143_v42 = vclamps-f32 %v8091_v58, 10000.0  ;;  %v3898_v23 = vmul.f32 %v3880_v48, %v3858_v43  ;;  %v3878_v0 = vpop.permute.xlu1 %3877 }
0x10c2   :  { %v5142_v33 = vclamps-f32 %v8097_v14, 10000.0  ;;  %v3897_v54 = vmul.f32 %v3878_v0, %v3857_v30 }
0x10c3   :  { %v8111_v56 = vadd.f32 %v3898_v23, %v3850_v61  ;;  %3935 = vrot.lane.b32.xlu0 %v5143_v42, %s6359_s27 }
0x10c4   :  { %v8116_v25 = vadd.f32 %v3897_v54, %v3849_v16  ;;  %3933 = vrot.lane.b32.xlu1 %v5142_v33, %s6359_s27 }
0x10c5   :  { %v5145_v40 = vclamps-f32 %v8111_v56, 10000.0 }
0x10c6   :  { %v5144_v57 = vclamps-f32 %v8116_v25, 10000.0 }
0x10c7   :  { %v3884_v49 = vpop.permute.xlu0 %3883  ;;  %3952 = vrot.lane.b32.xlu0 %v5145_v40, %s6359_s27 }
0x10c8   :  { %v3900_v28 = vmul.f32 %v3884_v49, %v3860_v59  ;;  %v3882_v29 = vpop.permute.xlu1 %3881  ;;  %3950 = vrot.lane.b32.xlu1 %v5144_v57, %s6359_s27 }
0x10c9   :  { %v3899_v44 = vmul.f32 %v3882_v29, %v3859_v36 }
0x10ca   :  { %v8137_v20 = vadd.f32 %v3900_v28, %v3852_v50 }
0x10cb   :  { %v8139_v53 = vadd.f32 %v3899_v44, %v3851_v62 }
0x10cc   :  { %v5147_v19 = vclamps-f32 %v8137_v20, 10000.0 }
0x10cd   :  { %v5146_v32 = vclamps-f32 %v8139_v53, 10000.0 }
0x10ce   :  { %3956 = vrot.lane.b32.xlu0 %v5147_v19, %s6359_s27 }
0x10cf   :  { %3954 = vrot.lane.b32.xlu1 %v5146_v32, %s6359_s27 }
0x10d2   :  { %1000 = vperm.xlu0 %5956, %v8149_v27  }
0x10d3   :  { %995 = vperm.xlu1 %5955, %v8152_v8  }
0x10d6   :  { %1015 = vperm.xlu0 %5956, %v8155_v38  }
0x10d7   :  { %1005 = vperm.xlu1 %5955, %v8158_v41  }
0x10da   :  { %1025 = vperm.xlu0 %5956, %v8161_v51  }
0x10db   :  { %1010 = vperm.xlu1 %5955, %v8164_v5  }
0x10df   :  { %1020 = vperm.xlu1 %5955, %v8167_v7  }
0x10e3   :  { %1030 = vperm.xlu1 %5955, %v8170_v34  }
0x1131   :  { %v8173_v4 = vpop.permute.xlu0 %3931 }
0x1132   :  { %5149 = vst.msk [vmem:[%s8702_s7 + $0xa8] sm:$0xff] %vm486_vm3, %v8173_v4  ;;  %v8180_v1 = vpop.permute.xlu1 %3929 }
0x1133   :  { %5148 = vst.msk [vmem:[%s8702_s7 + $0xa0] sm:$0xff] %vm486_vm3, %v8180_v1  ;;  %5716 = vmatprep.mubr.msk.f32.mxu0 %vm486_vm3, %v8180_v1 }
0x1134   :  { %5717 = vmatmul.mubr.msk.f32.vlgmr.msra.gmra.mrb[52].mxu0 %vm486_vm3, %v8173_v4 }
0x1135   :  { %v8191_v47 = vpop.permute.xlu0 %3935  ;;  %5919 = vmatpush3.bf16.msra.mxu0 %v6462_v21 }
0x1136   :  { %5151 = vst.msk [vmem:[%s8702_s7 + $0xb8] sm:$0xff] %vm486_vm3, %v8191_v47  ;;  %v8199_v18 = vpop.permute.xlu1 %3933  ;;  %5921 = vmatprep.subr.bf16.mxu0 %v6466_v22 }
0x1137   :  { %5150 = vst.msk [vmem:[%s8702_s7 + $0xb0] sm:$0xff] %vm486_vm3, %v8199_v18  ;;  %5719 = vmatprep.mubr.msk.f32.mxu0 %vm486_vm3, %v8199_v18 }
0x1138   :  { %5720 = vmatmul.mubr.msk.f32.gmra.mrb[54].mxu0 %vm486_vm3, %v8191_v47 }
0x1139   :  { %v8211_v21 = vpop.permute.xlu0 %3952  ;;  %5923 = vmatpush3.bf16.msra.mxu0 %v6466_v22 }
0x113a   :  { %5153 = vst.msk [vmem:[%s8703_s8 + $0x48] sm:$0xff] %vm486_vm3, %v8211_v21  ;;  %v8219_v46 = vpop.permute.xlu1 %3950 }
0x113b   :  { %5152 = vst.msk [vmem:[%s8703_s8 + $0x40] sm:$0xff] %vm486_vm3, %v8219_v46  ;;  %5722 = vmatprep.mubr.msk.f32.mxu0 %vm486_vm3, %v8219_v46 }
0x113c   :  { %5723 = vmatmul.mubr.msk.f32.gmra.mrb[56].mxu0 %vm486_vm3, %v8211_v21 }
0x1140   :  { %v8230_v22 = vpop.permute.xlu0 %3956 }
0x1141   :  { %5155 = vst.msk [vmem:[%s8703_s8 + $0x58] sm:$0xff] %vm486_vm3, %v8230_v22  ;;  %v8237_v13 = vpop.permute.xlu1 %3954 }
0x1142   :  { %5154 = vst.msk [vmem:[%s8703_s8 + $0x50] sm:$0xff] %vm486_vm3, %v8237_v13  ;;  %5725 = vmatprep.mubr.msk.f32.mxu0 %vm486_vm3, %v8237_v13 }
0x1143   :  { %5726 = vmatmul.mubr.msk.f32.gmra.mrb[58].mxu0 %vm486_vm3, %v8230_v22 }
0x1151   :  { %v1001_v15 = vpop.permute.xlu0 %1000 }
0x1152   :  { %v1034_v55 = vmul.f32 %v8251_v10, %v1001_v15  ;;  %v1059_v39 = vmul.f32 %v8257_v12, %v1001_v15  ;;  %v996_v2 = vpop.permute.xlu1 %995 }
0x1153   :  { %v1033_v37 = vmul.f32 %v8251_v10, %v996_v2  ;;  %v1058_v11 = vmul.f32 %v8257_v12, %v996_v2 }
0x1154   :  { %v1042_v45 = vadd.f32 %v8265_v6, %v1034_v55  ;;  %v1067_v35 = vadd.f32 %v8271_v17, %v1059_v39 }
0x1155   :  { %v1041_v9 = vadd.f32 %v8265_v6, %v1033_v37  ;;  %v1066_v24 = vadd.f32 %v8271_v17, %v1058_v11  ;;  %v1016_v43 = vpop.permute.xlu0 %1015 }
0x1156   :  { %1051 = vst.msk [vmem:[#allocation3 + $0x188] sm:$0xff] %vm453_vm2, %v1042_v45  ;;  %v1037_v48 = vmul.f32 %v8251_v10, %v1016_v43  ;;  %v1062_v30 = vmul.f32 %v8257_v12, %v1016_v43  ;;  %v1006_v61 = vpop.permute.xlu1 %1005 }
0x1157   :  { %1076 = vst.msk [vmem:[#allocation4 + $0x188] sm:$0xff] %vm486_vm3, %v1067_v35  ;;  %1075 = vst.msk [vmem:[#allocation4 + $0x180] sm:$0xff] %vm486_vm3, %v1066_v24  ;;  %v1035_v23 = vmul.f32 %v8251_v10, %v1006_v61  ;;  %v1060_v0 = vmul.f32 %v8257_v12, %v1006_v61 }
0x1158   :  { %1050 = vst.msk [vmem:[#allocation3 + $0x180] sm:$0xff] %vm453_vm2, %v1041_v9  ;;  %v1045_v16 = vadd.f32 %v8265_v6, %v1037_v48  ;;  %v1070_v54 = vadd.f32 %v8271_v17, %v1062_v30 }
0x1159   :  { %v1043_v59 = vadd.f32 %v8265_v6, %v1035_v23  ;;  %v1068_v49 = vadd.f32 %v8271_v17, %v1060_v0  ;;  %v1026_v36 = vpop.permute.xlu0 %1025 }
0x115a   :  { %1054 = vst.msk [vmem:[#allocation3 + $0x1a0] sm:$0xff] %vm453_vm2, %v1045_v16  ;;  %v1039_v50 = vmul.f32 %v8251_v10, %v1026_v36  ;;  %v1064_v28 = vmul.f32 %v8257_v12, %v1026_v36  ;;  %v1011_v29 = vpop.permute.xlu1 %1010 }
0x115b   :  { %1079 = vst.msk [vmem:[#allocation4 + $0x1a0] sm:$0xff] %vm486_vm3, %v1070_v54  ;;  %1077 = vst.msk [vmem:[#allocation4 + $0x190] sm:$0xff] %vm486_vm3, %v1068_v49  ;;  %v1036_v62 = vmul.f32 %v8251_v10, %v1011_v29  ;;  %v1061_v44 = vmul.f32 %v8257_v12, %v1011_v29 }
0x115c   :  { %1052 = vst.msk [vmem:[#allocation3 + $0x190] sm:$0xff] %vm453_vm2, %v1043_v59  ;;  %v1047_v15 = vadd.f32 %v8265_v6, %v1039_v50  ;;  %v1072_v55 = vadd.f32 %v8271_v17, %v1064_v28 }
0x115d   :  { %v1044_v39 = vadd.f32 %v8265_v6, %v1036_v62  ;;  %v1069_v2 = vadd.f32 %v8271_v17, %v1061_v44  ;;  %v3968_v23 = vld [vmem:[#allocation3 + $0x188] sm:$0xff] }
0x115e   :  { %1056 = vst.msk [vmem:[#allocation3 + $0x1b0] sm:$0xff] %vm453_vm2, %v1047_v15  ;;  %v1021_v37 = vpop.permute.xlu1 %1020 }
0x115f   :  { %1081 = vst.msk [vmem:[#allocation4 + $0x1b0] sm:$0xff] %vm486_vm3, %v1072_v55  ;;  %1078 = vst.msk [vmem:[#allocation4 + $0x198] sm:$0xff] %vm486_vm3, %v1069_v2  ;;  %v1038_v11 = vmul.f32 %v8251_v10, %v1021_v37  ;;  %v1063_v45 = vmul.f32 %v8257_v12, %v1021_v37  ;;  %v3967_v54 = vld [vmem:[#allocation3 + $0x180] sm:$0xff] }
0x1160   :  { %1053 = vst.msk [vmem:[#allocation3 + $0x198] sm:$0xff] %vm453_vm2, %v1044_v39 }
0x1161   :  { %v1046_v35 = vadd.f32 %v8265_v6, %v1038_v11  ;;  %v1071_v9 = vadd.f32 %v8271_v17, %v1063_v45 }
0x1162   :  { %v1031_v24 = vpop.permute.xlu1 %1030 }
0x1163   :  { %1055 = vst.msk [vmem:[#allocation3 + $0x1a8] sm:$0xff] %vm453_vm2, %v1046_v35  ;;  %v1040_v43 = vmul.f32 %v8251_v10, %v1031_v24  ;;  %v1065_v48 = vmul.f32 %v8257_v12, %v1031_v24  ;;  %v3969_v44 = vld [vmem:[#allocation3 + $0x190] sm:$0xff]  ;;  %v3971_v35 = vld [vmem:[#allocation3 + $0x1a0] sm:$0xff] }
0x1164   :  { %1080 = vst.msk [vmem:[#allocation4 + $0x1a8] sm:$0xff] %vm486_vm3, %v1071_v9 }
0x1165   :  { %v1048_v30 = vadd.f32 %v8265_v6, %v1040_v43  ;;  %v1073_v61 = vadd.f32 %v8271_v17, %v1065_v48 }
0x1167   :  { %1057 = vst.msk [vmem:[#allocation3 + $0x1b8] sm:$0xff] %vm453_vm2, %v1048_v30  ;;  %v3970_v28 = vld [vmem:[#allocation3 + $0x198] sm:$0xff] }
0x1168   :  { %1082 = vst.msk [vmem:[#allocation4 + $0x1b8] sm:$0xff] %vm486_vm3, %v1073_v61 }
0x116a   :  { %v3972_v37 = vld [vmem:[#allocation3 + $0x1a8] sm:$0xff] }
0x116e   :  { %v3974_v61 = vld [vmem:[#allocation3 + $0x1b8] sm:$0xff] }
0x1207   :  { %v5718_v0 = vpop.f32.mrb[52].mxu0 }
0x1208   :  { %v4097_v16 = vadd.f32 %v5718_v0, %v3968_v23  ;;  %v4057_v59 = vpop.f32.mrb[53].mxu0 }
0x1209   :  { %v4096_v49 = vadd.f32 %v4057_v59, %v3967_v54  ;;  %v3973_v59 = vld [vmem:[#allocation3 + $0x1b0] sm:$0xff] }
0x120a   :  { %v5165_v36 = vmul.f32 -1.442695, %v4097_v16 }
0x120b   :  { %v5164_v50 = vmul.f32 -1.442695, %v4096_v49  ;;  %v5721_v29 = vpop.f32.mrb[54].mxu0 }
0x120c   :  { %6247 = vpow2.f32 %v5165_v36  ;;  %v4099_v62 = vadd.f32 %v5721_v29, %v3970_v28  ;;  %v4067_v15 = vpop.f32.mrb[55].mxu0 }
0x120d   :  { %6249 = vpow2.f32 %v5164_v50  ;;  %v4098_v55 = vadd.f32 %v4067_v15, %v3969_v44 }
0x120e   :  { %v5167_v39 = vmul.f32 -1.442695, %v4099_v62 }
0x120f   :  { %v5166_v2 = vmul.f32 -1.442695, %v4098_v55  ;;  %v5724_v11 = vpop.f32.mrb[56].mxu0 }
0x1210   :  { %6251 = vpow2.f32 %v5167_v39  ;;  %v4101_v45 = vadd.f32 %v5724_v11, %v3972_v37  ;;  %v4077_v9 = vpop.f32.mrb[57].mxu0 }
0x1211   :  { %6253 = vpow2.f32 %v5166_v2  ;;  %v4100_v24 = vadd.f32 %v4077_v9, %v3971_v35 }
0x1212   :  { %v5169_v43 = vmul.f32 -1.442695, %v4101_v45 }
0x1213   :  { %v5168_v48 = vmul.f32 -1.442695, %v4100_v24 }
0x1214   :  { %6255 = vpow2.f32 %v5169_v43 }
0x1215   :  { %6257 = vpow2.f32 %v5168_v48 }
0x1216   :  { %v6248_v30 = vpop.eup %6247  ;;  %v5727_v23 = vpop.f32.mrb[58].mxu0 }
0x1217   :  { %v6250_v0 = vpop.eup %6249  ;;  %v4129_v16 = vadd.f32 1.0, %v6248_v30  ;;  %v4103_v54 = vadd.f32 %v5727_v23, %v3974_v61  ;;  %v4087_v49 = vpop.f32.mrb[59].mxu0 }
0x1218   :  { %v4128_v36 = vadd.f32 1.0, %v6250_v0  ;;  %v4102_v50 = vadd.f32 %v4087_v49, %v3973_v59 }
0x1219   :  { %6259 = vrcp.f32 %v4129_v16  ;;  %v5171_v28 = vmul.f32 -1.442695, %v4103_v54 }
0x121a   :  { %v6252_v29 = vpop.eup %6251  ;;  %6261 = vrcp.f32 %v4128_v36  ;;  %v5170_v62 = vmul.f32 -1.442695, %v4102_v50  ;;  %v4152_v50 = vld [vmem:[#allocation4 + $0x180] sm:$0xff] }
0x121b   :  { %v6254_v44 = vpop.eup %6253  ;;  %v4131_v15 = vadd.f32 1.0, %v6252_v29  ;;  %6263 = vpow2.f32 %v5171_v28 }
0x121c   :  { %v4130_v55 = vadd.f32 1.0, %v6254_v44  ;;  %6265 = vpow2.f32 %v5170_v62  ;;  %v4155_v62 = vld [vmem:[#allocation4 + $0x198] sm:$0xff] }
0x121d   :  { %6267 = vrcp.f32 %v4131_v15 }
0x121e   :  { %v6256_v39 = vpop.eup %6255  ;;  %6269 = vrcp.f32 %v4130_v55  ;;  %v4154_v55 = vld [vmem:[#allocation4 + $0x190] sm:$0xff] }
0x121f   :  { %v6258_v2 = vpop.eup %6257  ;;  %v4133_v37 = vadd.f32 1.0, %v6256_v39 }
0x1220   :  { %v4132_v11 = vadd.f32 1.0, %v6258_v2 }
0x1221   :  { %6271 = vrcp.f32 %v4133_v37 }
0x1222   :  { %6273 = vrcp.f32 %v4132_v11  ;;  %v4156_v11 = vld [vmem:[#allocation4 + $0x1a0] sm:$0xff] }
0x1223   :  { %v8316_v45 = vpop.eup %6259 }
0x1224   :  { %v8318_v35 = vpop.eup %6261  ;;  %v4161_v30 = vmul.f32 %v8316_v45, %v8173_v4 }
0x1225   :  { %v6264_v9 = vpop.eup %6263  ;;  %v4160_v24 = vmul.f32 %v8318_v35, %v8180_v1 }
0x1226   :  { %v6266_v43 = vpop.eup %6265  ;;  %v4135_v48 = vadd.f32 1.0, %v6264_v9 }
0x1227   :  { %v8324_v61 = vpop.eup %6267  ;;  %v4134_v23 = vadd.f32 1.0, %v6266_v43  ;;  %5736 = vmatprep.mubr.msk.f32.mxu1 %vm486_vm3, %v4160_v24 }
0x1228   :  { %v8327_v0 = vpop.eup %6269  ;;  %6275 = vrcp.f32 %v4135_v48  ;;  %5737 = vmatmul.mubr.msk.f32.vlgmr.msra.gmra.mrb[52].mxu1 %vm486_vm3, %v4161_v30  ;;  %v4163_v1 = vmul.f32 %v8324_v61, %v8191_v47  ;;  %v4159_v30 = vld [vmem:[#allocation4 + $0x1b8] sm:$0xff] }
0x1229   :  { %6277 = vrcp.f32 %v4134_v23  ;;  %v4162_v16 = vmul.f32 %v8327_v0, %v8199_v18  ;;  %5927 = vmatpush3.bf16.msra.mxu1 %v6534_v60 }
0x122a   :  { %5929 = vmatprep.subr.bf16.mxu1 %v6544_v63 }
0x122b   :  { %v8336_v4 = vpop.eup %6271  ;;  %5739 = vmatprep.mubr.msk.f32.mxu1 %vm486_vm3, %v4162_v16 }
0x122c   :  { %v8339_v54 = vpop.eup %6273  ;;  %5740 = vmatmul.mubr.msk.f32.gmra.mrb[54].mxu1 %vm486_vm3, %v4163_v1  ;;  %v4165_v60 = vmul.f32 %v8336_v4, %v8211_v21  ;;  %v4158_v1 = vld [vmem:[#allocation4 + $0x1b0] sm:$0xff] }
0x122d   :  { %v4164_v59 = vmul.f32 %v8339_v54, %v8219_v46  ;;  %5931 = vmatpush3.bf16.msra.mxu1 %v6544_v63  ;;  %v4153_v63 = vld [vmem:[#allocation4 + $0x188] sm:$0xff]  ;;  %v4325_v14 = vsub.f32 1.0, %v8339_v54 }
0x122f   :  { %5742 = vmatprep.mubr.msk.f32.mxu1 %vm486_vm3, %v4164_v59 }
0x1230   :  { %5743 = vmatmul.mubr.msk.f32.gmra.mrb[56].mxu1 %vm486_vm3, %v4165_v60 }
0x1232   :  { %v8349_v47 = vpop.eup %6275 }
0x1233   :  { %v8351_v18 = vpop.eup %6277  ;;  %v4167_v36 = vmul.f32 %v8349_v47, %v8230_v22  ;;  %v4157_v22 = vld [vmem:[#allocation4 + $0x1a8] sm:$0xff]  ;;  %v4328_v25 = vsub.f32 1.0, %v8349_v47 }
0x1234   :  { %v4166_v49 = vmul.f32 %v8351_v18, %v8237_v13 }
0x1236   :  { %5745 = vmatprep.mubr.msk.f32.mxu1 %vm486_vm3, %v4166_v49 }
0x1237   :  { %5746 = vmatmul.mubr.msk.f32.gmra.mrb[58].mxu1 %vm486_vm3, %v4167_v36 }
0x12fb   :  { %v5738_v21 = vpop.f32.mrb[52].mxu1 }
0x12fc   :  { %v4298_v46 = vadd.f32 %v5738_v21, %v4153_v63  ;;  %v4258_v28 = vpop.f32.mrb[53].mxu1 }
0x12fd   :  { %v4297_v29 = vadd.f32 %v4258_v28, %v4152_v50 }
0x12fe   :  { %6279 = vtanh.f32 %v4298_v46  ;;  %v6365_v46 = vmov 7  }
0x12ff   :  { %6281 = vtanh.f32 %v4297_v29  ;;  %v5741_v44 = vpop.f32.mrb[54].mxu1  ;;  %5958 = vset.pattern.permute.xlu1 %v6365_v46  ;;  %5957 = vset.pattern.permute.xlu0 %v6365_v46  ;;  %v4322_v29 = vsub.f32 1.0, %v8316_v45 }
0x1300   :  { %v4300_v15 = vadd.f32 %v5741_v44, %v4155_v62  ;;  %v4268_v13 = vpop.f32.mrb[55].mxu1  ;;  %v4321_v44 = vsub.f32 1.0, %v8318_v35 }
0x1301   :  { %v4299_v39 = vadd.f32 %v4268_v13, %v4154_v55 }
0x1302   :  { %6283 = vtanh.f32 %v4300_v15  ;;  %v4314_v15 = vmul.f32 %v8316_v45, %v5141_v31  ;;  %v4316_v31 = vmul.f32 %v8324_v61, %v5143_v42 }
0x1303   :  { %6285 = vtanh.f32 %v4299_v39  ;;  %v5744_v2 = vpop.f32.mrb[56].mxu1  ;;  %v4313_v39 = vmul.f32 %v8318_v35, %v5140_v3  ;;  %v4315_v35 = vmul.f32 %v8327_v0, %v5142_v33 }
0x1304   :  { %v4302_v37 = vadd.f32 %v5744_v2, %v4157_v22  ;;  %v4278_v9 = vpop.f32.mrb[57].mxu1 }
0x1305   :  { %v4301_v24 = vadd.f32 %v4278_v9, %v4156_v11 }
0x1306   :  { %6287 = vtanh.f32 %v4302_v37  ;;  %v4324_v37 = vsub.f32 1.0, %v8324_v61  ;;  %v4318_v61 = vmul.f32 %v8336_v4, %v5145_v40 }
0x1307   :  { %6289 = vtanh.f32 %v4301_v24  ;;  %v4323_v24 = vsub.f32 1.0, %v8327_v0 }
0x1308   :  { %v6280_v43 = vpop.eup %6279 }
0x1309   :  { %v6282_v48 = vpop.eup %6281  ;;  %4339 = vrot.lane.b32.xlu1 %v6280_v43, %s6357_s26 }
0x130a   :  { %v5747_v23 = vpop.f32.mrb[58].mxu1  ;;  %4337 = vrot.lane.b32.xlu0 %v6282_v48, %s6357_s26 }
0x130b   :  { %v4304_v16 = vadd.f32 %v5747_v23, %v4159_v30  ;;  %v4288_v59 = vpop.f32.mrb[59].mxu1  ;;  %v4326_v30 = vsub.f32 1.0, %v8336_v4  ;;  %v4327_v4 = vsub.f32 1.0, %v8351_v18 }
0x130c   :  { %v6284_v60 = vpop.eup %6283  ;;  %v4303_v49 = vadd.f32 %v4288_v59, %v4158_v1  ;;  %v4317_v1 = vmul.f32 %v8339_v54, %v5144_v57  ;;  %v4320_v54 = vmul.f32 %v8349_v47, %v5147_v19 }
0x130d   :  { %v6286_v36 = vpop.eup %6285  ;;  %6291 = vtanh.f32 %v4304_v16  ;;  %4343 = vrot.lane.b32.xlu1 %v6284_v60, %s6357_s26 }
0x130e   :  { %6293 = vtanh.f32 %v4303_v49  ;;  %4341 = vrot.lane.b32.xlu0 %v6286_v36, %s6357_s26 }
0x1310   :  { %v6288_v63 = vpop.eup %6287 }
0x1311   :  { %v6290_v21 = vpop.eup %6289  ;;  %4347 = vrot.lane.b32.xlu1 %v6288_v63, %s6357_s26 }
0x1312   :  { %4345 = vrot.lane.b32.xlu0 %v6290_v21, %s6357_s26  ;;  %v4319_v21 = vmul.f32 %v8351_v18, %v5146_v32 }
0x1317   :  { %v6292_v50 = vpop.eup %6291 }
0x1318   :  { %v6294_v28 = vpop.eup %6293  ;;  %4351 = vrot.lane.b32.xlu1 %v6292_v50, %s6357_s26 }
0x1319   :  { %4349 = vrot.lane.b32.xlu0 %v6294_v28, %s6357_s26 }
0x137b   :  { %v4340_v62 = vpop.permute.xlu1 %4339 }
0x137c   :  { %v4362_v55 = vmul.f32 %v4340_v62, %v4322_v29  ;;  %v4338_v13 = vpop.permute.xlu0 %4337 }
0x137d   :  { %v4361_v22 = vmul.f32 %v4338_v13, %v4321_v44 }
0x137e   :  { %v8375_v2 = vadd.f32 %v4362_v55, %v4314_v15 }
0x137f   :  { %v8378_v11 = vadd.f32 %v4361_v22, %v4313_v39  ;;  %v4344_v9 = vpop.permute.xlu1 %4343 }
0x1380   :  { %v5181_v52 = vclamps-f32 %v8375_v2, 10000.0  ;;  %v4364_v45 = vmul.f32 %v4344_v9, %v4324_v37  ;;  %v4342_v26 = vpop.permute.xlu0 %4341 }
0x1381   :  { %v5180_v3 = vclamps-f32 %v8378_v11, 10000.0  ;;  %v4363_v43 = vmul.f32 %v4342_v26, %v4323_v24 }
0x1382   :  { %v8389_v48 = vadd.f32 %v4364_v45, %v4316_v31  ;;  %4399 = vrot.lane.b32.xlu1 %v5181_v52, %s6359_s27 }
0x1383   :  { %v8395_v58 = vadd.f32 %v4363_v43, %v4315_v35  ;;  %4397 = vrot.lane.b32.xlu0 %v5180_v3, %s6359_s27  ;;  %v4348_v42 = vpop.permute.xlu1 %4347 }
0x1384   :  { %v5183_v33 = vclamps-f32 %v8389_v48, 10000.0  ;;  %v4366_v0 = vmul.f32 %v4348_v42, %v4326_v30  ;;  %v4346_v23 = vpop.permute.xlu0 %4345 }
0x1385   :  { %v5182_v16 = vclamps-f32 %v8395_v58, 10000.0  ;;  %v4365_v59 = vmul.f32 %v4346_v23, %v4325_v14 }
0x1386   :  { %v8409_v60 = vadd.f32 %v4366_v0, %v4318_v61  ;;  %4403 = vrot.lane.b32.xlu1 %v5183_v33, %s6359_s27 }
0x1387   :  { %v8414_v49 = vadd.f32 %v4365_v59, %v4317_v1  ;;  %4401 = vrot.lane.b32.xlu0 %v5182_v16, %s6359_s27 }
0x1388   :  { %v5185_v56 = vclamps-f32 %v8409_v60, 10000.0 }
0x1389   :  { %v5184_v40 = vclamps-f32 %v8414_v49, 10000.0 }
0x138a   :  { %v4352_v57 = vpop.permute.xlu1 %4351  ;;  %4420 = vrot.lane.b32.xlu1 %v5185_v56, %s6359_s27 }
0x138b   :  { %v4368_v36 = vmul.f32 %v4352_v57, %v4328_v25  ;;  %v4350_v63 = vpop.permute.xlu0 %4349  ;;  %4418 = vrot.lane.b32.xlu0 %v5184_v40, %s6359_s27 }
0x138c   :  { %v4367_v46 = vmul.f32 %v4350_v63, %v4327_v4 }
0x138d   :  { %v8435_v50 = vadd.f32 %v4368_v36, %v4320_v54 }
0x138e   :  { %v8437_v28 = vadd.f32 %v4367_v46, %v4319_v21 }
0x138f   :  { %v5187_v29 = vclamps-f32 %v8435_v50, 10000.0 }
0x1390   :  { %v5186_v20 = vclamps-f32 %v8437_v28, 10000.0 }
0x1391   :  { %4424 = vrot.lane.b32.xlu1 %v5187_v29, %s6359_s27 }
0x1392   :  { %4422 = vrot.lane.b32.xlu0 %v5186_v20, %s6359_s27 }
0x1395   :  { %1098 = vperm.xlu1 %5958, %v8149_v27  }
0x1396   :  { %1093 = vperm.xlu0 %5957, %v8152_v8  }
0x1399   :  { %1103 = vperm.xlu1 %5958, %v8158_v41  }
0x139a   :  { %1108 = vperm.xlu0 %5957, %v8164_v5  }
0x139d   :  { %1113 = vperm.xlu1 %5958, %v8155_v38  }
0x139e   :  { %1118 = vperm.xlu0 %5957, %v8167_v7  }
0x13a1   :  { %1123 = vperm.xlu1 %5958, %v8161_v51  }
0x13a2   :  { %1128 = vperm.xlu0 %5957, %v8170_v34  }
0x13f4   :  { %v8455_v53 = vpop.permute.xlu1 %4399 }
0x13f5   :  { %5189 = vst.msk [vmem:[%s8702_s7 + $0xc8] sm:$0xff] %vm486_vm3, %v8455_v53  ;;  %v8462_v19 = vpop.permute.xlu0 %4397 }
0x13f6   :  { %5188 = vst.msk [vmem:[%s8702_s7 + $0xc0] sm:$0xff] %vm486_vm3, %v8462_v19  ;;  %5756 = vmatprep.mubr.msk.f32.mxu0 %vm486_vm3, %v8462_v19 }
0x13f7   :  { %5757 = vmatmul.mubr.msk.f32.vlgmr.msra.gmra.mrb[60].mxu0 %vm486_vm3, %v8455_v53 }
0x13f8   :  { %v8473_v32 = vpop.permute.xlu1 %4403 }
0x13f9   :  { %5191 = vst.msk [vmem:[%s8702_s7 + $0xd8] sm:$0xff] %vm486_vm3, %v8473_v32  ;;  %v8480_v27 = vpop.permute.xlu0 %4401 }
0x13fa   :  { %5190 = vst.msk [vmem:[%s8702_s7 + $0xd0] sm:$0xff] %vm486_vm3, %v8480_v27  ;;  %5759 = vmatprep.mubr.msk.f32.mxu0 %vm486_vm3, %v8480_v27 }
0x13fb   :  { %5760 = vmatmul.mubr.msk.f32.gmra.mrb[62].mxu0 %vm486_vm3, %v8473_v32 }
0x13fc   :  { %v8491_v8 = vpop.permute.xlu1 %4420 }
0x13fd   :  { %5193 = vst.msk [vmem:[%s8703_s8 + $0x28] sm:$0xff] %vm486_vm3, %v8491_v8  ;;  %v8498_v38 = vpop.permute.xlu0 %4418 }
0x13fe   :  { %5192 = vst.msk [vmem:[%s8703_s8 + $0x20] sm:$0xff] %vm486_vm3, %v8498_v38  ;;  %5762 = vmatprep.mubr.msk.f32.mxu0 %vm486_vm3, %v8498_v38 }
0x13ff   :  { %5763 = vmatmul.mubr.msk.f32.gmra.mrb[64].mxu0 %vm486_vm3, %v8491_v8 }
0x1403   :  { %v8509_v41 = vpop.permute.xlu1 %4424 }
0x1404   :  { %5195 = vst.msk [vmem:[%s8703_s8 + $0x38] sm:$0xff] %vm486_vm3, %v8509_v41  ;;  %v8516_v51 = vpop.permute.xlu0 %4422 }
0x1405   :  { %5194 = vst.msk [vmem:[%s8703_s8 + $0x30] sm:$0xff] %vm486_vm3, %v8516_v51  ;;  %5765 = vmatprep.mubr.msk.f32.mxu0 %vm486_vm3, %v8516_v51 }
0x1406   :  { %5766 = vmatmul.mubr.msk.f32.gmra.mrb[66].mxu0 %vm486_vm3, %v8509_v41 }
0x1414   :  { %v1099_v5 = vpop.permute.xlu1 %1098 }
0x1415   :  { %v1132_v7 = vmul.f32 %v8251_v10, %v1099_v5  ;;  %v1157_v34 = vmul.f32 %v8257_v12, %v1099_v5  ;;  %v1094_v47 = vpop.permute.xlu0 %1093 }
0x1416   :  { %v1131_v18 = vmul.f32 %v8251_v10, %v1094_v47  ;;  %v1156_v62 = vmul.f32 %v8257_v12, %v1094_v47 }
0x1417   :  { %v1140_v44 = vadd.f32 %v8265_v6, %v1132_v7  ;;  %v1165_v15 = vadd.f32 %v8271_v17, %v1157_v34 }
0x1418   :  { %v1139_v55 = vadd.f32 %v8265_v6, %v1131_v18  ;;  %v1164_v13 = vadd.f32 %v8271_v17, %v1156_v62  ;;  %v1104_v39 = vpop.permute.xlu1 %1103 }
0x1419   :  { %1149 = vst.msk [vmem:[#allocation3 + $0x1c8] sm:$0xff] %vm453_vm2, %v1140_v44  ;;  %v1133_v22 = vmul.f32 %v8251_v10, %v1104_v39  ;;  %v1158_v37 = vmul.f32 %v8257_v12, %v1104_v39  ;;  %v1109_v9 = vpop.permute.xlu0 %1108 }
0x141a   :  { %1174 = vst.msk [vmem:[#allocation4 + $0x1c8] sm:$0xff] %vm486_vm3, %v1165_v15  ;;  %1173 = vst.msk [vmem:[#allocation4 + $0x1c0] sm:$0xff] %vm486_vm3, %v1164_v13  ;;  %v1134_v24 = vmul.f32 %v8251_v10, %v1109_v9  ;;  %v1159_v31 = vmul.f32 %v8257_v12, %v1109_v9 }
0x141b   :  { %1148 = vst.msk [vmem:[#allocation3 + $0x1c0] sm:$0xff] %vm453_vm2, %v1139_v55  ;;  %v1141_v45 = vadd.f32 %v8265_v6, %v1133_v22  ;;  %v1166_v26 = vadd.f32 %v8271_v17, %v1158_v37 }
0x141c   :  { %v1142_v35 = vadd.f32 %v8265_v6, %v1134_v24  ;;  %v1167_v43 = vadd.f32 %v8271_v17, %v1159_v31  ;;  %v1114_v30 = vpop.permute.xlu1 %1113 }
0x141d   :  { %1150 = vst.msk [vmem:[#allocation3 + $0x1d0] sm:$0xff] %vm453_vm2, %v1141_v45  ;;  %v1135_v42 = vmul.f32 %v8251_v10, %v1114_v30  ;;  %v1160_v14 = vmul.f32 %v8257_v12, %v1114_v30  ;;  %v1119_v61 = vpop.permute.xlu0 %1118 }
0x141e   :  { %1175 = vst.msk [vmem:[#allocation4 + $0x1d0] sm:$0xff] %vm486_vm3, %v1166_v26  ;;  %1176 = vst.msk [vmem:[#allocation4 + $0x1d8] sm:$0xff] %vm486_vm3, %v1167_v43  ;;  %v1136_v0 = vmul.f32 %v8251_v10, %v1119_v61  ;;  %v1161_v23 = vmul.f32 %v8257_v12, %v1119_v61 }
0x141f   :  { %1151 = vst.msk [vmem:[#allocation3 + $0x1d8] sm:$0xff] %vm453_vm2, %v1142_v35  ;;  %v1143_v1 = vadd.f32 %v8265_v6, %v1135_v42  ;;  %v1168_v59 = vadd.f32 %v8271_v17, %v1160_v14 }
0x1420   :  { %v1144_v25 = vadd.f32 %v8265_v6, %v1136_v0  ;;  %v1169_v57 = vadd.f32 %v8271_v17, %v1161_v23  ;;  %v1124_v4 = vpop.permute.xlu1 %1123  ;;  %v4436_v18 = vld [vmem:[#allocation3 + $0x1c8] sm:$0xff] }
0x1421   :  { %1152 = vst.msk [vmem:[#allocation3 + $0x1e0] sm:$0xff] %vm453_vm2, %v1143_v1  ;;  %v1137_v54 = vmul.f32 %v8251_v10, %v1124_v4  ;;  %v1162_v36 = vmul.f32 %v8257_v12, %v1124_v4  ;;  %v1129_v63 = vpop.permute.xlu0 %1128 }
0x1422   :  { %1177 = vst.msk [vmem:[#allocation4 + $0x1e0] sm:$0xff] %vm486_vm3, %v1168_v59  ;;  %1178 = vst.msk [vmem:[#allocation4 + $0x1e8] sm:$0xff] %vm486_vm3, %v1169_v57  ;;  %v1138_v21 = vmul.f32 %v8251_v10, %v1129_v63  ;;  %v1163_v46 = vmul.f32 %v8257_v12, %v1129_v63  ;;  %v4435_v12 = vld [vmem:[#allocation3 + $0x1c0] sm:$0xff] }
0x1423   :  { %1153 = vst.msk [vmem:[#allocation3 + $0x1e8] sm:$0xff] %vm453_vm2, %v1144_v25  ;;  %v1145_v5 = vadd.f32 %v8265_v6, %v1137_v54  ;;  %v1170_v7 = vadd.f32 %v8271_v17, %v1162_v36 }
0x1424   :  { %v1146_v34 = vadd.f32 %v8265_v6, %v1138_v21  ;;  %v1171_v47 = vadd.f32 %v8271_v17, %v1163_v46  ;;  %v4437_v22 = vld [vmem:[#allocation3 + $0x1d0] sm:$0xff] }
0x1425   :  { %1154 = vst.msk [vmem:[#allocation3 + $0x1f0] sm:$0xff] %vm453_vm2, %v1145_v5 }
0x1426   :  { %1179 = vst.msk [vmem:[#allocation4 + $0x1f0] sm:$0xff] %vm486_vm3, %v1170_v7  ;;  %1180 = vst.msk [vmem:[#allocation4 + $0x1f8] sm:$0xff] %vm486_vm3, %v1171_v47  ;;  %v4438_v39 = vld [vmem:[#allocation3 + $0x1d8] sm:$0xff] }
0x1427   :  { %1155 = vst.msk [vmem:[#allocation3 + $0x1f8] sm:$0xff] %vm453_vm2, %v1146_v34 }
0x1428   :  { %v4439_v43 = vld [vmem:[#allocation3 + $0x1e0] sm:$0xff] }
0x142a   :  { %v4440_v45 = vld [vmem:[#allocation3 + $0x1e8] sm:$0xff] }
0x142c   :  { %v4441_v4 = vld [vmem:[#allocation3 + $0x1f0] sm:$0xff] }
0x142e   :  { %v4442_v23 = vld [vmem:[#allocation3 + $0x1f8] sm:$0xff] }
0x14ca   :  { %v5758_v10 = vpop.f32.mrb[60].mxu0 }
0x14cb   :  { %v4565_v62 = vadd.f32 %v5758_v10, %v4436_v18  ;;  %v4525_v44 = vpop.f32.mrb[61].mxu0 }
0x14cc   :  { %v4564_v15 = vadd.f32 %v4525_v44, %v4435_v12 }
0x14cd   :  { %v5205_v55 = vmul.f32 -1.442695, %v4565_v62 }
0x14ce   :  { %v5204_v13 = vmul.f32 -1.442695, %v4564_v15  ;;  %v5761_v6 = vpop.f32.mrb[62].mxu0 }
0x14cf   :  { %6295 = vpow2.f32 %v5205_v55  ;;  %v4567_v17 = vadd.f32 %v5761_v6, %v4438_v39  ;;  %v4535_v37 = vpop.f32.mrb[63].mxu0 }
0x14d0   :  { %6297 = vpow2.f32 %v5204_v13  ;;  %v4566_v9 = vadd.f32 %v4535_v37, %v4437_v22 }
0x14d1   :  { %v5207_v24 = vmul.f32 -1.442695, %v4567_v17 }
0x14d2   :  { %v5206_v31 = vmul.f32 -1.442695, %v4566_v9  ;;  %v5764_v26 = vpop.f32.mrb[64].mxu0 }
0x14d3   :  { %6299 = vpow2.f32 %v5207_v24  ;;  %v4569_v35 = vadd.f32 %v5764_v26, %v4440_v45  ;;  %v4545_v30 = vpop.f32.mrb[65].mxu0 }
0x14d4   :  { %6301 = vpow2.f32 %v5206_v31  ;;  %v4568_v42 = vadd.f32 %v4545_v30, %v4439_v43 }
0x14d5   :  { %v5209_v14 = vmul.f32 -1.442695, %v4569_v35 }
0x14d6   :  { %v5208_v61 = vmul.f32 -1.442695, %v4568_v42  ;;  %v4620_v42 = vld [vmem:[#allocation4 + $0x1c0] sm:$0xff] }
0x14d7   :  { %6303 = vpow2.f32 %v5209_v14 }
0x14d8   :  { %6305 = vpow2.f32 %v5208_v61 }
0x14d9   :  { %v6296_v0 = vpop.eup %6295  ;;  %v5767_v1 = vpop.f32.mrb[66].mxu0 }
0x14da   :  { %v6298_v59 = vpop.eup %6297  ;;  %v4597_v25 = vadd.f32 1.0, %v6296_v0  ;;  %v4571_v57 = vadd.f32 %v5767_v1, %v4442_v23  ;;  %v4555_v54 = vpop.f32.mrb[67].mxu0  ;;  %v4623_v0 = vld [vmem:[#allocation4 + $0x1d8] sm:$0xff] }
0x14db   :  { %v4596_v36 = vadd.f32 1.0, %v6298_v59  ;;  %v4570_v63 = vadd.f32 %v4555_v54, %v4441_v4  ;;  %v4622_v59 = vld [vmem:[#allocation4 + $0x1d0] sm:$0xff]  ;;  %v4624_v54 = vld [vmem:[#allocation4 + $0x1e0] sm:$0xff] }
0x14dc   :  { %6307 = vrcp.f32 %v4597_v25  ;;  %v5211_v21 = vmul.f32 -1.442695, %v4571_v57 }
0x14dd   :  { %v6300_v46 = vpop.eup %6299  ;;  %6309 = vrcp.f32 %v4596_v36  ;;  %v5210_v5 = vmul.f32 -1.442695, %v4570_v63 }
0x14de   :  { %v6302_v7 = vpop.eup %6301  ;;  %v4599_v34 = vadd.f32 1.0, %v6300_v46  ;;  %6311 = vpow2.f32 %v5211_v21 }
0x14df   :  { %v4598_v47 = vadd.f32 1.0, %v6302_v7  ;;  %6313 = vpow2.f32 %v5210_v5  ;;  %v4627_v5 = vld [vmem:[#allocation4 + $0x1f8] sm:$0xff] }
0x14e0   :  { %6315 = vrcp.f32 %v4599_v34 }
0x14e1   :  { %v6304_v18 = vpop.eup %6303  ;;  %6317 = vrcp.f32 %v4598_v47  ;;  %v4626_v47 = vld [vmem:[#allocation4 + $0x1f0] sm:$0xff] }
0x14e2   :  { %v6306_v10 = vpop.eup %6305  ;;  %v4601_v62 = vadd.f32 1.0, %v6304_v18 }
0x14e3   :  { %v4600_v12 = vadd.f32 1.0, %v6306_v10 }
0x14e4   :  { %6319 = vrcp.f32 %v4601_v62 }
0x14e5   :  { %6321 = vrcp.f32 %v4600_v12 }
0x14e6   :  { %v8575_v44 = vpop.eup %6307 }
0x14e7   :  { %v8577_v15 = vpop.eup %6309  ;;  %v4629_v17 = vmul.f32 %v8575_v44, %v8455_v53 }
0x14e8   :  { %v6312_v55 = vpop.eup %6311  ;;  %v4628_v13 = vmul.f32 %v8577_v15, %v8462_v19 }
0x14e9   :  { %v6314_v39 = vpop.eup %6313  ;;  %v4603_v6 = vadd.f32 1.0, %v6312_v55 }
0x14ea   :  { %v8583_v22 = vpop.eup %6315  ;;  %v4602_v37 = vadd.f32 1.0, %v6314_v39  ;;  %5776 = vmatprep.mubr.msk.f32.mxu1 %vm486_vm3, %v4628_v13 }
0x14eb   :  { %v8586_v9 = vpop.eup %6317  ;;  %6323 = vrcp.f32 %v4603_v6  ;;  %5777 = vmatmul.mubr.msk.f32.vlgmr.msra.gmra.mrb[60].mxu1 %vm486_vm3, %v4629_v17  ;;  %v4631_v19 = vmul.f32 %v8583_v22, %v8473_v32  ;;  %v4790_v17 = vsub.f32 1.0, %v8575_v44  ;;  %v4784_v2 = vmul.f32 %v8583_v22, %v5183_v33 }
0x14ec   :  { %6325 = vrcp.f32 %v4602_v37  ;;  %v4630_v24 = vmul.f32 %v8586_v9, %v8480_v27  ;;  %v4783_v11 = vmul.f32 %v8586_v9, %v5182_v16 }
0x14ee   :  { %v8593_v31 = vpop.eup %6319  ;;  %5779 = vmatprep.mubr.msk.f32.mxu1 %vm486_vm3, %v4630_v24  ;;  %v4789_v24 = vsub.f32 1.0, %v8577_v15 }
0x14ef   :  { %v8596_v53 = vpop.eup %6321  ;;  %5780 = vmatmul.mubr.msk.f32.gmra.mrb[62].mxu1 %vm486_vm3, %v4631_v19  ;;  %v4633_v26 = vmul.f32 %v8593_v31, %v8491_v8  ;;  %v4782_v19 = vmul.f32 %v8575_v44, %v5181_v52 }
0x14f0   :  { %v4632_v45 = vmul.f32 %v8596_v53, %v8498_v38  ;;  %v4621_v38 = vld [vmem:[#allocation4 + $0x1c8] sm:$0xff]  ;;  %v4793_v48 = vsub.f32 1.0, %v8596_v53 }
0x14f2   :  { %5782 = vmatprep.mubr.msk.f32.mxu1 %vm486_vm3, %v4632_v45 }
0x14f3   :  { %5783 = vmatmul.mubr.msk.f32.gmra.mrb[64].mxu1 %vm486_vm3, %v4633_v26 }
0x14f5   :  { %v8605_v27 = vpop.eup %6323 }
0x14f6   :  { %v8607_v32 = vpop.eup %6325  ;;  %v4635_v43 = vmul.f32 %v8605_v27, %v8509_v41  ;;  %v4625_v41 = vld [vmem:[#allocation4 + $0x1e8] sm:$0xff]  ;;  %v4796_v60 = vsub.f32 1.0, %v8605_v27  ;;  %v4788_v49 = vmul.f32 %v8605_v27, %v5187_v29 }
0x14f7   :  { %v4634_v35 = vmul.f32 %v8607_v32, %v8516_v51 }
0x14f9   :  { %5785 = vmatprep.mubr.msk.f32.mxu1 %vm486_vm3, %v4634_v35  ;;  %v4781_v35 = vmul.f32 %v8577_v15, %v5180_v3 }
0x14fa   :  { %5786 = vmatmul.mubr.msk.f32.gmra.mrb[66].mxu1 %vm486_vm3, %v4635_v43 }
0x15be   :  { %v5778_v8 = vpop.f32.mrb[60].mxu1 }
0x15bf   :  { %v4766_v30 = vadd.f32 %v5778_v8, %v4621_v38  ;;  %v4726_v14 = vpop.f32.mrb[61].mxu1  ;;  %v4792_v8 = vsub.f32 1.0, %v8583_v22  ;;  %v4786_v22 = vmul.f32 %v8593_v31, %v5185_v56  ;;  %v4795_v56 = vsub.f32 1.0, %v8607_v32 }
0x15c0   :  { %v4765_v61 = vadd.f32 %v4726_v14, %v4620_v42  ;;  %v4791_v14 = vsub.f32 1.0, %v8586_v9  ;;  %v4785_v9 = vmul.f32 %v8596_v53, %v5184_v40  ;;  %v4787_v53 = vmul.f32 %v8607_v32, %v5186_v20 }
0x15c1   :  { %6327 = vtanh.f32 %v4766_v30 }
0x15c2   :  { %6329 = vtanh.f32 %v4765_v61  ;;  %v5781_v23 = vpop.f32.mrb[62].mxu1 }
0x15c3   :  { %v4768_v1 = vadd.f32 %v5781_v23, %v4623_v0  ;;  %v4736_v51 = vpop.f32.mrb[63].mxu1  ;;  %v4794_v23 = vsub.f32 1.0, %v8593_v31 }
0x15c4   :  { %v4767_v25 = vadd.f32 %v4736_v51, %v4622_v59 }
0x15c5   :  { %6331 = vtanh.f32 %v4768_v1 }
0x15c6   :  { %6333 = vtanh.f32 %v4767_v25  ;;  %v5784_v57 = vpop.f32.mrb[64].mxu1 }
0x15c7   :  { %v4770_v4 = vadd.f32 %v5784_v57, %v4625_v41  ;;  %v4746_v36 = vpop.f32.mrb[65].mxu1 }
0x15c8   :  { %v4769_v63 = vadd.f32 %v4746_v36, %v4624_v54 }
0x15c9   :  { %6335 = vtanh.f32 %v4770_v4 }
0x15ca   :  { %6337 = vtanh.f32 %v4769_v63 }
0x15cb   :  { %v6328_v21 = vpop.eup %6327 }
0x15cc   :  { %v6330_v46 = vpop.eup %6329  ;;  %4807 = vrot.lane.b32.xlu0 %v6328_v21, %s6357_s26 }
0x15cd   :  { %v5787_v7 = vpop.f32.mrb[66].mxu1  ;;  %4805 = vrot.lane.b32.xlu1 %v6330_v46, %s6357_s26 }
0x15ce   :  { %v4772_v34 = vadd.f32 %v5787_v7, %v4627_v5  ;;  %v4756_v18 = vpop.f32.mrb[67].mxu1 }
0x15cf   :  { %v6332_v10 = vpop.eup %6331  ;;  %v4771_v62 = vadd.f32 %v4756_v18, %v4626_v47 }
0x15d0   :  { %v6334_v12 = vpop.eup %6333  ;;  %6339 = vtanh.f32 %v4772_v34  ;;  %4811 = vrot.lane.b32.xlu0 %v6332_v10, %s6357_s26 }
0x15d1   :  { %6341 = vtanh.f32 %v4771_v62  ;;  %4809 = vrot.lane.b32.xlu1 %v6334_v12, %s6357_s26 }
0x15d3   :  { %v6336_v55 = vpop.eup %6335 }
0x15d4   :  { %v6338_v13 = vpop.eup %6337  ;;  %4815 = vrot.lane.b32.xlu0 %v6336_v55, %s6357_s26 }
0x15d5   :  { %4813 = vrot.lane.b32.xlu1 %v6338_v13, %s6357_s26 }
0x15da   :  { %v6340_v39 = vpop.eup %6339 }
0x15db   :  { %v6342_v6 = vpop.eup %6341  ;;  %4819 = vrot.lane.b32.xlu0 %v6340_v39, %s6357_s26 }
0x15dc   :  { %4817 = vrot.lane.b32.xlu1 %v6342_v6, %s6357_s26 }
0x163e   :  { %v4808_v37 = vpop.permute.xlu0 %4807 }
0x163f   :  { %v4830_v45 = vmul.f32 %v4808_v37, %v4790_v17  ;;  %v4806_v26 = vpop.permute.xlu1 %4805 }
0x1640   :  { %v4829_v43 = vmul.f32 %v4806_v26, %v4789_v24 }
0x1641   :  { %v4838_v38 = vadd.f32 %v4830_v45, %v4782_v19 }
0x1642   :  { %v4837_v30 = vadd.f32 %v4829_v43, %v4781_v35  ;;  %v4812_v42 = vpop.permute.xlu0 %4811 }
0x1643   :  { %v5221_v61 = vclamps-f32 %v4838_v38, 10000.0  ;;  %v4832_v52 = vmul.f32 %v4812_v42, %v4792_v8  ;;  %v4810_v44 = vpop.permute.xlu1 %4809 }
0x1644   :  { %v5220_v0 = vclamps-f32 %v4837_v30, 10000.0  ;;  %v4831_v3 = vmul.f32 %v4810_v44, %v4791_v14 }
0x1645   :  { %v4840_v15 = vadd.f32 %v4832_v52, %v4784_v2  ;;  %4867 = vrot.lane.b32.xlu0 %v5221_v61, %s6359_s27 }
0x1646   :  { %v4839_v1 = vadd.f32 %v4831_v3, %v4783_v11  ;;  %v4816_v59 = vpop.permute.xlu0 %4815  ;;  %4865 = vrot.lane.b32.xlu1 %v5220_v0, %s6359_s27 }
0x1647   :  { %v5223_v33 = vclamps-f32 %v4840_v15, 10000.0  ;;  %v4834_v58 = vmul.f32 %v4816_v59, %v4794_v23  ;;  %v4814_v51 = vpop.permute.xlu1 %4813 }
0x1648   :  { %v5222_v16 = vclamps-f32 %v4839_v1, 10000.0  ;;  %v4833_v25 = vmul.f32 %v4814_v51, %v4793_v48 }
0x1649   :  { %v4842_v41 = vadd.f32 %v4834_v58, %v4786_v22  ;;  %4871 = vrot.lane.b32.xlu0 %v5223_v33, %s6359_s27 }
0x164a   :  { %v4841_v57 = vadd.f32 %v4833_v25, %v4785_v9  ;;  %4869 = vrot.lane.b32.xlu1 %v5222_v16, %s6359_s27 }
0x164b   :  { %v5225_v4 = vclamps-f32 %v4842_v41, 10000.0 }
0x164c   :  { %v5224_v54 = vclamps-f32 %v4841_v57, 10000.0 }
0x164d   :  { %v4820_v36 = vpop.permute.xlu0 %4819  ;;  %4888 = vrot.lane.b32.xlu0 %v5225_v4, %s6359_s27 }
0x164e   :  { %v4836_v40 = vmul.f32 %v4820_v36, %v4796_v60  ;;  %v4818_v31 = vpop.permute.xlu1 %4817  ;;  %4886 = vrot.lane.b32.xlu1 %v5224_v54, %s6359_s27 }
0x164f   :  { %v4835_v63 = vmul.f32 %v4818_v31, %v4795_v56 }
0x1650   :  { %v4844_v21 = vadd.f32 %v4836_v40, %v4788_v49 }
0x1651   :  { %v4843_v46 = vadd.f32 %v4835_v63, %v4787_v53 }
0x1652   :  { %v5227_v5 = vclamps-f32 %v4844_v21, 10000.0 }
0x1653   :  { %v5226_v7 = vclamps-f32 %v4843_v46, 10000.0 }
0x1654   :  { %4892 = vrot.lane.b32.xlu0 %v5227_v5, %s6359_s27 }
0x1655   :  { %4890 = vrot.lane.b32.xlu1 %v5226_v7, %s6359_s27 }
0x16b7   :  { %v4868_v50 = vpop.permute.xlu0 %4867 }
0x16b8   :  { %5229 = vst.msk [vmem:[%s8702_s7 + $0xe8] sm:$0xff] %vm486_vm3, %v4868_v50  ;;  %v4866_v29 = vpop.permute.xlu1 %4865 }
0x16b9   :  { %5228 = vst.msk [vmem:[%s8702_s7 + $0xe0] sm:$0xff] %vm486_vm3, %v4866_v29 }
0x16bb   :  { %v4872_v28 = vpop.permute.xlu0 %4871 }
0x16bc   :  { %5231 = vst.msk [vmem:[%s8702_s7 + $0xf8] sm:$0xff] %vm486_vm3, %v4872_v28  ;;  %v4870_v20 = vpop.permute.xlu1 %4869 }
0x16bd   :  { %5230 = vst.msk [vmem:[%s8702_s7 + $0xf0] sm:$0xff] %vm486_vm3, %v4870_v20 }
0x16bf   :  { %v4889_v27 = vpop.permute.xlu0 %4888 }
0x16c0   :  { %4899 = vst.msk [vmem:[%s8703_s8 + $0x8] sm:$0xff] %vm486_vm3, %v4889_v27  ;;  %v4887_v32 = vpop.permute.xlu1 %4886 }
0x16c1   :  { %4898 = vst.msk [vmem:[%s8703_s8] sm:$0xff] %vm486_vm3, %v4887_v32 }
0x16c6   :  { %v4893_v34 = vpop.permute.xlu0 %4892 }
0x16c7   :  { %4901 = vst.msk [vmem:[%s8703_s8 + $0x18] sm:$0xff] %vm486_vm3, %v4893_v34  ;;  %v4891_v47 = vpop.permute.xlu1 %4890 }
0x16c8   :  { %4900 = vst.msk [vmem:[%s8703_s8 + $0x10] sm:$0xff] %vm486_vm3, %v4891_v47 }

</bundles_post_ra>
